<compile_context>
chip_gen: v7x
topology: tpu7x:2x2x1
jax: 0.10.0
libtpu: 0.0.40
codegen_flags: <defaults>
</compile_context>

<pallas_src>
import functools
import math

import jax
import jax.numpy as jnp
from jax.experimental import pallas as pl
from jax.experimental.pallas import tpu as pltpu


# ----------------------------------------------------------------------------
# Tiling / budget constants
# ----------------------------------------------------------------------------
_TILE_P = 512                     # pixel lanes per matmul grid step (multiple of 128)
_TILE_R = 512                     # rows per Gaussian grid step
_GAUSS_LANES = 512                # lane width of the Gaussian repacking
_VMEM_LIMIT = 32 * 1024 * 1024    # explicit scoped-VMEM budget (safe on v5e/v6e/v7x)
_MM_DTYPE = jnp.bfloat16          # MXU-native matmul input dtype (f32 accumulation)
_ACT_DTYPE = jnp.bfloat16         # intermediate activation dtype in HBM


def _round_up(x, m):
    return (x + m - 1) // m * m


def _pick_tile(total, target, gran):
    """Largest multiple of `gran` that divides `total`, is <= `target`, and leaves
    >= 2 grid steps (keeps both v7x TensorCores busy).  `total` must be a
    multiple of 2*gran."""
    best = gran
    cap = min(target, total // 2)
    t = gran
    while t <= cap:
        if total % t == 0:
            best = t
        t += gran
    return best


# ----------------------------------------------------------------------------
# Pallas kernels (the hot paths)
# ----------------------------------------------------------------------------
def _matmul_bias_kernel(w_ref, a_ref, b_ref, o_ref, *, activation):
    # out (C, tile) = W (C, K) @ A (K, tile) + b; pixels on the lane axis.
    acc = jnp.dot(w_ref[...], a_ref[...], preferred_element_type=jnp.float32)
    x = acc + b_ref[...]
    if activation == "relu":
        x = jnp.maximum(x, 0.0)
    o_ref[...] = x.astype(o_ref.dtype)


def _matmul_gdn_kernel(w_ref, a_ref, b_ref, g_ref, bt_ref, o_ref, *, inverse):
    # conv output tile (all C channels per pixel) -> fused GDN / IGDN epilogue:
    #   norm[c,p] = beta[c] + sum_k gamma[c,k] * x[k,p]^2
    #   out = x * rsqrt(norm)   (or x * sqrt(norm) for inverse GDN)
    acc = jnp.dot(w_ref[...], a_ref[...], preferred_element_type=jnp.float32)
    x = acc + b_ref[...]
    xx = (x * x).astype(g_ref.dtype)                    # bf16 second matmul, f32 acc
    norm = jnp.dot(g_ref[...], xx, preferred_element_type=jnp.float32) + bt_ref[...]
    if inverse:
        o_ref[...] = (x * jnp.sqrt(norm)).astype(o_ref.dtype)
    else:
        o_ref[...] = (x * jax.lax.rsqrt(norm)).astype(o_ref.dtype)


_SQRT_HALF = 0.7071067811865476  # 2 ** -0.5


def _erfc(z):
    # Abramowitz & Stegun 7.1.26 (|err| < 1.5e-7).
    a1, a2, a3, a4, a5 = 0.254829592, -0.284496736, 1.421413741, -1.453152027, 1.061405429
    p = 0.3275911
    az = jnp.abs(z)
    t = 1.0 / (1.0 + p * az)
    poly = ((((a5 * t + a4) * t + a3) * t + a2) * t + a1) * t
    e = poly * jnp.exp(-az * az)
    return jnp.where(z >= 0.0, e, 2.0 - e)


def _std_cumulative(x):
    # 0.5 * erfc(const * x) with const = -(2**-0.5)
    return 0.5 * _erfc(-_SQRT_HALF * x)


def _gaussian_kernel(y_ref, s_ref, yhat_ref, lik_ref):
    y = y_ref[...]
    y_hat = jnp.round(y)                            # eval-mode quantize, means=None
    scales = jnp.maximum(s_ref[...], 0.11)          # LowerBound(scale_bound=0.11)
    inv_s = 1.0 / scales                            # exact divide (mem-bound kernel)
    v = jnp.abs(y_hat)
    upper = _std_cumulative((0.5 - v) * inv_s)
    lower = _std_cumulative((-0.5 - v) * inv_s)
    # lower bound 1e-9 (likelihood_lower_bound); upper clamp guards approximation error
    lik = jnp.clip(upper - lower, 1e-9, 1.0)
    yhat_ref[...] = y_hat.astype(yhat_ref.dtype)    # bf16 (rounded ints exact <= 256)
    lik_ref[...] = lik


# ----------------------------------------------------------------------------
# Pallas wrappers
# ----------------------------------------------------------------------------
def matmul_fused(a, w, b, *, epilogue="none", gamma=None, beta=None,
                 out_dtype=jnp.float32):
    """out (C, P) = w (C, K) @ a (K, P) + b, fused epilogue ("none"|"relu"|"gdn"|"igdn").

    Pixels (P) live on the 128-lane axis of every block -> unmasked MXU result path
    and unmasked HBM stores regardless of how small the channel count C is."""
    K, P = a.shape
    C = w.shape[0]
    Pp = _round_up(max(P, 1), 256)
    tile = _pick_tile(Pp, _TILE_P, 128)
    if Pp != P:
        a = jnp.pad(a, ((0, 0), (0, Pp - P)))
    a = a.astype(_MM_DTYPE)
    wm = w.astype(_MM_DTYPE)
    b2 = b.reshape(C, 1).astype(jnp.float32)

    out_size = jnp.dtype(out_dtype).itemsize
    flops = 2 * Pp * K * C
    trans = 0
    nbytes = Pp * K * 2 + C * K * 2 + C * 4 + Pp * C * out_size

    if epilogue in ("gdn", "igdn"):
        assert gamma is not None and beta is not None
        g2 = gamma.astype(_MM_DTYPE)                 # norm[c] = sum_k gamma[c,k] x[k]^2
        bt2 = beta.reshape(C, 1).astype(jnp.float32)
        kernel = functools.partial(_matmul_gdn_kernel, inverse=(epilogue == "igdn"))
        in_specs = [
            pl.BlockSpec((C, K), lambda i: (0, 0)),
            pl.BlockSpec((K, tile), lambda i: (0, i)),
            pl.BlockSpec((C, 1), lambda i: (0, 0)),
            pl.BlockSpec((C, C), lambda i: (0, 0)),
            pl.BlockSpec((C, 1), lambda i: (0, 0)),
        ]
        args = (wm, a, b2, g2, bt2)
        flops += 2 * Pp * C * C
        trans += Pp * C
        nbytes += C * C * 2 + C * 4
    else:
        kernel = functools.partial(_matmul_bias_kernel, activation=epilogue)
        in_specs = [
            pl.BlockSpec((C, K), lambda i: (0, 0)),
            pl.BlockSpec((K, tile), lambda i: (0, i)),
            pl.BlockSpec((C, 1), lambda i: (0, 0)),
        ]
        args = (wm, a, b2)

    out = pl.pallas_call(
        kernel,
        out_shape=jax.ShapeDtypeStruct((C, Pp), out_dtype),
        grid=(Pp // tile,),
        in_specs=in_specs,
        out_specs=pl.BlockSpec((C, tile), lambda i: (0, i)),
        compiler_params=pltpu.CompilerParams(
            dimension_semantics=("parallel",),
            vmem_limit_bytes=_VMEM_LIMIT,
        ),
        cost_estimate=pl.CostEstimate(
            flops=flops, transcendentals=trans, bytes_accessed=nbytes),
    )(*args)
    return out if Pp == P else out[:, :P]


def gaussian_conditional(y, scales):
    """Eval-mode quantize + likelihood on a lane-dense (rows, 512) repacking."""
    shape = y.shape
    n = y.size
    lanes = _GAUSS_LANES
    rows = -(-n // lanes)
    rows_p = _round_up(max(rows, 1), 16)
    tile = _pick_tile(rows_p, _TILE_R, 8)
    pad = rows_p * lanes - n
    y2 = jnp.pad(y.reshape(-1).astype(jnp.float32), (0, pad)).reshape(rows_p, lanes)
    s2 = jnp.pad(scales.reshape(-1).astype(jnp.float32), (0, pad),
                 constant_values=1.0).reshape(rows_p, lanes)

    spec = pl.BlockSpec((tile, lanes), lambda i: (i, 0))
    y_hat2, lik2 = pl.pallas_call(
        _gaussian_kernel,
        out_shape=(jax.ShapeDtypeStruct((rows_p, lanes), jnp.bfloat16),
                   jax.ShapeDtypeStruct((rows_p, lanes), jnp.float32)),
        grid=(rows_p // tile,),
        in_specs=[spec, spec],
        out_specs=(spec, spec),
        compiler_params=pltpu.CompilerParams(
            dimension_semantics=("parallel",),
            vmem_limit_bytes=_VMEM_LIMIT,
        ),
        cost_estimate=pl.CostEstimate(
            flops=40 * rows_p * lanes,
            transcendentals=4 * rows_p * lanes,
            bytes_accessed=rows_p * lanes * (4 + 4 + 2 + 4)),
    )(y2, s2)
    y_hat = y_hat2.reshape(-1)[:n].reshape(shape)
    lik = lik2.reshape(-1)[:n].reshape(shape)
    return y_hat, lik


# ----------------------------------------------------------------------------
# Conv / deconv lowering (im2col glue in plain JAX, matmul+epilogue in Pallas).
# Activation layout everywhere is channels-major "CBHW": (C, B, H, W).
# ----------------------------------------------------------------------------
def conv2d(x, w, b, *, stride, padding, epilogue="none", gdn=None,
           out_dtype=_ACT_DTYPE):
    # x: (Cin, B, H, W), w: (Cout, Cin, kh, kw)  (PyTorch nn.Conv2d layout)
    cout, cin, kh, kw = w.shape
    _, B, H, W = x.shape
    xb = x.astype(_MM_DTYPE)                       # cast BEFORE patch materialization
    if padding:
        xb = jnp.pad(xb, ((0, 0), (0, 0), (padding, padding), (padding, padding)))
    Hp, Wp = H + 2 * padding, W + 2 * padding
    Ho = (Hp - kh) // stride + 1
    Wo = (Wp - kw) // stride + 1
    cols = []
    for i in range(kh):
        for j in range(kw):
            cols.append(xb[:, :, i:i + stride * Ho:stride, j:j + stride * Wo:stride])
    # (Cin, kh*kw, B, Ho, Wo) -> (K, P); K ordered (c, i, j), P ordered (b, ho, wo).
    a = jnp.stack(cols, axis=1).reshape(cin * kh * kw, B * Ho * Wo)
    wm = w.reshape(cout, cin * kh * kw)            # same (c, i, j) K ordering
    gamma, beta = gdn if gdn is not None else (None, None)
    out = matmul_fused(a, wm, b, epilogue=epilogue, gamma=gamma, beta=beta,
                       out_dtype=out_dtype)
    return out.reshape(cout, B, Ho, Wo)


def _deconv_phase_info(k, s, p, op, H):
    """Per-axis sub-pixel decomposition of ConvTranspose (no zero-stuffing)."""
    Ho = (H - 1) * s - 2 * p + k + op
    base = k - 1 - p
    infos = []
    for phi in range(s):
        taps = [t for t in range(k) if (phi - base + t) % s == 0]
        assert taps, "sub-pixel phase with no taps (k < s unsupported)"
        offs = [(phi - base + t) // s for t in taps]
        d_min, n = offs[0], len(taps)
        U = (Ho - phi + s - 1) // s                 # outputs carrying this phase
        L = max(0, -d_min)                          # left zero pad
        R = max(0, U + d_min + n - 1 - H)           # right zero pad
        start = max(d_min, 0)                       # crop offset after padding
        infos.append(dict(phi=phi, taps=taps, U=U, L=L, R=R, start=start, n=n))
    return Ho, infos


def deconv2d(x, w, b, *, stride, padding, output_padding, epilogue="none", gdn=None,
             out_dtype=_ACT_DTYPE):
    # x: (Cin, B, H, W), w: (Cin, Cout, kh, kw)  (PyTorch nn.ConvTranspose2d layout)
    # Sub-pixel decomposition: stride*stride small convs on the un-dilated input,
    # phase outputs stacked contiguously and interleaved with ONE transpose/reshape
    # (no strided HBM scatters).  Epilogue is per-pixel, so per-phase fusion is exact.
    cin, cout, kh, kw = w.shape
    assert kh == kw, "square kernels only"  # TODO(synk): rectangular kernels
    _, B, H, W = x.shape
    Ho, infos_h = _deconv_phase_info(kh, stride, padding, output_padding, H)
    Wo, infos_w = _deconv_phase_info(kw, stride, padding, output_padding, W)
    # equivalent direct-conv kernel in Conv2d layout (Cout, Cin, kh, kw), flipped
    w_eq = jnp.transpose(jnp.flip(w, axis=(2, 3)), (1, 0, 2, 3))

    def _phase(ih, iw):
        xe = jnp.pad(x, ((0, 0), (0, 0), (ih["L"], ih["R"]), (iw["L"], iw["R"])))
        xe = xe[:, :, ih["start"]:ih["start"] + ih["U"] + ih["n"] - 1,
                      iw["start"]:iw["start"] + iw["U"] + iw["n"] - 1]
        wsub = w_eq[:, :, ih["taps"], :][:, :, :, iw["taps"]]
        return conv2d(xe, wsub, b, stride=1, padding=0, epilogue=epilogue, gdn=gdn,
                      out_dtype=out_dtype)

    if stride == 1:
        return _phase(infos_h[0], infos_w[0])

    phases = [_phase(ih, iw) for ih in infos_h for iw in infos_w]
    uniform = (Ho % stride == 0 and Wo % stride == 0
               and all(i["U"] == Ho // stride for i in infos_h)
               and all(i["U"] == Wo // stride for i in infos_w))
    if uniform:
        stacked = jnp.stack(phases, axis=0).reshape(
            stride, stride, cout, B, Ho // stride, Wo // stride)
        # out[c, b, s*r+ph, s*q+pw] = stacked[ph, pw, c, b, r, q]
        return jnp.transpose(stacked, (2, 3, 4, 0, 5, 1)).reshape(cout, B, Ho, Wo)

    # Fallback (never hit for the k=5,s=2,p=2,op=1 layers used here): strided scatter.
    out = jnp.zeros((cout, B, Ho, Wo), out_dtype)
    idx = 0
    for ih in infos_h:
        for iw in infos_w:
            out = out.at[:, :, ih["phi"]::stride, iw["phi"]::stride].set(phases[idx])
            idx += 1
    return out


# ----------------------------------------------------------------------------
# Deterministic parameter init (kaiming_normal_ weights, zero biases,
# GDN: effective beta = 1, effective gamma = 0.1 * I)
# ----------------------------------------------------------------------------
def _kaiming(key, shape, fan_in):
    return math.sqrt(2.0 / fan_in) * jax.random.normal(key, shape, jnp.float32)


def init_params(key, N, M):
    keys = iter(jax.random.split(key, 32))

    def conv_p(cin, cout, k):
        w = _kaiming(next(keys), (cout, cin, k, k), cin * k * k)
        return (w, jnp.zeros((cout,), jnp.float32))

    def deconv_p(cin, cout, k):
        # ConvTranspose2d weight (Cin, Cout, k, k); PyTorch fan_in = Cout*k*k
        w = _kaiming(next(keys), (cin, cout, k, k), cout * k * k)
        return (w, jnp.zeros((cout,), jnp.float32))

    def gdn_p(c):
        return (0.1 * jnp.eye(c, dtype=jnp.float32), jnp.ones((c,), jnp.float32))

    p = {}
    p["g_a0"] = conv_p(3, N, 3); p["gdn0"] = gdn_p(N)
    p["g_a1"] = conv_p(N, N, 5); p["gdn1"] = gdn_p(N)
    p["g_a2"] = conv_p(N, N, 5); p["gdn2"] = gdn_p(N)
    p["g_a3"] = conv_p(N, M, 5)
    p["h_a0"] = conv_p(M, N, 3)
    p["h_a1"] = conv_p(N, N, 5)
    p["h_a2"] = conv_p(N, N, 5)
    p["h_s0"] = deconv_p(N, N, 5)
    p["h_s1"] = deconv_p(N, N, 5)
    p["h_s2"] = conv_p(N, M, 3)
    p["g_s0"] = deconv_p(M, N, 3); p["igdn0"] = gdn_p(N)
    p["g_s1"] = deconv_p(N, N, 5); p["igdn1"] = gdn_p(N)
    p["g_s2"] = deconv_p(N, N, 5); p["igdn2"] = gdn_p(N)
    p["g_s3"] = deconv_p(N, 3, 5)
    return p


# ----------------------------------------------------------------------------
# Forward pass (matches ScaleHyperpriorNoEntropy.forward; GDN/ReLU fused in-kernel)
# ----------------------------------------------------------------------------
def forward(params, x_nchw):
    x = jnp.transpose(x_nchw, (1, 0, 2, 3)).astype(jnp.float32)  # NCHW -> CBHW

    # g_a (analysis transform), GDN fused into each conv epilogue (bf16 activations)
    h = conv2d(x, *params["g_a0"], stride=1, padding=1, epilogue="gdn", gdn=params["gdn0"])
    h = conv2d(h, *params["g_a1"], stride=2, padding=2, epilogue="gdn", gdn=params["gdn1"])
    h = conv2d(h, *params["g_a2"], stride=2, padding=2, epilogue="gdn", gdn=params["gdn2"])
    y = conv2d(h, *params["g_a3"], stride=2, padding=2, out_dtype=jnp.float32)

    # h_a(|y|)
    t = conv2d(jnp.abs(y), *params["h_a0"], stride=1, padding=1, epilogue="relu")
    t = conv2d(t, *params["h_a1"], stride=2, padding=2, epilogue="relu")
    z = conv2d(t, *params["h_a2"], stride=2, padding=2)

    # h_s(z)  (NoEntropy model: z used directly)
    s = deconv2d(z, *params["h_s0"], stride=2, padding=2, output_padding=1, epilogue="relu")
    s = deconv2d(s, *params["h_s1"], stride=2, padding=2, output_padding=1, epilogue="relu")
    scales_hat = conv2d(s, *params["h_s2"], stride=1, padding=1, epilogue="relu",
                        out_dtype=jnp.float32)

    # GaussianConditional (eval mode)
    y_hat, y_lik = gaussian_conditional(y, scales_hat)

    # g_s (synthesis transform), inverse-GDN fused into each deconv epilogue
    h = deconv2d(y_hat, *params["g_s0"], stride=1, padding=1, output_padding=0,
                 epilogue="igdn", gdn=params["igdn0"])
    h = deconv2d(h, *params["g_s1"], stride=2, padding=2, output_padding=1,
                 epilogue="igdn", gdn=params["igdn1"])
    h = deconv2d(h, *params["g_s2"], stride=2, padding=2, output_padding=1,
                 epilogue="igdn", gdn=params["igdn2"])
    x_hat = deconv2d(h, *params["g_s3"], stride=2, padding=2, output_padding=1,
                     out_dtype=jnp.float32)

    return {
        "x_hat": jnp.transpose(x_hat, (1, 0, 2, 3)),                 # CBHW -> NCHW
        "likelihoods": {"y": jnp.transpose(y_lik, (1, 0, 2, 3))},    # CBHW -> NCHW
    }


if __name__ == "__main__":
    key = jax.random.PRNGKey(0)
    N, M = 8, 12
    B, H, W = 2, 32, 32           # H, W divisible by 32 (g_a /8, h_a /4 more)

    kp, kx = jax.random.split(key)
    params = init_params(kp, N, M)
    x = jax.random.uniform(kx, (B, 3, H, W), jnp.float32)

    fwd = jax.jit(forward)
    out = fwd(params, x)
    out = jax.block_until_ready(out)

    x_hat = out["x_hat"]
    y_lik = out["likelihoods"]["y"]
    assert x_hat.shape == (B, 3, H, W), x_hat.shape
    assert y_lik.shape == (B, M, H // 8, W // 8), y_lik.shape
    assert bool(jnp.all(jnp.isfinite(x_hat)))
    assert bool(jnp.all(jnp.isfinite(y_lik)))
    assert bool(jnp.all(y_lik >= 1e-9)) and bool(jnp.all(y_lik <= 1.0))
    print("KERNEL_OK")
</pallas_src>

<mosaic_0001>
module attributes {stable_mosaic.version = 11 : i64} {
  func.func @_matmul_gdn_kernel(%arg0: i32, %arg1: memref<8x27xbf16, #tpu.memory_space<vmem>>, %arg2: memref<27x512xbf16, #tpu.memory_space<vmem>>, %arg3: memref<8x1xf32, #tpu.memory_space<vmem>>, %arg4: memref<8x8xbf16, #tpu.memory_space<vmem>>, %arg5: memref<8x1xf32, #tpu.memory_space<vmem>>, %arg6: memref<8x512xbf16, #tpu.memory_space<vmem>>) attributes {dimension_semantics = [#tpu.dimension_semantics<parallel>], iteration_bounds = array<i64: 4>, scalar_prefetch = 0 : i64, scratch_operands = 0 : i64, tpu.core_type = #tpu.core_type<tc>, window_params = [{pipeline_mode = #tpu.pipeline_mode<synchronous>, transform_indices = @transform_0, window_bounds = array<i64: 8, 27>}, {transform_indices = @transform_1, window_bounds = array<i64: 27, 512>}, {pipeline_mode = #tpu.pipeline_mode<synchronous>, transform_indices = @transform_2, window_bounds = array<i64: 8, 1>}, {pipeline_mode = #tpu.pipeline_mode<synchronous>, transform_indices = @transform_3, window_bounds = array<i64: 8, 8>}, {pipeline_mode = #tpu.pipeline_mode<synchronous>, transform_indices = @transform_4, window_bounds = array<i64: 8, 1>}, {transform_indices = @transform_5, window_bounds = array<i64: 8, 512>}]} {
    %c0 = arith.constant 0 : index
    %c0_0 = arith.constant 0 : index
    %0 = vector.load %arg1[%c0, %c0_0] : memref<8x27xbf16, #tpu.memory_space<vmem>>, vector<8x27xbf16>
    %c0_1 = arith.constant 0 : index
    %c0_2 = arith.constant 0 : index
    %1 = vector.load %arg2[%c0_1, %c0_2] : memref<27x512xbf16, #tpu.memory_space<vmem>>, vector<27x512xbf16>
    %cst = arith.constant dense<0.000000e+00> : vector<8x512xf32>
    %2 = tpu.matmul %0, %1, %cst {dimension_numbers = #tpu.dot_dimension_numbers<[1], [0], [0], [1], [0, 0, 1, 1], [], []>} : vector<8x27xbf16>, vector<27x512xbf16>, vector<8x512xf32> -> vector<8x512xf32>
    %c0_3 = arith.constant 0 : index
    %c0_4 = arith.constant 0 : index
    %3 = vector.load %arg3[%c0_3, %c0_4] : memref<8x1xf32, #tpu.memory_space<vmem>>, vector<8x1xf32>
    %4 = vector.broadcast %3 : vector<8x1xf32> to vector<8x512xf32>
    %5 = arith.addf %2, %4 : vector<8x512xf32>
    %6 = arith.mulf %5, %5 : vector<8x512xf32>
    %7 = arith.truncf %6 : vector<8x512xf32> to vector<8x512xbf16>
    %c0_5 = arith.constant 0 : index
    %c0_6 = arith.constant 0 : index
    %8 = vector.load %arg4[%c0_5, %c0_6] : memref<8x8xbf16, #tpu.memory_space<vmem>>, vector<8x8xbf16>
    %cst_7 = arith.constant dense<0.000000e+00> : vector<8x512xf32>
    %9 = tpu.matmul %8, %7, %cst_7 {dimension_numbers = #tpu.dot_dimension_numbers<[1], [0], [0], [1], [0, 0, 1, 1], [], []>} : vector<8x8xbf16>, vector<8x512xbf16>, vector<8x512xf32> -> vector<8x512xf32>
    %c0_8 = arith.constant 0 : index
    %c0_9 = arith.constant 0 : index
    %10 = vector.load %arg5[%c0_8, %c0_9] : memref<8x1xf32, #tpu.memory_space<vmem>>, vector<8x1xf32>
    %11 = vector.broadcast %10 : vector<8x1xf32> to vector<8x512xf32>
    %12 = arith.addf %9, %11 : vector<8x512xf32>
    %13 = math.rsqrt %12 : vector<8x512xf32>
    %14 = arith.mulf %5, %13 : vector<8x512xf32>
    %15 = arith.truncf %14 : vector<8x512xf32> to vector<8x512xbf16>
    %c0_10 = arith.constant 0 : index
    %c0_11 = arith.constant 0 : index
    %16 = vector.load %arg6[%c0_10, %c0_11] : memref<8x512xbf16, #tpu.memory_space<vmem>>, vector<8x512xbf16>
    tpu.vector_store %arg6[%c0_10, %c0_11], %15 {strides = array<i32>} : memref<8x512xbf16, #tpu.memory_space<vmem>>, vector<8x512xbf16>,
    return
  }
  func.func @transform_0(%arg0: i32) -> (i32, i32) {
    %c0_i32 = arith.constant 0 : i32
    %c0_i32_0 = arith.constant 0 : i32
    %c0_i32_1 = arith.constant 0 : i32
    return %c0_i32, %c0_i32_0 : i32, i32
  }
  func.func @transform_1(%arg0: i32) -> (i32, i32) {
    %c0_i32 = arith.constant 0 : i32
    %c0_i32_0 = arith.constant 0 : i32
    return %c0_i32, %arg0 : i32, i32
  }
  func.func @transform_2(%arg0: i32) -> (i32, i32) {
    %c0_i32 = arith.constant 0 : i32
    %c0_i32_0 = arith.constant 0 : i32
    %c0_i32_1 = arith.constant 0 : i32
    return %c0_i32, %c0_i32_0 : i32, i32
  }
  func.func @transform_3(%arg0: i32) -> (i32, i32) {
    %c0_i32 = arith.constant 0 : i32
    %c0_i32_0 = arith.constant 0 : i32
    %c0_i32_1 = arith.constant 0 : i32
    return %c0_i32, %c0_i32_0 : i32, i32
  }
  func.func @transform_4(%arg0: i32) -> (i32, i32) {
    %c0_i32 = arith.constant 0 : i32
    %c0_i32_0 = arith.constant 0 : i32
    %c0_i32_1 = arith.constant 0 : i32
    return %c0_i32, %c0_i32_0 : i32, i32
  }
  func.func @transform_5(%arg0: i32) -> (i32, i32) {
    %c0_i32 = arith.constant 0 : i32
    %c0_i32_0 = arith.constant 0 : i32
    return %c0_i32, %arg0 : i32, i32
  }
}

module attributes {stable_mosaic.version = 11 : i64} {
  func.func @_matmul_gdn_kernel(%arg0: i32, %arg1: memref<8x200xbf16, #tpu.memory_space<vmem>>, %arg2: memref<200x256xbf16, #tpu.memory_space<vmem>>, %arg3: memref<8x1xf32, #tpu.memory_space<vmem>>, %arg4: memref<8x8xbf16, #tpu.memory_space<vmem>>, %arg5: memref<8x1xf32, #tpu.memory_space<vmem>>, %arg6: memref<8x256xbf16, #tpu.memory_space<vmem>>) attributes {dimension_semantics = [#tpu.dimension_semantics<parallel>], iteration_bounds = array<i64: 2>, scalar_prefetch = 0 : i64, scratch_operands = 0 : i64, tpu.core_type = #tpu.core_type<tc>, window_params = [{pipeline_mode = #tpu.pipeline_mode<synchronous>, transform_indices = @transform_0, window_bounds = array<i64: 8, 200>}, {transform_indices = @transform_1, window_bounds = array<i64: 200, 256>}, {pipeline_mode = #tpu.pipeline_mode<synchronous>, transform_indices = @transform_2, window_bounds = array<i64: 8, 1>}, {pipeline_mode = #tpu.pipeline_mode<synchronous>, transform_indices = @transform_3, window_bounds = array<i64: 8, 8>}, {pipeline_mode = #tpu.pipeline_mode<synchronous>, transform_indices = @transform_4, window_bounds = array<i64: 8, 1>}, {transform_indices = @transform_5, window_bounds = array<i64: 8, 256>}]} {
    %c0 = arith.constant 0 : index
    %c0_0 = arith.constant 0 : index
    %0 = vector.load %arg1[%c0, %c0_0] : memref<8x200xbf16, #tpu.memory_space<vmem>>, vector<8x200xbf16>
    %c0_1 = arith.constant 0 : index
    %c0_2 = arith.constant 0 : index
    %1 = vector.load %arg2[%c0_1, %c0_2] : memref<200x256xbf16, #tpu.memory_space<vmem>>, vector<200x256xbf16>
    %cst = arith.constant dense<0.000000e+00> : vector<8x256xf32>
    %2 = tpu.matmul %0, %1, %cst {dimension_numbers = #tpu.dot_dimension_numbers<[1], [0], [0], [1], [0, 0, 1, 1], [], []>} : vector<8x200xbf16>, vector<200x256xbf16>, vector<8x256xf32> -> vector<8x256xf32>
    %c0_3 = arith.constant 0 : index
    %c0_4 = arith.constant 0 : index
    %3 = vector.load %arg3[%c0_3, %c0_4] : memref<8x1xf32, #tpu.memory_space<vmem>>, vector<8x1xf32>
    %4 = vector.broadcast %3 : vector<8x1xf32> to vector<8x256xf32>
    %5 = arith.addf %2, %4 : vector<8x256xf32>
    %6 = arith.mulf %5, %5 : vector<8x256xf32>
    %7 = arith.truncf %6 : vector<8x256xf32> to vector<8x256xbf16>
    %c0_5 = arith.constant 0 : index
    %c0_6 = arith.constant 0 : index
    %8 = vector.load %arg4[%c0_5, %c0_6] : memref<8x8xbf16, #tpu.memory_space<vmem>>, vector<8x8xbf16>
    %cst_7 = arith.constant dense<0.000000e+00> : vector<8x256xf32>
    %9 = tpu.matmul %8, %7, %cst_7 {dimension_numbers = #tpu.dot_dimension_numbers<[1], [0], [0], [1], [0, 0, 1, 1], [], []>} : vector<8x8xbf16>, vector<8x256xbf16>, vector<8x256xf32> -> vector<8x256xf32>
    %c0_8 = arith.constant 0 : index
    %c0_9 = arith.constant 0 : index
    %10 = vector.load %arg5[%c0_8, %c0_9] : memref<8x1xf32, #tpu.memory_space<vmem>>, vector<8x1xf32>
    %11 = vector.broadcast %10 : vector<8x1xf32> to vector<8x256xf32>
    %12 = arith.addf %9, %11 : vector<8x256xf32>
    %13 = math.rsqrt %12 : vector<8x256xf32>
    %14 = arith.mulf %5, %13 : vector<8x256xf32>
    %15 = arith.truncf %14 : vector<8x256xf32> to vector<8x256xbf16>
    %c0_10 = arith.constant 0 : index
    %c0_11 = arith.constant 0 : index
    %16 = vector.load %arg6[%c0_10, %c0_11] : memref<8x256xbf16, #tpu.memory_space<vmem>>, vector<8x256xbf16>
    tpu.vector_store %arg6[%c0_10, %c0_11], %15 {strides = array<i32>} : memref<8x256xbf16, #tpu.memory_space<vmem>>, vector<8x256xbf16>,
    return
  }
  func.func @transform_0(%arg0: i32) -> (i32, i32) {
    %c0_i32 = arith.constant 0 : i32
    %c0_i32_0 = arith.constant 0 : i32
    %c0_i32_1 = arith.constant 0 : i32
    return %c0_i32, %c0_i32_0 : i32, i32
  }
  func.func @transform_1(%arg0: i32) -> (i32, i32) {
    %c0_i32 = arith.constant 0 : i32
    %c0_i32_0 = arith.constant 0 : i32
    return %c0_i32, %arg0 : i32, i32
  }
  func.func @transform_2(%arg0: i32) -> (i32, i32) {
    %c0_i32 = arith.constant 0 : i32
    %c0_i32_0 = arith.constant 0 : i32
    %c0_i32_1 = arith.constant 0 : i32
    return %c0_i32, %c0_i32_0 : i32, i32
  }
  func.func @transform_3(%arg0: i32) -> (i32, i32) {
    %c0_i32 = arith.constant 0 : i32
    %c0_i32_0 = arith.constant 0 : i32
    %c0_i32_1 = arith.constant 0 : i32
    return %c0_i32, %c0_i32_0 : i32, i32
  }
  func.func @transform_4(%arg0: i32) -> (i32, i32) {
    %c0_i32 = arith.constant 0 : i32
    %c0_i32_0 = arith.constant 0 : i32
    %c0_i32_1 = arith.constant 0 : i32
    return %c0_i32, %c0_i32_0 : i32, i32
  }
  func.func @transform_5(%arg0: i32) -> (i32, i32) {
    %c0_i32 = arith.constant 0 : i32
    %c0_i32_0 = arith.constant 0 : i32
    return %c0_i32, %arg0 : i32, i32
  }
}

module attributes {stable_mosaic.version = 11 : i64} {
  func.func @_matmul_gdn_kernel(%arg0: i32, %arg1: memref<8x200xbf16, #tpu.memory_space<vmem>>, %arg2: memref<200x128xbf16, #tpu.memory_space<vmem>>, %arg3: memref<8x1xf32, #tpu.memory_space<vmem>>, %arg4: memref<8x8xbf16, #tpu.memory_space<vmem>>, %arg5: memref<8x1xf32, #tpu.memory_space<vmem>>, %arg6: memref<8x128xbf16, #tpu.memory_space<vmem>>) attributes {dimension_semantics = [#tpu.dimension_semantics<parallel>], iteration_bounds = array<i64: 2>, scalar_prefetch = 0 : i64, scratch_operands = 0 : i64, tpu.core_type = #tpu.core_type<tc>, window_params = [{pipeline_mode = #tpu.pipeline_mode<synchronous>, transform_indices = @transform_0, window_bounds = array<i64: 8, 200>}, {transform_indices = @transform_1, window_bounds = array<i64: 200, 128>}, {pipeline_mode = #tpu.pipeline_mode<synchronous>, transform_indices = @transform_2, window_bounds = array<i64: 8, 1>}, {pipeline_mode = #tpu.pipeline_mode<synchronous>, transform_indices = @transform_3, window_bounds = array<i64: 8, 8>}, {pipeline_mode = #tpu.pipeline_mode<synchronous>, transform_indices = @transform_4, window_bounds = array<i64: 8, 1>}, {transform_indices = @transform_5, window_bounds = array<i64: 8, 128>}]} {
    %c0 = arith.constant 0 : index
    %c0_0 = arith.constant 0 : index
    %0 = vector.load %arg1[%c0, %c0_0] : memref<8x200xbf16, #tpu.memory_space<vmem>>, vector<8x200xbf16>
    %c0_1 = arith.constant 0 : index
    %c0_2 = arith.constant 0 : index
    %1 = vector.load %arg2[%c0_1, %c0_2] : memref<200x128xbf16, #tpu.memory_space<vmem>>, vector<200x128xbf16>
    %cst = arith.constant dense<0.000000e+00> : vector<8x128xf32>
    %2 = tpu.matmul %0, %1, %cst {dimension_numbers = #tpu.dot_dimension_numbers<[1], [0], [0], [1], [0, 0, 1, 1], [], []>} : vector<8x200xbf16>, vector<200x128xbf16>, vector<8x128xf32> -> vector<8x128xf32>
    %c0_3 = arith.constant 0 : index
    %c0_4 = arith.constant 0 : index
    %3 = vector.load %arg3[%c0_3, %c0_4] : memref<8x1xf32, #tpu.memory_space<vmem>>, vector<8x1xf32>
    %4 = vector.broadcast %3 : vector<8x1xf32> to vector<8x128xf32>
    %5 = arith.addf %2, %4 : vector<8x128xf32>
    %6 = arith.mulf %5, %5 : vector<8x128xf32>
    %7 = arith.truncf %6 : vector<8x128xf32> to vector<8x128xbf16>
    %c0_5 = arith.constant 0 : index
    %c0_6 = arith.constant 0 : index
    %8 = vector.load %arg4[%c0_5, %c0_6] : memref<8x8xbf16, #tpu.memory_space<vmem>>, vector<8x8xbf16>
    %cst_7 = arith.constant dense<0.000000e+00> : vector<8x128xf32>
    %9 = tpu.matmul %8, %7, %cst_7 {dimension_numbers = #tpu.dot_dimension_numbers<[1], [0], [0], [1], [0, 0, 1, 1], [], []>} : vector<8x8xbf16>, vector<8x128xbf16>, vector<8x128xf32> -> vector<8x128xf32>
    %c0_8 = arith.constant 0 : index
    %c0_9 = arith.constant 0 : index
    %10 = vector.load %arg5[%c0_8, %c0_9] : memref<8x1xf32, #tpu.memory_space<vmem>>, vector<8x1xf32>
    %11 = vector.broadcast %10 : vector<8x1xf32> to vector<8x128xf32>
    %12 = arith.addf %9, %11 : vector<8x128xf32>
    %13 = math.rsqrt %12 : vector<8x128xf32>
    %14 = arith.mulf %5, %13 : vector<8x128xf32>
    %15 = arith.truncf %14 : vector<8x128xf32> to vector<8x128xbf16>
    %c0_10 = arith.constant 0 : index
    %c0_11 = arith.constant 0 : index
    %16 = vector.load %arg6[%c0_10, %c0_11] : memref<8x128xbf16, #tpu.memory_space<vmem>>, vector<8x128xbf16>
    tpu.vector_store %arg6[%c0_10, %c0_11], %15 {strides = array<i32>} : memref<8x128xbf16, #tpu.memory_space<vmem>>, vector<8x128xbf16>,
    return
  }
  func.func @transform_0(%arg0: i32) -> (i32, i32) {
    %c0_i32 = arith.constant 0 : i32
    %c0_i32_0 = arith.constant 0 : i32
    %c0_i32_1 = arith.constant 0 : i32
    return %c0_i32, %c0_i32_0 : i32, i32
  }
  func.func @transform_1(%arg0: i32) -> (i32, i32) {
    %c0_i32 = arith.constant 0 : i32
    %c0_i32_0 = arith.constant 0 : i32
    return %c0_i32, %arg0 : i32, i32
  }
  func.func @transform_2(%arg0: i32) -> (i32, i32) {
    %c0_i32 = arith.constant 0 : i32
    %c0_i32_0 = arith.constant 0 : i32
    %c0_i32_1 = arith.constant 0 : i32
    return %c0_i32, %c0_i32_0 : i32, i32
  }
  func.func @transform_3(%arg0: i32) -> (i32, i32) {
    %c0_i32 = arith.constant 0 : i32
    %c0_i32_0 = arith.constant 0 : i32
    %c0_i32_1 = arith.constant 0 : i32
    return %c0_i32, %c0_i32_0 : i32, i32
  }
  func.func @transform_4(%arg0: i32) -> (i32, i32) {
    %c0_i32 = arith.constant 0 : i32
    %c0_i32_0 = arith.constant 0 : i32
    %c0_i32_1 = arith.constant 0 : i32
    return %c0_i32, %c0_i32_0 : i32, i32
  }
  func.func @transform_5(%arg0: i32) -> (i32, i32) {
    %c0_i32 = arith.constant 0 : i32
    %c0_i32_0 = arith.constant 0 : i32
    return %c0_i32, %arg0 : i32, i32
  }
}

module attributes {stable_mosaic.version = 11 : i64} {
  func.func @_matmul_bias_kernel(%arg0: i32, %arg1: memref<12x200xbf16, #tpu.memory_space<vmem>>, %arg2: memref<200x128xbf16, #tpu.memory_space<vmem>>, %arg3: memref<12x1xf32, #tpu.memory_space<vmem>>, %arg4: memref<12x128xf32, #tpu.memory_space<vmem>>) attributes {dimension_semantics = [#tpu.dimension_semantics<parallel>], iteration_bounds = array<i64: 2>, scalar_prefetch = 0 : i64, scratch_operands = 0 : i64, tpu.core_type = #tpu.core_type<tc>, window_params = [{pipeline_mode = #tpu.pipeline_mode<synchronous>, transform_indices = @transform_0, window_bounds = array<i64: 12, 200>}, {transform_indices = @transform_1, window_bounds = array<i64: 200, 128>}, {pipeline_mode = #tpu.pipeline_mode<synchronous>, transform_indices = @transform_2, window_bounds = array<i64: 12, 1>}, {transform_indices = @transform_3, window_bounds = array<i64: 12, 128>}]} {
    %c0 = arith.constant 0 : index
    %c0_0 = arith.constant 0 : index
    %0 = vector.load %arg1[%c0, %c0_0] : memref<12x200xbf16, #tpu.memory_space<vmem>>, vector<12x200xbf16>
    %c0_1 = arith.constant 0 : index
    %c0_2 = arith.constant 0 : index
    %1 = vector.load %arg2[%c0_1, %c0_2] : memref<200x128xbf16, #tpu.memory_space<vmem>>, vector<200x128xbf16>
    %cst = arith.constant dense<0.000000e+00> : vector<12x128xf32>
    %2 = tpu.matmul %0, %1, %cst {dimension_numbers = #tpu.dot_dimension_numbers<[1], [0], [0], [1], [0, 0, 1, 1], [], []>} : vector<12x200xbf16>, vector<200x128xbf16>, vector<12x128xf32> -> vector<12x128xf32>
    %c0_3 = arith.constant 0 : index
    %c0_4 = arith.constant 0 : index
    %3 = vector.load %arg3[%c0_3, %c0_4] : memref<12x1xf32, #tpu.memory_space<vmem>>, vector<12x1xf32>
    %4 = vector.broadcast %3 : vector<12x1xf32> to vector<12x128xf32>
    %5 = arith.addf %2, %4 : vector<12x128xf32>
    %c0_5 = arith.constant 0 : index
    %c0_6 = arith.constant 0 : index
    %6 = vector.load %arg4[%c0_5, %c0_6] : memref<12x128xf32, #tpu.memory_space<vmem>>, vector<12x128xf32>
    tpu.vector_store %arg4[%c0_5, %c0_6], %5 {strides = array<i32>} : memref<12x128xf32, #tpu.memory_space<vmem>>, vector<12x128xf32>,
    return
  }
  func.func @transform_0(%arg0: i32) -> (i32, i32) {
    %c0_i32 = arith.constant 0 : i32
    %c0_i32_0 = arith.constant 0 : i32
    %c0_i32_1 = arith.constant 0 : i32
    return %c0_i32, %c0_i32_0 : i32, i32
  }
  func.func @transform_1(%arg0: i32) -> (i32, i32) {
    %c0_i32 = arith.constant 0 : i32
    %c0_i32_0 = arith.constant 0 : i32
    return %c0_i32, %arg0 : i32, i32
  }
  func.func @transform_2(%arg0: i32) -> (i32, i32) {
    %c0_i32 = arith.constant 0 : i32
    %c0_i32_0 = arith.constant 0 : i32
    %c0_i32_1 = arith.constant 0 : i32
    return %c0_i32, %c0_i32_0 : i32, i32
  }
  func.func @transform_3(%arg0: i32) -> (i32, i32) {
    %c0_i32 = arith.constant 0 : i32
    %c0_i32_0 = arith.constant 0 : i32
    return %c0_i32, %arg0 : i32, i32
  }
}

module attributes {stable_mosaic.version = 11 : i64} {
  func.func @_matmul_bias_kernel(%arg0: i32, %arg1: memref<8x108xbf16, #tpu.memory_space<vmem>>, %arg2: memref<108x128xbf16, #tpu.memory_space<vmem>>, %arg3: memref<8x1xf32, #tpu.memory_space<vmem>>, %arg4: memref<8x128xbf16, #tpu.memory_space<vmem>>) attributes {dimension_semantics = [#tpu.dimension_semantics<parallel>], iteration_bounds = array<i64: 2>, scalar_prefetch = 0 : i64, scratch_operands = 0 : i64, tpu.core_type = #tpu.core_type<tc>, window_params = [{pipeline_mode = #tpu.pipeline_mode<synchronous>, transform_indices = @transform_0, window_bounds = array<i64: 8, 108>}, {transform_indices = @transform_1, window_bounds = array<i64: 108, 128>}, {pipeline_mode = #tpu.pipeline_mode<synchronous>, transform_indices = @transform_2, window_bounds = array<i64: 8, 1>}, {transform_indices = @transform_3, window_bounds = array<i64: 8, 128>}]} {
    %c0 = arith.constant 0 : index
    %c0_0 = arith.constant 0 : index
    %0 = vector.load %arg1[%c0, %c0_0] : memref<8x108xbf16, #tpu.memory_space<vmem>>, vector<8x108xbf16>
    %c0_1 = arith.constant 0 : index
    %c0_2 = arith.constant 0 : index
    %1 = vector.load %arg2[%c0_1, %c0_2] : memref<108x128xbf16, #tpu.memory_space<vmem>>, vector<108x128xbf16>
    %cst = arith.constant dense<0.000000e+00> : vector<8x128xf32>
    %2 = tpu.matmul %0, %1, %cst {dimension_numbers = #tpu.dot_dimension_numbers<[1], [0], [0], [1], [0, 0, 1, 1], [], []>} : vector<8x108xbf16>, vector<108x128xbf16>, vector<8x128xf32> -> vector<8x128xf32>
    %c0_3 = arith.constant 0 : index
    %c0_4 = arith.constant 0 : index
    %3 = vector.load %arg3[%c0_3, %c0_4] : memref<8x1xf32, #tpu.memory_space<vmem>>, vector<8x1xf32>
    %4 = vector.broadcast %3 : vector<8x1xf32> to vector<8x128xf32>
    %5 = arith.addf %2, %4 : vector<8x128xf32>
    %cst_5 = arith.constant 0.000000e+00 : f32
    %6 = vector.broadcast %cst_5 : f32 to vector<8x128xf32>
    %7 = arith.maximumf %5, %6 : vector<8x128xf32>
    %8 = arith.truncf %7 : vector<8x128xf32> to vector<8x128xbf16>
    %c0_6 = arith.constant 0 : index
    %c0_7 = arith.constant 0 : index
    %9 = vector.load %arg4[%c0_6, %c0_7] : memref<8x128xbf16, #tpu.memory_space<vmem>>, vector<8x128xbf16>
    tpu.vector_store %arg4[%c0_6, %c0_7], %8 {strides = array<i32>} : memref<8x128xbf16, #tpu.memory_space<vmem>>, vector<8x128xbf16>,
    return
  }
  func.func @transform_0(%arg0: i32) -> (i32, i32) {
    %c0_i32 = arith.constant 0 : i32
    %c0_i32_0 = arith.constant 0 : i32
    %c0_i32_1 = arith.constant 0 : i32
    return %c0_i32, %c0_i32_0 : i32, i32
  }
  func.func @transform_1(%arg0: i32) -> (i32, i32) {
    %c0_i32 = arith.constant 0 : i32
    %c0_i32_0 = arith.constant 0 : i32
    return %c0_i32, %arg0 : i32, i32
  }
  func.func @transform_2(%arg0: i32) -> (i32, i32) {
    %c0_i32 = arith.constant 0 : i32
    %c0_i32_0 = arith.constant 0 : i32
    %c0_i32_1 = arith.constant 0 : i32
    return %c0_i32, %c0_i32_0 : i32, i32
  }
  func.func @transform_3(%arg0: i32) -> (i32, i32) {
    %c0_i32 = arith.constant 0 : i32
    %c0_i32_0 = arith.constant 0 : i32
    return %c0_i32, %arg0 : i32, i32
  }
}

module attributes {stable_mosaic.version = 11 : i64} {
  func.func @_matmul_bias_kernel(%arg0: i32, %arg1: memref<8x200xbf16, #tpu.memory_space<vmem>>, %arg2: memref<200x128xbf16, #tpu.memory_space<vmem>>, %arg3: memref<8x1xf32, #tpu.memory_space<vmem>>, %arg4: memref<8x128xbf16, #tpu.memory_space<vmem>>) attributes {dimension_semantics = [#tpu.dimension_semantics<parallel>], iteration_bounds = array<i64: 2>, scalar_prefetch = 0 : i64, scratch_operands = 0 : i64, tpu.core_type = #tpu.core_type<tc>, window_params = [{pipeline_mode = #tpu.pipeline_mode<synchronous>, transform_indices = @transform_0, window_bounds = array<i64: 8, 200>}, {transform_indices = @transform_1, window_bounds = array<i64: 200, 128>}, {pipeline_mode = #tpu.pipeline_mode<synchronous>, transform_indices = @transform_2, window_bounds = array<i64: 8, 1>}, {transform_indices = @transform_3, window_bounds = array<i64: 8, 128>}]} {
    %c0 = arith.constant 0 : index
    %c0_0 = arith.constant 0 : index
    %0 = vector.load %arg1[%c0, %c0_0] : memref<8x200xbf16, #tpu.memory_space<vmem>>, vector<8x200xbf16>
    %c0_1 = arith.constant 0 : index
    %c0_2 = arith.constant 0 : index
    %1 = vector.load %arg2[%c0_1, %c0_2] : memref<200x128xbf16, #tpu.memory_space<vmem>>, vector<200x128xbf16>
    %cst = arith.constant dense<0.000000e+00> : vector<8x128xf32>
    %2 = tpu.matmul %0, %1, %cst {dimension_numbers = #tpu.dot_dimension_numbers<[1], [0], [0], [1], [0, 0, 1, 1], [], []>} : vector<8x200xbf16>, vector<200x128xbf16>, vector<8x128xf32> -> vector<8x128xf32>
    %c0_3 = arith.constant 0 : index
    %c0_4 = arith.constant 0 : index
    %3 = vector.load %arg3[%c0_3, %c0_4] : memref<8x1xf32, #tpu.memory_space<vmem>>, vector<8x1xf32>
    %4 = vector.broadcast %3 : vector<8x1xf32> to vector<8x128xf32>
    %5 = arith.addf %2, %4 : vector<8x128xf32>
    %cst_5 = arith.constant 0.000000e+00 : f32
    %6 = vector.broadcast %cst_5 : f32 to vector<8x128xf32>
    %7 = arith.maximumf %5, %6 : vector<8x128xf32>
    %8 = arith.truncf %7 : vector<8x128xf32> to vector<8x128xbf16>
    %c0_6 = arith.constant 0 : index
    %c0_7 = arith.constant 0 : index
    %9 = vector.load %arg4[%c0_6, %c0_7] : memref<8x128xbf16, #tpu.memory_space<vmem>>, vector<8x128xbf16>
    tpu.vector_store %arg4[%c0_6, %c0_7], %8 {strides = array<i32>} : memref<8x128xbf16, #tpu.memory_space<vmem>>, vector<8x128xbf16>,
    return
  }
  func.func @transform_0(%arg0: i32) -> (i32, i32) {
    %c0_i32 = arith.constant 0 : i32
    %c0_i32_0 = arith.constant 0 : i32
    %c0_i32_1 = arith.constant 0 : i32
    return %c0_i32, %c0_i32_0 : i32, i32
  }
  func.func @transform_1(%arg0: i32) -> (i32, i32) {
    %c0_i32 = arith.constant 0 : i32
    %c0_i32_0 = arith.constant 0 : i32
    return %c0_i32, %arg0 : i32, i32
  }
  func.func @transform_2(%arg0: i32) -> (i32, i32) {
    %c0_i32 = arith.constant 0 : i32
    %c0_i32_0 = arith.constant 0 : i32
    %c0_i32_1 = arith.constant 0 : i32
    return %c0_i32, %c0_i32_0 : i32, i32
  }
  func.func @transform_3(%arg0: i32) -> (i32, i32) {
    %c0_i32 = arith.constant 0 : i32
    %c0_i32_0 = arith.constant 0 : i32
    return %c0_i32, %arg0 : i32, i32
  }
}

module attributes {stable_mosaic.version = 11 : i64} {
  func.func @_matmul_bias_kernel(%arg0: i32, %arg1: memref<8x200xbf16, #tpu.memory_space<vmem>>, %arg2: memref<200x128xbf16, #tpu.memory_space<vmem>>, %arg3: memref<8x1xf32, #tpu.memory_space<vmem>>, %arg4: memref<8x128xbf16, #tpu.memory_space<vmem>>) attributes {dimension_semantics = [#tpu.dimension_semantics<parallel>], iteration_bounds = array<i64: 2>, scalar_prefetch = 0 : i64, scratch_operands = 0 : i64, tpu.core_type = #tpu.core_type<tc>, window_params = [{pipeline_mode = #tpu.pipeline_mode<synchronous>, transform_indices = @transform_0, window_bounds = array<i64: 8, 200>}, {transform_indices = @transform_1, window_bounds = array<i64: 200, 128>}, {pipeline_mode = #tpu.pipeline_mode<synchronous>, transform_indices = @transform_2, window_bounds = array<i64: 8, 1>}, {transform_indices = @transform_3, window_bounds = array<i64: 8, 128>}]} {
    %c0 = arith.constant 0 : index
    %c0_0 = arith.constant 0 : index
    %0 = vector.load %arg1[%c0, %c0_0] : memref<8x200xbf16, #tpu.memory_space<vmem>>, vector<8x200xbf16>
    %c0_1 = arith.constant 0 : index
    %c0_2 = arith.constant 0 : index
    %1 = vector.load %arg2[%c0_1, %c0_2] : memref<200x128xbf16, #tpu.memory_space<vmem>>, vector<200x128xbf16>
    %cst = arith.constant dense<0.000000e+00> : vector<8x128xf32>
    %2 = tpu.matmul %0, %1, %cst {dimension_numbers = #tpu.dot_dimension_numbers<[1], [0], [0], [1], [0, 0, 1, 1], [], []>} : vector<8x200xbf16>, vector<200x128xbf16>, vector<8x128xf32> -> vector<8x128xf32>
    %c0_3 = arith.constant 0 : index
    %c0_4 = arith.constant 0 : index
    %3 = vector.load %arg3[%c0_3, %c0_4] : memref<8x1xf32, #tpu.memory_space<vmem>>, vector<8x1xf32>
    %4 = vector.broadcast %3 : vector<8x1xf32> to vector<8x128xf32>
    %5 = arith.addf %2, %4 : vector<8x128xf32>
    %6 = arith.truncf %5 : vector<8x128xf32> to vector<8x128xbf16>
    %c0_5 = arith.constant 0 : index
    %c0_6 = arith.constant 0 : index
    %7 = vector.load %arg4[%c0_5, %c0_6] : memref<8x128xbf16, #tpu.memory_space<vmem>>, vector<8x128xbf16>
    tpu.vector_store %arg4[%c0_5, %c0_6], %6 {strides = array<i32>} : memref<8x128xbf16, #tpu.memory_space<vmem>>, vector<8x128xbf16>,
    return
  }
  func.func @transform_0(%arg0: i32) -> (i32, i32) {
    %c0_i32 = arith.constant 0 : i32
    %c0_i32_0 = arith.constant 0 : i32
    %c0_i32_1 = arith.constant 0 : i32
    return %c0_i32, %c0_i32_0 : i32, i32
  }
  func.func @transform_1(%arg0: i32) -> (i32, i32) {
    %c0_i32 = arith.constant 0 : i32
    %c0_i32_0 = arith.constant 0 : i32
    return %c0_i32, %arg0 : i32, i32
  }
  func.func @transform_2(%arg0: i32) -> (i32, i32) {
    %c0_i32 = arith.constant 0 : i32
    %c0_i32_0 = arith.constant 0 : i32
    %c0_i32_1 = arith.constant 0 : i32
    return %c0_i32, %c0_i32_0 : i32, i32
  }
  func.func @transform_3(%arg0: i32) -> (i32, i32) {
    %c0_i32 = arith.constant 0 : i32
    %c0_i32_0 = arith.constant 0 : i32
    return %c0_i32, %arg0 : i32, i32
  }
}

module attributes {stable_mosaic.version = 11 : i64} {
  func.func @_matmul_bias_kernel(%arg0: i32, %arg1: memref<8x72xbf16, #tpu.memory_space<vmem>>, %arg2: memref<72x128xbf16, #tpu.memory_space<vmem>>, %arg3: memref<8x1xf32, #tpu.memory_space<vmem>>, %arg4: memref<8x128xbf16, #tpu.memory_space<vmem>>) attributes {dimension_semantics = [#tpu.dimension_semantics<parallel>], iteration_bounds = array<i64: 2>, scalar_prefetch = 0 : i64, scratch_operands = 0 : i64, tpu.core_type = #tpu.core_type<tc>, window_params = [{pipeline_mode = #tpu.pipeline_mode<synchronous>, transform_indices = @transform_0, window_bounds = array<i64: 8, 72>}, {transform_indices = @transform_1, window_bounds = array<i64: 72, 128>}, {pipeline_mode = #tpu.pipeline_mode<synchronous>, transform_indices = @transform_2, window_bounds = array<i64: 8, 1>}, {transform_indices = @transform_3, window_bounds = array<i64: 8, 128>}]} {
    %c0 = arith.constant 0 : index
    %c0_0 = arith.constant 0 : index
    %0 = vector.load %arg1[%c0, %c0_0] : memref<8x72xbf16, #tpu.memory_space<vmem>>, vector<8x72xbf16>
    %c0_1 = arith.constant 0 : index
    %c0_2 = arith.constant 0 : index
    %1 = vector.load %arg2[%c0_1, %c0_2] : memref<72x128xbf16, #tpu.memory_space<vmem>>, vector<72x128xbf16>
    %cst = arith.constant dense<0.000000e+00> : vector<8x128xf32>
    %2 = tpu.matmul %0, %1, %cst {dimension_numbers = #tpu.dot_dimension_numbers<[1], [0], [0], [1], [0, 0, 1, 1], [], []>} : vector<8x72xbf16>, vector<72x128xbf16>, vector<8x128xf32> -> vector<8x128xf32>
    %c0_3 = arith.constant 0 : index
    %c0_4 = arith.constant 0 : index
    %3 = vector.load %arg3[%c0_3, %c0_4] : memref<8x1xf32, #tpu.memory_space<vmem>>, vector<8x1xf32>
    %4 = vector.broadcast %3 : vector<8x1xf32> to vector<8x128xf32>
    %5 = arith.addf %2, %4 : vector<8x128xf32>
    %cst_5 = arith.constant 0.000000e+00 : f32
    %6 = vector.broadcast %cst_5 : f32 to vector<8x128xf32>
    %7 = arith.maximumf %5, %6 : vector<8x128xf32>
    %8 = arith.truncf %7 : vector<8x128xf32> to vector<8x128xbf16>
    %c0_6 = arith.constant 0 : index
    %c0_7 = arith.constant 0 : index
    %9 = vector.load %arg4[%c0_6, %c0_7] : memref<8x128xbf16, #tpu.memory_space<vmem>>, vector<8x128xbf16>
    tpu.vector_store %arg4[%c0_6, %c0_7], %8 {strides = array<i32>} : memref<8x128xbf16, #tpu.memory_space<vmem>>, vector<8x128xbf16>,
    return
  }
  func.func @transform_0(%arg0: i32) -> (i32, i32) {
    %c0_i32 = arith.constant 0 : i32
    %c0_i32_0 = arith.constant 0 : i32
    %c0_i32_1 = arith.constant 0 : i32
    return %c0_i32, %c0_i32_0 : i32, i32
  }
  func.func @transform_1(%arg0: i32) -> (i32, i32) {
    %c0_i32 = arith.constant 0 : i32
    %c0_i32_0 = arith.constant 0 : i32
    return %c0_i32, %arg0 : i32, i32
  }
  func.func @transform_2(%arg0: i32) -> (i32, i32) {
    %c0_i32 = arith.constant 0 : i32
    %c0_i32_0 = arith.constant 0 : i32
    %c0_i32_1 = arith.constant 0 : i32
    return %c0_i32, %c0_i32_0 : i32, i32
  }
  func.func @transform_3(%arg0: i32) -> (i32, i32) {
    %c0_i32 = arith.constant 0 : i32
    %c0_i32_0 = arith.constant 0 : i32
    return %c0_i32, %arg0 : i32, i32
  }
}

module attributes {stable_mosaic.version = 11 : i64} {
  func.func @_matmul_bias_kernel(%arg0: i32, %arg1: memref<8x48xbf16, #tpu.memory_space<vmem>>, %arg2: memref<48x128xbf16, #tpu.memory_space<vmem>>, %arg3: memref<8x1xf32, #tpu.memory_space<vmem>>, %arg4: memref<8x128xbf16, #tpu.memory_space<vmem>>) attributes {dimension_semantics = [#tpu.dimension_semantics<parallel>], iteration_bounds = array<i64: 2>, scalar_prefetch = 0 : i64, scratch_operands = 0 : i64, tpu.core_type = #tpu.core_type<tc>, window_params = [{pipeline_mode = #tpu.pipeline_mode<synchronous>, transform_indices = @transform_0, window_bounds = array<i64: 8, 48>}, {transform_indices = @transform_1, window_bounds = array<i64: 48, 128>}, {pipeline_mode = #tpu.pipeline_mode<synchronous>, transform_indices = @transform_2, window_bounds = array<i64: 8, 1>}, {transform_indices = @transform_3, window_bounds = array<i64: 8, 128>}]} {
    %c0 = arith.constant 0 : index
    %c0_0 = arith.constant 0 : index
    %0 = vector.load %arg1[%c0, %c0_0] : memref<8x48xbf16, #tpu.memory_space<vmem>>, vector<8x48xbf16>
    %c0_1 = arith.constant 0 : index
    %c0_2 = arith.constant 0 : index
    %1 = vector.load %arg2[%c0_1, %c0_2] : memref<48x128xbf16, #tpu.memory_space<vmem>>, vector<48x128xbf16>
    %cst = arith.constant dense<0.000000e+00> : vector<8x128xf32>
    %2 = tpu.matmul %0, %1, %cst {dimension_numbers = #tpu.dot_dimension_numbers<[1], [0], [0], [1], [0, 0, 1, 1], [], []>} : vector<8x48xbf16>, vector<48x128xbf16>, vector<8x128xf32> -> vector<8x128xf32>
    %c0_3 = arith.constant 0 : index
    %c0_4 = arith.constant 0 : index
    %3 = vector.load %arg3[%c0_3, %c0_4] : memref<8x1xf32, #tpu.memory_space<vmem>>, vector<8x1xf32>
    %4 = vector.broadcast %3 : vector<8x1xf32> to vector<8x128xf32>
    %5 = arith.addf %2, %4 : vector<8x128xf32>
    %cst_5 = arith.constant 0.000000e+00 : f32
    %6 = vector.broadcast %cst_5 : f32 to vector<8x128xf32>
    %7 = arith.maximumf %5, %6 : vector<8x128xf32>
    %8 = arith.truncf %7 : vector<8x128xf32> to vector<8x128xbf16>
    %c0_6 = arith.constant 0 : index
    %c0_7 = arith.constant 0 : index
    %9 = vector.load %arg4[%c0_6, %c0_7] : memref<8x128xbf16, #tpu.memory_space<vmem>>, vector<8x128xbf16>
    tpu.vector_store %arg4[%c0_6, %c0_7], %8 {strides = array<i32>} : memref<8x128xbf16, #tpu.memory_space<vmem>>, vector<8x128xbf16>,
    return
  }
  func.func @transform_0(%arg0: i32) -> (i32, i32) {
    %c0_i32 = arith.constant 0 : i32
    %c0_i32_0 = arith.constant 0 : i32
    %c0_i32_1 = arith.constant 0 : i32
    return %c0_i32, %c0_i32_0 : i32, i32
  }
  func.func @transform_1(%arg0: i32) -> (i32, i32) {
    %c0_i32 = arith.constant 0 : i32
    %c0_i32_0 = arith.constant 0 : i32
    return %c0_i32, %arg0 : i32, i32
  }
  func.func @transform_2(%arg0: i32) -> (i32, i32) {
    %c0_i32 = arith.constant 0 : i32
    %c0_i32_0 = arith.constant 0 : i32
    %c0_i32_1 = arith.constant 0 : i32
    return %c0_i32, %c0_i32_0 : i32, i32
  }
  func.func @transform_3(%arg0: i32) -> (i32, i32) {
    %c0_i32 = arith.constant 0 : i32
    %c0_i32_0 = arith.constant 0 : i32
    return %c0_i32, %arg0 : i32, i32
  }
}

module attributes {stable_mosaic.version = 11 : i64} {
  func.func @_matmul_bias_kernel(%arg0: i32, %arg1: memref<8x32xbf16, #tpu.memory_space<vmem>>, %arg2: memref<32x128xbf16, #tpu.memory_space<vmem>>, %arg3: memref<8x1xf32, #tpu.memory_space<vmem>>, %arg4: memref<8x128xbf16, #tpu.memory_space<vmem>>) attributes {dimension_semantics = [#tpu.dimension_semantics<parallel>], iteration_bounds = array<i64: 2>, scalar_prefetch = 0 : i64, scratch_operands = 0 : i64, tpu.core_type = #tpu.core_type<tc>, window_params = [{pipeline_mode = #tpu.pipeline_mode<synchronous>, transform_indices = @transform_0, window_bounds = array<i64: 8, 32>}, {transform_indices = @transform_1, window_bounds = array<i64: 32, 128>}, {pipeline_mode = #tpu.pipeline_mode<synchronous>, transform_indices = @transform_2, window_bounds = array<i64: 8, 1>}, {transform_indices = @transform_3, window_bounds = array<i64: 8, 128>}]} {
    %c0 = arith.constant 0 : index
    %c0_0 = arith.constant 0 : index
    %0 = vector.load %arg1[%c0, %c0_0] : memref<8x32xbf16, #tpu.memory_space<vmem>>, vector<8x32xbf16>
    %c0_1 = arith.constant 0 : index
    %c0_2 = arith.constant 0 : index
    %1 = vector.load %arg2[%c0_1, %c0_2] : memref<32x128xbf16, #tpu.memory_space<vmem>>, vector<32x128xbf16>
    %cst = arith.constant dense<0.000000e+00> : vector<8x128xf32>
    %2 = tpu.matmul %0, %1, %cst {dimension_numbers = #tpu.dot_dimension_numbers<[1], [0], [0], [1], [0, 0, 1, 1], [], []>} : vector<8x32xbf16>, vector<32x128xbf16>, vector<8x128xf32> -> vector<8x128xf32>
    %c0_3 = arith.constant 0 : index
    %c0_4 = arith.constant 0 : index
    %3 = vector.load %arg3[%c0_3, %c0_4] : memref<8x1xf32, #tpu.memory_space<vmem>>, vector<8x1xf32>
    %4 = vector.broadcast %3 : vector<8x1xf32> to vector<8x128xf32>
    %5 = arith.addf %2, %4 : vector<8x128xf32>
    %cst_5 = arith.constant 0.000000e+00 : f32
    %6 = vector.broadcast %cst_5 : f32 to vector<8x128xf32>
    %7 = arith.maximumf %5, %6 : vector<8x128xf32>
    %8 = arith.truncf %7 : vector<8x128xf32> to vector<8x128xbf16>
    %c0_6 = arith.constant 0 : index
    %c0_7 = arith.constant 0 : index
    %9 = vector.load %arg4[%c0_6, %c0_7] : memref<8x128xbf16, #tpu.memory_space<vmem>>, vector<8x128xbf16>
    tpu.vector_store %arg4[%c0_6, %c0_7], %8 {strides = array<i32>} : memref<8x128xbf16, #tpu.memory_space<vmem>>, vector<8x128xbf16>,
    return
  }
  func.func @transform_0(%arg0: i32) -> (i32, i32) {
    %c0_i32 = arith.constant 0 : i32
    %c0_i32_0 = arith.constant 0 : i32
    %c0_i32_1 = arith.constant 0 : i32
    return %c0_i32, %c0_i32_0 : i32, i32
  }
  func.func @transform_1(%arg0: i32) -> (i32, i32) {
    %c0_i32 = arith.constant 0 : i32
    %c0_i32_0 = arith.constant 0 : i32
    return %c0_i32, %arg0 : i32, i32
  }
  func.func @transform_2(%arg0: i32) -> (i32, i32) {
    %c0_i32 = arith.constant 0 : i32
    %c0_i32_0 = arith.constant 0 : i32
    %c0_i32_1 = arith.constant 0 : i32
    return %c0_i32, %c0_i32_0 : i32, i32
  }
  func.func @transform_3(%arg0: i32) -> (i32, i32) {
    %c0_i32 = arith.constant 0 : i32
    %c0_i32_0 = arith.constant 0 : i32
    return %c0_i32, %arg0 : i32, i32
  }
}

module attributes {stable_mosaic.version = 11 : i64} {
  func.func @_gaussian_kernel(%arg0: i32, %arg1: memref<8x512xf32, #tpu.memory_space<vmem>>, %arg2: memref<8x512xf32, #tpu.memory_space<vmem>>, %arg3: memref<8x512xbf16, #tpu.memory_space<vmem>>, %arg4: memref<8x512xf32, #tpu.memory_space<vmem>>) attributes {dimension_semantics = [#tpu.dimension_semantics<parallel>], iteration_bounds = array<i64: 2>, scalar_prefetch = 0 : i64, scratch_operands = 0 : i64, tpu.core_type = #tpu.core_type<tc>, window_params = [{transform_indices = @transform_0, window_bounds = array<i64: 8, 512>}, {transform_indices = @transform_1, window_bounds = array<i64: 8, 512>}, {transform_indices = @transform_2, window_bounds = array<i64: 8, 512>}, {transform_indices = @transform_3, window_bounds = array<i64: 8, 512>}]} {
    %c0 = arith.constant 0 : index
    %c0_0 = arith.constant 0 : index
    %0 = vector.load %arg1[%c0, %c0_0] : memref<8x512xf32, #tpu.memory_space<vmem>>, vector<8x512xf32>
    %1 = math.roundeven %0 : vector<8x512xf32>
    %c0_1 = arith.constant 0 : index
    %c0_2 = arith.constant 0 : index
    %2 = vector.load %arg2[%c0_1, %c0_2] : memref<8x512xf32, #tpu.memory_space<vmem>>, vector<8x512xf32>
    %cst = arith.constant 1.100000e-01 : f32
    %3 = vector.broadcast %cst : f32 to vector<8x512xf32>
    %4 = arith.maximumf %2, %3 : vector<8x512xf32>
    %cst_3 = arith.constant 1.000000e+00 : f32
    %5 = vector.broadcast %cst_3 : f32 to vector<8x512xf32>
    %6 = arith.divf %5, %4 : vector<8x512xf32>
    %7 = math.absf %1 : vector<8x512xf32>
    %cst_4 = arith.constant 5.000000e-01 : f32
    %8 = vector.broadcast %cst_4 : f32 to vector<8x512xf32>
    %9 = arith.subf %8, %7 : vector<8x512xf32>
    %10 = arith.mulf %9, %6 : vector<8x512xf32>
    %cst_5 = arith.constant -0.707106769 : f32
    %11 = vector.broadcast %cst_5 : f32 to vector<8x512xf32>
    %12 = arith.mulf %11, %10 : vector<8x512xf32>
    %13 = math.absf %12 : vector<8x512xf32>
    %cst_6 = arith.constant 0.327591091 : f32
    %14 = vector.broadcast %cst_6 : f32 to vector<8x512xf32>
    %15 = arith.mulf %14, %13 : vector<8x512xf32>
    %cst_7 = arith.constant 1.000000e+00 : f32
    %16 = vector.broadcast %cst_7 : f32 to vector<8x512xf32>
    %17 = arith.addf %16, %15 : vector<8x512xf32>
    %cst_8 = arith.constant 1.000000e+00 : f32
    %18 = vector.broadcast %cst_8 : f32 to vector<8x512xf32>
    %19 = arith.divf %18, %17 : vector<8x512xf32>
    %cst_9 = arith.constant 1.06140542 : f32
    %20 = vector.broadcast %cst_9 : f32 to vector<8x512xf32>
    %21 = arith.mulf %20, %19 : vector<8x512xf32>
    %cst_10 = arith.constant -1.45315206 : f32
    %22 = vector.broadcast %cst_10 : f32 to vector<8x512xf32>
    %23 = arith.addf %21, %22 : vector<8x512xf32>
    %24 = arith.mulf %23, %19 : vector<8x512xf32>
    %cst_11 = arith.constant 1.42141378 : f32
    %25 = vector.broadcast %cst_11 : f32 to vector<8x512xf32>
    %26 = arith.addf %24, %25 : vector<8x512xf32>
    %27 = arith.mulf %26, %19 : vector<8x512xf32>
    %cst_12 = arith.constant -0.284496725 : f32
    %28 = vector.broadcast %cst_12 : f32 to vector<8x512xf32>
    %29 = arith.addf %27, %28 : vector<8x512xf32>
    %30 = arith.mulf %29, %19 : vector<8x512xf32>
    %cst_13 = arith.constant 0.254829586 : f32
    %31 = vector.broadcast %cst_13 : f32 to vector<8x512xf32>
    %32 = arith.addf %30, %31 : vector<8x512xf32>
    %33 = arith.mulf %32, %19 : vector<8x512xf32>
    %cst_14 = arith.constant 0.000000e+00 : f32
    %34 = vector.broadcast %cst_14 : f32 to vector<8x512xf32>
    %35 = arith.subf %34, %13 : vector<8x512xf32>
    %36 = arith.mulf %35, %13 : vector<8x512xf32>
    %37 = math.exp %36 : vector<8x512xf32>
    %38 = arith.mulf %33, %37 : vector<8x512xf32>
    %cst_15 = arith.constant 0.000000e+00 : f32
    %39 = vector.broadcast %cst_15 : f32 to vector<8x512xf32>
    %40 = arith.cmpf oge, %12, %39 : vector<8x512xf32>
    %cst_16 = arith.constant 2.000000e+00 : f32
    %41 = vector.broadcast %cst_16 : f32 to vector<8x512xf32>
    %42 = arith.subf %41, %38 : vector<8x512xf32>
    %43 = arith.select %40, %38, %42 : vector<8x512xi1>, vector<8x512xf32>
    %cst_17 = arith.constant 5.000000e-01 : f32
    %44 = vector.broadcast %cst_17 : f32 to vector<8x512xf32>
    %45 = arith.mulf %44, %43 : vector<8x512xf32>
    %cst_18 = arith.constant -5.000000e-01 : f32
    %46 = vector.broadcast %cst_18 : f32 to vector<8x512xf32>
    %47 = arith.subf %46, %7 : vector<8x512xf32>
    %48 = arith.mulf %47, %6 : vector<8x512xf32>
    %cst_19 = arith.constant -0.707106769 : f32
    %49 = vector.broadcast %cst_19 : f32 to vector<8x512xf32>
    %50 = arith.mulf %49, %48 : vector<8x512xf32>
    %51 = math.absf %50 : vector<8x512xf32>
    %cst_20 = arith.constant 0.327591091 : f32
    %52 = vector.broadcast %cst_20 : f32 to vector<8x512xf32>
    %53 = arith.mulf %52, %51 : vector<8x512xf32>
    %cst_21 = arith.constant 1.000000e+00 : f32
    %54 = vector.broadcast %cst_21 : f32 to vector<8x512xf32>
    %55 = arith.addf %54, %53 : vector<8x512xf32>
    %cst_22 = arith.constant 1.000000e+00 : f32
    %56 = vector.broadcast %cst_22 : f32 to vector<8x512xf32>
    %57 = arith.divf %56, %55 : vector<8x512xf32>
    %cst_23 = arith.constant 1.06140542 : f32
    %58 = vector.broadcast %cst_23 : f32 to vector<8x512xf32>
    %59 = arith.mulf %58, %57 : vector<8x512xf32>
    %cst_24 = arith.constant -1.45315206 : f32
    %60 = vector.broadcast %cst_24 : f32 to vector<8x512xf32>
    %61 = arith.addf %59, %60 : vector<8x512xf32>
    %62 = arith.mulf %61, %57 : vector<8x512xf32>
    %cst_25 = arith.constant 1.42141378 : f32
    %63 = vector.broadcast %cst_25 : f32 to vector<8x512xf32>
    %64 = arith.addf %62, %63 : vector<8x512xf32>
    %65 = arith.mulf %64, %57 : vector<8x512xf32>
    %cst_26 = arith.constant -0.284496725 : f32
    %66 = vector.broadcast %cst_26 : f32 to vector<8x512xf32>
    %67 = arith.addf %65, %66 : vector<8x512xf32>
    %68 = arith.mulf %67, %57 : vector<8x512xf32>
    %cst_27 = arith.constant 0.254829586 : f32
    %69 = vector.broadcast %cst_27 : f32 to vector<8x512xf32>
    %70 = arith.addf %68, %69 : vector<8x512xf32>
    %71 = arith.mulf %70, %57 : vector<8x512xf32>
    %cst_28 = arith.constant 0.000000e+00 : f32
    %72 = vector.broadcast %cst_28 : f32 to vector<8x512xf32>
    %73 = arith.subf %72, %51 : vector<8x512xf32>
    %74 = arith.mulf %73, %51 : vector<8x512xf32>
    %75 = math.exp %74 : vector<8x512xf32>
    %76 = arith.mulf %71, %75 : vector<8x512xf32>
    %cst_29 = arith.constant 0.000000e+00 : f32
    %77 = vector.broadcast %cst_29 : f32 to vector<8x512xf32>
    %78 = arith.cmpf oge, %50, %77 : vector<8x512xf32>
    %cst_30 = arith.constant 2.000000e+00 : f32
    %79 = vector.broadcast %cst_30 : f32 to vector<8x512xf32>
    %80 = arith.subf %79, %76 : vector<8x512xf32>
    %81 = arith.select %78, %76, %80 : vector<8x512xi1>, vector<8x512xf32>
    %cst_31 = arith.constant 5.000000e-01 : f32
    %82 = vector.broadcast %cst_31 : f32 to vector<8x512xf32>
    %83 = arith.mulf %82, %81 : vector<8x512xf32>
    %84 = arith.subf %45, %83 : vector<8x512xf32>
    %cst_32 = arith.constant 9.99999971E-10 : f32
    %cst_33 = arith.constant 1.000000e+00 : f32
    %85 = vector.broadcast %cst_32 : f32 to vector<8x512xf32>
    %86 = arith.maximumf %85, %84 : vector<8x512xf32>
    %87 = vector.broadcast %cst_33 : f32 to vector<8x512xf32>
    %88 = arith.minimumf %87, %86 : vector<8x512xf32>
    %89 = arith.truncf %1 : vector<8x512xf32> to vector<8x512xbf16>
    %c0_34 = arith.constant 0 : index
    %c0_35 = arith.constant 0 : index
    %90 = vector.load %arg3[%c0_34, %c0_35] : memref<8x512xbf16, #tpu.memory_space<vmem>>, vector<8x512xbf16>
    tpu.vector_store %arg3[%c0_34, %c0_35], %89 {strides = array<i32>} : memref<8x512xbf16, #tpu.memory_space<vmem>>, vector<8x512xbf16>,
    %c0_36 = arith.constant 0 : index
    %c0_37 = arith.constant 0 : index
    %91 = vector.load %arg4[%c0_36, %c0_37] : memref<8x512xf32, #tpu.memory_space<vmem>>, vector<8x512xf32>
    tpu.vector_store %arg4[%c0_36, %c0_37], %88 {strides = array<i32>} : memref<8x512xf32, #tpu.memory_space<vmem>>, vector<8x512xf32>,
    return
  }
  func.func @transform_0(%arg0: i32) -> (i32, i32) {
    %c0_i32 = arith.constant 0 : i32
    %c0_i32_0 = arith.constant 0 : i32
    return %arg0, %c0_i32 : i32, i32
  }
  func.func @transform_1(%arg0: i32) -> (i32, i32) {
    %c0_i32 = arith.constant 0 : i32
    %c0_i32_0 = arith.constant 0 : i32
    return %arg0, %c0_i32 : i32, i32
  }
  func.func @transform_2(%arg0: i32) -> (i32, i32) {
    %c0_i32 = arith.constant 0 : i32
    %c0_i32_0 = arith.constant 0 : i32
    return %arg0, %c0_i32 : i32, i32
  }
  func.func @transform_3(%arg0: i32) -> (i32, i32) {
    %c0_i32 = arith.constant 0 : i32
    %c0_i32_0 = arith.constant 0 : i32
    return %arg0, %c0_i32 : i32, i32
  }
}

module attributes {stable_mosaic.version = 11 : i64} {
  func.func @_matmul_bias_kernel(%arg0: i32, %arg1: memref<12x72xbf16, #tpu.memory_space<vmem>>, %arg2: memref<72x128xbf16, #tpu.memory_space<vmem>>, %arg3: memref<12x1xf32, #tpu.memory_space<vmem>>, %arg4: memref<12x128xf32, #tpu.memory_space<vmem>>) attributes {dimension_semantics = [#tpu.dimension_semantics<parallel>], iteration_bounds = array<i64: 2>, scalar_prefetch = 0 : i64, scratch_operands = 0 : i64, tpu.core_type = #tpu.core_type<tc>, window_params = [{pipeline_mode = #tpu.pipeline_mode<synchronous>, transform_indices = @transform_0, window_bounds = array<i64: 12, 72>}, {transform_indices = @transform_1, window_bounds = array<i64: 72, 128>}, {pipeline_mode = #tpu.pipeline_mode<synchronous>, transform_indices = @transform_2, window_bounds = array<i64: 12, 1>}, {transform_indices = @transform_3, window_bounds = array<i64: 12, 128>}]} {
    %c0 = arith.constant 0 : index
    %c0_0 = arith.constant 0 : index
    %0 = vector.load %arg1[%c0, %c0_0] : memref<12x72xbf16, #tpu.memory_space<vmem>>, vector<12x72xbf16>
    %c0_1 = arith.constant 0 : index
    %c0_2 = arith.constant 0 : index
    %1 = vector.load %arg2[%c0_1, %c0_2] : memref<72x128xbf16, #tpu.memory_space<vmem>>, vector<72x128xbf16>
    %cst = arith.constant dense<0.000000e+00> : vector<12x128xf32>
    %2 = tpu.matmul %0, %1, %cst {dimension_numbers = #tpu.dot_dimension_numbers<[1], [0], [0], [1], [0, 0, 1, 1], [], []>} : vector<12x72xbf16>, vector<72x128xbf16>, vector<12x128xf32> -> vector<12x128xf32>
    %c0_3 = arith.constant 0 : index
    %c0_4 = arith.constant 0 : index
    %3 = vector.load %arg3[%c0_3, %c0_4] : memref<12x1xf32, #tpu.memory_space<vmem>>, vector<12x1xf32>
    %4 = vector.broadcast %3 : vector<12x1xf32> to vector<12x128xf32>
    %5 = arith.addf %2, %4 : vector<12x128xf32>
    %cst_5 = arith.constant 0.000000e+00 : f32
    %6 = vector.broadcast %cst_5 : f32 to vector<12x128xf32>
    %7 = arith.maximumf %5, %6 : vector<12x128xf32>
    %c0_6 = arith.constant 0 : index
    %c0_7 = arith.constant 0 : index
    %8 = vector.load %arg4[%c0_6, %c0_7] : memref<12x128xf32, #tpu.memory_space<vmem>>, vector<12x128xf32>
    tpu.vector_store %arg4[%c0_6, %c0_7], %7 {strides = array<i32>} : memref<12x128xf32, #tpu.memory_space<vmem>>, vector<12x128xf32>,
    return
  }
  func.func @transform_0(%arg0: i32) -> (i32, i32) {
    %c0_i32 = arith.constant 0 : i32
    %c0_i32_0 = arith.constant 0 : i32
    %c0_i32_1 = arith.constant 0 : i32
    return %c0_i32, %c0_i32_0 : i32, i32
  }
  func.func @transform_1(%arg0: i32) -> (i32, i32) {
    %c0_i32 = arith.constant 0 : i32
    %c0_i32_0 = arith.constant 0 : i32
    return %c0_i32, %arg0 : i32, i32
  }
  func.func @transform_2(%arg0: i32) -> (i32, i32) {
    %c0_i32 = arith.constant 0 : i32
    %c0_i32_0 = arith.constant 0 : i32
    %c0_i32_1 = arith.constant 0 : i32
    return %c0_i32, %c0_i32_0 : i32, i32
  }
  func.func @transform_3(%arg0: i32) -> (i32, i32) {
    %c0_i32 = arith.constant 0 : i32
    %c0_i32_0 = arith.constant 0 : i32
    return %c0_i32, %arg0 : i32, i32
  }
}

module attributes {stable_mosaic.version = 11 : i64} {
  func.func @_matmul_gdn_kernel(%arg0: i32, %arg1: memref<8x108xbf16, #tpu.memory_space<vmem>>, %arg2: memref<108x128xbf16, #tpu.memory_space<vmem>>, %arg3: memref<8x1xf32, #tpu.memory_space<vmem>>, %arg4: memref<8x8xbf16, #tpu.memory_space<vmem>>, %arg5: memref<8x1xf32, #tpu.memory_space<vmem>>, %arg6: memref<8x128xbf16, #tpu.memory_space<vmem>>) attributes {dimension_semantics = [#tpu.dimension_semantics<parallel>], iteration_bounds = array<i64: 2>, scalar_prefetch = 0 : i64, scratch_operands = 0 : i64, tpu.core_type = #tpu.core_type<tc>, window_params = [{pipeline_mode = #tpu.pipeline_mode<synchronous>, transform_indices = @transform_0, window_bounds = array<i64: 8, 108>}, {transform_indices = @transform_1, window_bounds = array<i64: 108, 128>}, {pipeline_mode = #tpu.pipeline_mode<synchronous>, transform_indices = @transform_2, window_bounds = array<i64: 8, 1>}, {pipeline_mode = #tpu.pipeline_mode<synchronous>, transform_indices = @transform_3, window_bounds = array<i64: 8, 8>}, {pipeline_mode = #tpu.pipeline_mode<synchronous>, transform_indices = @transform_4, window_bounds = array<i64: 8, 1>}, {transform_indices = @transform_5, window_bounds = array<i64: 8, 128>}]} {
    %c0 = arith.constant 0 : index
    %c0_0 = arith.constant 0 : index
    %0 = vector.load %arg1[%c0, %c0_0] : memref<8x108xbf16, #tpu.memory_space<vmem>>, vector<8x108xbf16>
    %c0_1 = arith.constant 0 : index
    %c0_2 = arith.constant 0 : index
    %1 = vector.load %arg2[%c0_1, %c0_2] : memref<108x128xbf16, #tpu.memory_space<vmem>>, vector<108x128xbf16>
    %cst = arith.constant dense<0.000000e+00> : vector<8x128xf32>
    %2 = tpu.matmul %0, %1, %cst {dimension_numbers = #tpu.dot_dimension_numbers<[1], [0], [0], [1], [0, 0, 1, 1], [], []>} : vector<8x108xbf16>, vector<108x128xbf16>, vector<8x128xf32> -> vector<8x128xf32>
    %c0_3 = arith.constant 0 : index
    %c0_4 = arith.constant 0 : index
    %3 = vector.load %arg3[%c0_3, %c0_4] : memref<8x1xf32, #tpu.memory_space<vmem>>, vector<8x1xf32>
    %4 = vector.broadcast %3 : vector<8x1xf32> to vector<8x128xf32>
    %5 = arith.addf %2, %4 : vector<8x128xf32>
    %6 = arith.mulf %5, %5 : vector<8x128xf32>
    %7 = arith.truncf %6 : vector<8x128xf32> to vector<8x128xbf16>
    %c0_5 = arith.constant 0 : index
    %c0_6 = arith.constant 0 : index
    %8 = vector.load %arg4[%c0_5, %c0_6] : memref<8x8xbf16, #tpu.memory_space<vmem>>, vector<8x8xbf16>
    %cst_7 = arith.constant dense<0.000000e+00> : vector<8x128xf32>
    %9 = tpu.matmul %8, %7, %cst_7 {dimension_numbers = #tpu.dot_dimension_numbers<[1], [0], [0], [1], [0, 0, 1, 1], [], []>} : vector<8x8xbf16>, vector<8x128xbf16>, vector<8x128xf32> -> vector<8x128xf32>
    %c0_8 = arith.constant 0 : index
    %c0_9 = arith.constant 0 : index
    %10 = vector.load %arg5[%c0_8, %c0_9] : memref<8x1xf32, #tpu.memory_space<vmem>>, vector<8x1xf32>
    %11 = vector.broadcast %10 : vector<8x1xf32> to vector<8x128xf32>
    %12 = arith.addf %9, %11 : vector<8x128xf32>
    %13 = math.sqrt %12 : vector<8x128xf32>
    %14 = arith.mulf %5, %13 : vector<8x128xf32>
    %15 = arith.truncf %14 : vector<8x128xf32> to vector<8x128xbf16>
    %c0_10 = arith.constant 0 : index
    %c0_11 = arith.constant 0 : index
    %16 = vector.load %arg6[%c0_10, %c0_11] : memref<8x128xbf16, #tpu.memory_space<vmem>>, vector<8x128xbf16>
    tpu.vector_store %arg6[%c0_10, %c0_11], %15 {strides = array<i32>} : memref<8x128xbf16, #tpu.memory_space<vmem>>, vector<8x128xbf16>,
    return
  }
  func.func @transform_0(%arg0: i32) -> (i32, i32) {
    %c0_i32 = arith.constant 0 : i32
    %c0_i32_0 = arith.constant 0 : i32
    %c0_i32_1 = arith.constant 0 : i32
    return %c0_i32, %c0_i32_0 : i32, i32
  }
  func.func @transform_1(%arg0: i32) -> (i32, i32) {
    %c0_i32 = arith.constant 0 : i32
    %c0_i32_0 = arith.constant 0 : i32
    return %c0_i32, %arg0 : i32, i32
  }
  func.func @transform_2(%arg0: i32) -> (i32, i32) {
    %c0_i32 = arith.constant 0 : i32
    %c0_i32_0 = arith.constant 0 : i32
    %c0_i32_1 = arith.constant 0 : i32
    return %c0_i32, %c0_i32_0 : i32, i32
  }
  func.func @transform_3(%arg0: i32) -> (i32, i32) {
    %c0_i32 = arith.constant 0 : i32
    %c0_i32_0 = arith.constant 0 : i32
    %c0_i32_1 = arith.constant 0 : i32
    return %c0_i32, %c0_i32_0 : i32, i32
  }
  func.func @transform_4(%arg0: i32) -> (i32, i32) {
    %c0_i32 = arith.constant 0 : i32
    %c0_i32_0 = arith.constant 0 : i32
    %c0_i32_1 = arith.constant 0 : i32
    return %c0_i32, %c0_i32_0 : i32, i32
  }
  func.func @transform_5(%arg0: i32) -> (i32, i32) {
    %c0_i32 = arith.constant 0 : i32
    %c0_i32_0 = arith.constant 0 : i32
    return %c0_i32, %arg0 : i32, i32
  }
}

module attributes {stable_mosaic.version = 11 : i64} {
  func.func @_matmul_gdn_kernel(%arg0: i32, %arg1: memref<8x72xbf16, #tpu.memory_space<vmem>>, %arg2: memref<72x128xbf16, #tpu.memory_space<vmem>>, %arg3: memref<8x1xf32, #tpu.memory_space<vmem>>, %arg4: memref<8x8xbf16, #tpu.memory_space<vmem>>, %arg5: memref<8x1xf32, #tpu.memory_space<vmem>>, %arg6: memref<8x128xbf16, #tpu.memory_space<vmem>>) attributes {dimension_semantics = [#tpu.dimension_semantics<parallel>], iteration_bounds = array<i64: 2>, scalar_prefetch = 0 : i64, scratch_operands = 0 : i64, tpu.core_type = #tpu.core_type<tc>, window_params = [{pipeline_mode = #tpu.pipeline_mode<synchronous>, transform_indices = @transform_0, window_bounds = array<i64: 8, 72>}, {transform_indices = @transform_1, window_bounds = array<i64: 72, 128>}, {pipeline_mode = #tpu.pipeline_mode<synchronous>, transform_indices = @transform_2, window_bounds = array<i64: 8, 1>}, {pipeline_mode = #tpu.pipeline_mode<synchronous>, transform_indices = @transform_3, window_bounds = array<i64: 8, 8>}, {pipeline_mode = #tpu.pipeline_mode<synchronous>, transform_indices = @transform_4, window_bounds = array<i64: 8, 1>}, {transform_indices = @transform_5, window_bounds = array<i64: 8, 128>}]} {
    %c0 = arith.constant 0 : index
    %c0_0 = arith.constant 0 : index
    %0 = vector.load %arg1[%c0, %c0_0] : memref<8x72xbf16, #tpu.memory_space<vmem>>, vector<8x72xbf16>
    %c0_1 = arith.constant 0 : index
    %c0_2 = arith.constant 0 : index
    %1 = vector.load %arg2[%c0_1, %c0_2] : memref<72x128xbf16, #tpu.memory_space<vmem>>, vector<72x128xbf16>
    %cst = arith.constant dense<0.000000e+00> : vector<8x128xf32>
    %2 = tpu.matmul %0, %1, %cst {dimension_numbers = #tpu.dot_dimension_numbers<[1], [0], [0], [1], [0, 0, 1, 1], [], []>} : vector<8x72xbf16>, vector<72x128xbf16>, vector<8x128xf32> -> vector<8x128xf32>
    %c0_3 = arith.constant 0 : index
    %c0_4 = arith.constant 0 : index
    %3 = vector.load %arg3[%c0_3, %c0_4] : memref<8x1xf32, #tpu.memory_space<vmem>>, vector<8x1xf32>
    %4 = vector.broadcast %3 : vector<8x1xf32> to vector<8x128xf32>
    %5 = arith.addf %2, %4 : vector<8x128xf32>
    %6 = arith.mulf %5, %5 : vector<8x128xf32>
    %7 = arith.truncf %6 : vector<8x128xf32> to vector<8x128xbf16>
    %c0_5 = arith.constant 0 : index
    %c0_6 = arith.constant 0 : index
    %8 = vector.load %arg4[%c0_5, %c0_6] : memref<8x8xbf16, #tpu.memory_space<vmem>>, vector<8x8xbf16>
    %cst_7 = arith.constant dense<0.000000e+00> : vector<8x128xf32>
    %9 = tpu.matmul %8, %7, %cst_7 {dimension_numbers = #tpu.dot_dimension_numbers<[1], [0], [0], [1], [0, 0, 1, 1], [], []>} : vector<8x8xbf16>, vector<8x128xbf16>, vector<8x128xf32> -> vector<8x128xf32>
    %c0_8 = arith.constant 0 : index
    %c0_9 = arith.constant 0 : index
    %10 = vector.load %arg5[%c0_8, %c0_9] : memref<8x1xf32, #tpu.memory_space<vmem>>, vector<8x1xf32>
    %11 = vector.broadcast %10 : vector<8x1xf32> to vector<8x128xf32>
    %12 = arith.addf %9, %11 : vector<8x128xf32>
    %13 = math.sqrt %12 : vector<8x128xf32>
    %14 = arith.mulf %5, %13 : vector<8x128xf32>
    %15 = arith.truncf %14 : vector<8x128xf32> to vector<8x128xbf16>
    %c0_10 = arith.constant 0 : index
    %c0_11 = arith.constant 0 : index
    %16 = vector.load %arg6[%c0_10, %c0_11] : memref<8x128xbf16, #tpu.memory_space<vmem>>, vector<8x128xbf16>
    tpu.vector_store %arg6[%c0_10, %c0_11], %15 {strides = array<i32>} : memref<8x128xbf16, #tpu.memory_space<vmem>>, vector<8x128xbf16>,
    return
  }
  func.func @transform_0(%arg0: i32) -> (i32, i32) {
    %c0_i32 = arith.constant 0 : i32
    %c0_i32_0 = arith.constant 0 : i32
    %c0_i32_1 = arith.constant 0 : i32
    return %c0_i32, %c0_i32_0 : i32, i32
  }
  func.func @transform_1(%arg0: i32) -> (i32, i32) {
    %c0_i32 = arith.constant 0 : i32
    %c0_i32_0 = arith.constant 0 : i32
    return %c0_i32, %arg0 : i32, i32
  }
  func.func @transform_2(%arg0: i32) -> (i32, i32) {
    %c0_i32 = arith.constant 0 : i32
    %c0_i32_0 = arith.constant 0 : i32
    %c0_i32_1 = arith.constant 0 : i32
    return %c0_i32, %c0_i32_0 : i32, i32
  }
  func.func @transform_3(%arg0: i32) -> (i32, i32) {
    %c0_i32 = arith.constant 0 : i32
    %c0_i32_0 = arith.constant 0 : i32
    %c0_i32_1 = arith.constant 0 : i32
    return %c0_i32, %c0_i32_0 : i32, i32
  }
  func.func @transform_4(%arg0: i32) -> (i32, i32) {
    %c0_i32 = arith.constant 0 : i32
    %c0_i32_0 = arith.constant 0 : i32
    %c0_i32_1 = arith.constant 0 : i32
    return %c0_i32, %c0_i32_0 : i32, i32
  }
  func.func @transform_5(%arg0: i32) -> (i32, i32) {
    %c0_i32 = arith.constant 0 : i32
    %c0_i32_0 = arith.constant 0 : i32
    return %c0_i32, %arg0 : i32, i32
  }
}

module attributes {stable_mosaic.version = 11 : i64} {
  func.func @_matmul_gdn_kernel(%arg0: i32, %arg1: memref<8x48xbf16, #tpu.memory_space<vmem>>, %arg2: memref<48x128xbf16, #tpu.memory_space<vmem>>, %arg3: memref<8x1xf32, #tpu.memory_space<vmem>>, %arg4: memref<8x8xbf16, #tpu.memory_space<vmem>>, %arg5: memref<8x1xf32, #tpu.memory_space<vmem>>, %arg6: memref<8x128xbf16, #tpu.memory_space<vmem>>) attributes {dimension_semantics = [#tpu.dimension_semantics<parallel>], iteration_bounds = array<i64: 2>, scalar_prefetch = 0 : i64, scratch_operands = 0 : i64, tpu.core_type = #tpu.core_type<tc>, window_params = [{pipeline_mode = #tpu.pipeline_mode<synchronous>, transform_indices = @transform_0, window_bounds = array<i64: 8, 48>}, {transform_indices = @transform_1, window_bounds = array<i64: 48, 128>}, {pipeline_mode = #tpu.pipeline_mode<synchronous>, transform_indices = @transform_2, window_bounds = array<i64: 8, 1>}, {pipeline_mode = #tpu.pipeline_mode<synchronous>, transform_indices = @transform_3, window_bounds = array<i64: 8, 8>}, {pipeline_mode = #tpu.pipeline_mode<synchronous>, transform_indices = @transform_4, window_bounds = array<i64: 8, 1>}, {transform_indices = @transform_5, window_bounds = array<i64: 8, 128>}]} {
    %c0 = arith.constant 0 : index
    %c0_0 = arith.constant 0 : index
    %0 = vector.load %arg1[%c0, %c0_0] : memref<8x48xbf16, #tpu.memory_space<vmem>>, vector<8x48xbf16>
    %c0_1 = arith.constant 0 : index
    %c0_2 = arith.constant 0 : index
    %1 = vector.load %arg2[%c0_1, %c0_2] : memref<48x128xbf16, #tpu.memory_space<vmem>>, vector<48x128xbf16>
    %cst = arith.constant dense<0.000000e+00> : vector<8x128xf32>
    %2 = tpu.matmul %0, %1, %cst {dimension_numbers = #tpu.dot_dimension_numbers<[1], [0], [0], [1], [0, 0, 1, 1], [], []>} : vector<8x48xbf16>, vector<48x128xbf16>, vector<8x128xf32> -> vector<8x128xf32>
    %c0_3 = arith.constant 0 : index
    %c0_4 = arith.constant 0 : index
    %3 = vector.load %arg3[%c0_3, %c0_4] : memref<8x1xf32, #tpu.memory_space<vmem>>, vector<8x1xf32>
    %4 = vector.broadcast %3 : vector<8x1xf32> to vector<8x128xf32>
    %5 = arith.addf %2, %4 : vector<8x128xf32>
    %6 = arith.mulf %5, %5 : vector<8x128xf32>
    %7 = arith.truncf %6 : vector<8x128xf32> to vector<8x128xbf16>
    %c0_5 = arith.constant 0 : index
    %c0_6 = arith.constant 0 : index
    %8 = vector.load %arg4[%c0_5, %c0_6] : memref<8x8xbf16, #tpu.memory_space<vmem>>, vector<8x8xbf16>
    %cst_7 = arith.constant dense<0.000000e+00> : vector<8x128xf32>
    %9 = tpu.matmul %8, %7, %cst_7 {dimension_numbers = #tpu.dot_dimension_numbers<[1], [0], [0], [1], [0, 0, 1, 1], [], []>} : vector<8x8xbf16>, vector<8x128xbf16>, vector<8x128xf32> -> vector<8x128xf32>
    %c0_8 = arith.constant 0 : index
    %c0_9 = arith.constant 0 : index
    %10 = vector.load %arg5[%c0_8, %c0_9] : memref<8x1xf32, #tpu.memory_space<vmem>>, vector<8x1xf32>
    %11 = vector.broadcast %10 : vector<8x1xf32> to vector<8x128xf32>
    %12 = arith.addf %9, %11 : vector<8x128xf32>
    %13 = math.sqrt %12 : vector<8x128xf32>
    %14 = arith.mulf %5, %13 : vector<8x128xf32>
    %15 = arith.truncf %14 : vector<8x128xf32> to vector<8x128xbf16>
    %c0_10 = arith.constant 0 : index
    %c0_11 = arith.constant 0 : index
    %16 = vector.load %arg6[%c0_10, %c0_11] : memref<8x128xbf16, #tpu.memory_space<vmem>>, vector<8x128xbf16>
    tpu.vector_store %arg6[%c0_10, %c0_11], %15 {strides = array<i32>} : memref<8x128xbf16, #tpu.memory_space<vmem>>, vector<8x128xbf16>,
    return
  }
  func.func @transform_0(%arg0: i32) -> (i32, i32) {
    %c0_i32 = arith.constant 0 : i32
    %c0_i32_0 = arith.constant 0 : i32
    %c0_i32_1 = arith.constant 0 : i32
    return %c0_i32, %c0_i32_0 : i32, i32
  }
  func.func @transform_1(%arg0: i32) -> (i32, i32) {
    %c0_i32 = arith.constant 0 : i32
    %c0_i32_0 = arith.constant 0 : i32
    return %c0_i32, %arg0 : i32, i32
  }
  func.func @transform_2(%arg0: i32) -> (i32, i32) {
    %c0_i32 = arith.constant 0 : i32
    %c0_i32_0 = arith.constant 0 : i32
    %c0_i32_1 = arith.constant 0 : i32
    return %c0_i32, %c0_i32_0 : i32, i32
  }
  func.func @transform_3(%arg0: i32) -> (i32, i32) {
    %c0_i32 = arith.constant 0 : i32
    %c0_i32_0 = arith.constant 0 : i32
    %c0_i32_1 = arith.constant 0 : i32
    return %c0_i32, %c0_i32_0 : i32, i32
  }
  func.func @transform_4(%arg0: i32) -> (i32, i32) {
    %c0_i32 = arith.constant 0 : i32
    %c0_i32_0 = arith.constant 0 : i32
    %c0_i32_1 = arith.constant 0 : i32
    return %c0_i32, %c0_i32_0 : i32, i32
  }
  func.func @transform_5(%arg0: i32) -> (i32, i32) {
    %c0_i32 = arith.constant 0 : i32
    %c0_i32_0 = arith.constant 0 : i32
    return %c0_i32, %arg0 : i32, i32
  }
}

module attributes {stable_mosaic.version = 11 : i64} {
  func.func @_matmul_gdn_kernel(%arg0: i32, %arg1: memref<8x32xbf16, #tpu.memory_space<vmem>>, %arg2: memref<32x128xbf16, #tpu.memory_space<vmem>>, %arg3: memref<8x1xf32, #tpu.memory_space<vmem>>, %arg4: memref<8x8xbf16, #tpu.memory_space<vmem>>, %arg5: memref<8x1xf32, #tpu.memory_space<vmem>>, %arg6: memref<8x128xbf16, #tpu.memory_space<vmem>>) attributes {dimension_semantics = [#tpu.dimension_semantics<parallel>], iteration_bounds = array<i64: 2>, scalar_prefetch = 0 : i64, scratch_operands = 0 : i64, tpu.core_type = #tpu.core_type<tc>, window_params = [{pipeline_mode = #tpu.pipeline_mode<synchronous>, transform_indices = @transform_0, window_bounds = array<i64: 8, 32>}, {transform_indices = @transform_1, window_bounds = array<i64: 32, 128>}, {pipeline_mode = #tpu.pipeline_mode<synchronous>, transform_indices = @transform_2, window_bounds = array<i64: 8, 1>}, {pipeline_mode = #tpu.pipeline_mode<synchronous>, transform_indices = @transform_3, window_bounds = array<i64: 8, 8>}, {pipeline_mode = #tpu.pipeline_mode<synchronous>, transform_indices = @transform_4, window_bounds = array<i64: 8, 1>}, {transform_indices = @transform_5, window_bounds = array<i64: 8, 128>}]} {
    %c0 = arith.constant 0 : index
    %c0_0 = arith.constant 0 : index
    %0 = vector.load %arg1[%c0, %c0_0] : memref<8x32xbf16, #tpu.memory_space<vmem>>, vector<8x32xbf16>
    %c0_1 = arith.constant 0 : index
    %c0_2 = arith.constant 0 : index
    %1 = vector.load %arg2[%c0_1, %c0_2] : memref<32x128xbf16, #tpu.memory_space<vmem>>, vector<32x128xbf16>
    %cst = arith.constant dense<0.000000e+00> : vector<8x128xf32>
    %2 = tpu.matmul %0, %1, %cst {dimension_numbers = #tpu.dot_dimension_numbers<[1], [0], [0], [1], [0, 0, 1, 1], [], []>} : vector<8x32xbf16>, vector<32x128xbf16>, vector<8x128xf32> -> vector<8x128xf32>
    %c0_3 = arith.constant 0 : index
    %c0_4 = arith.constant 0 : index
    %3 = vector.load %arg3[%c0_3, %c0_4] : memref<8x1xf32, #tpu.memory_space<vmem>>, vector<8x1xf32>
    %4 = vector.broadcast %3 : vector<8x1xf32> to vector<8x128xf32>
    %5 = arith.addf %2, %4 : vector<8x128xf32>
    %6 = arith.mulf %5, %5 : vector<8x128xf32>
    %7 = arith.truncf %6 : vector<8x128xf32> to vector<8x128xbf16>
    %c0_5 = arith.constant 0 : index
    %c0_6 = arith.constant 0 : index
    %8 = vector.load %arg4[%c0_5, %c0_6] : memref<8x8xbf16, #tpu.memory_space<vmem>>, vector<8x8xbf16>
    %cst_7 = arith.constant dense<0.000000e+00> : vector<8x128xf32>
    %9 = tpu.matmul %8, %7, %cst_7 {dimension_numbers = #tpu.dot_dimension_numbers<[1], [0], [0], [1], [0, 0, 1, 1], [], []>} : vector<8x8xbf16>, vector<8x128xbf16>, vector<8x128xf32> -> vector<8x128xf32>
    %c0_8 = arith.constant 0 : index
    %c0_9 = arith.constant 0 : index
    %10 = vector.load %arg5[%c0_8, %c0_9] : memref<8x1xf32, #tpu.memory_space<vmem>>, vector<8x1xf32>
    %11 = vector.broadcast %10 : vector<8x1xf32> to vector<8x128xf32>
    %12 = arith.addf %9, %11 : vector<8x128xf32>
    %13 = math.sqrt %12 : vector<8x128xf32>
    %14 = arith.mulf %5, %13 : vector<8x128xf32>
    %15 = arith.truncf %14 : vector<8x128xf32> to vector<8x128xbf16>
    %c0_10 = arith.constant 0 : index
    %c0_11 = arith.constant 0 : index
    %16 = vector.load %arg6[%c0_10, %c0_11] : memref<8x128xbf16, #tpu.memory_space<vmem>>, vector<8x128xbf16>
    tpu.vector_store %arg6[%c0_10, %c0_11], %15 {strides = array<i32>} : memref<8x128xbf16, #tpu.memory_space<vmem>>, vector<8x128xbf16>,
    return
  }
  func.func @transform_0(%arg0: i32) -> (i32, i32) {
    %c0_i32 = arith.constant 0 : i32
    %c0_i32_0 = arith.constant 0 : i32
    %c0_i32_1 = arith.constant 0 : i32
    return %c0_i32, %c0_i32_0 : i32, i32
  }
  func.func @transform_1(%arg0: i32) -> (i32, i32) {
    %c0_i32 = arith.constant 0 : i32
    %c0_i32_0 = arith.constant 0 : i32
    return %c0_i32, %arg0 : i32, i32
  }
  func.func @transform_2(%arg0: i32) -> (i32, i32) {
    %c0_i32 = arith.constant 0 : i32
    %c0_i32_0 = arith.constant 0 : i32
    %c0_i32_1 = arith.constant 0 : i32
    return %c0_i32, %c0_i32_0 : i32, i32
  }
  func.func @transform_3(%arg0: i32) -> (i32, i32) {
    %c0_i32 = arith.constant 0 : i32
    %c0_i32_0 = arith.constant 0 : i32
    %c0_i32_1 = arith.constant 0 : i32
    return %c0_i32, %c0_i32_0 : i32, i32
  }
  func.func @transform_4(%arg0: i32) -> (i32, i32) {
    %c0_i32 = arith.constant 0 : i32
    %c0_i32_0 = arith.constant 0 : i32
    %c0_i32_1 = arith.constant 0 : i32
    return %c0_i32, %c0_i32_0 : i32, i32
  }
  func.func @transform_5(%arg0: i32) -> (i32, i32) {
    %c0_i32 = arith.constant 0 : i32
    %c0_i32_0 = arith.constant 0 : i32
    return %c0_i32, %arg0 : i32, i32
  }
}

module attributes {stable_mosaic.version = 11 : i64} {
  func.func @_matmul_bias_kernel(%arg0: i32, %arg1: memref<3x48xbf16, #tpu.memory_space<vmem>>, %arg2: memref<48x256xbf16, #tpu.memory_space<vmem>>, %arg3: memref<3x1xf32, #tpu.memory_space<vmem>>, %arg4: memref<3x256xf32, #tpu.memory_space<vmem>>) attributes {dimension_semantics = [#tpu.dimension_semantics<parallel>], iteration_bounds = array<i64: 2>, scalar_prefetch = 0 : i64, scratch_operands = 0 : i64, tpu.core_type = #tpu.core_type<tc>, window_params = [{pipeline_mode = #tpu.pipeline_mode<synchronous>, transform_indices = @transform_0, window_bounds = array<i64: 3, 48>}, {transform_indices = @transform_1, window_bounds = array<i64: 48, 256>}, {pipeline_mode = #tpu.pipeline_mode<synchronous>, transform_indices = @transform_2, window_bounds = array<i64: 3, 1>}, {transform_indices = @transform_3, window_bounds = array<i64: 3, 256>}]} {
    %c0 = arith.constant 0 : index
    %c0_0 = arith.constant 0 : index
    %0 = vector.load %arg1[%c0, %c0_0] : memref<3x48xbf16, #tpu.memory_space<vmem>>, vector<3x48xbf16>
    %c0_1 = arith.constant 0 : index
    %c0_2 = arith.constant 0 : index
    %1 = vector.load %arg2[%c0_1, %c0_2] : memref<48x256xbf16, #tpu.memory_space<vmem>>, vector<48x256xbf16>
    %cst = arith.constant dense<0.000000e+00> : vector<3x256xf32>
    %2 = tpu.matmul %0, %1, %cst {dimension_numbers = #tpu.dot_dimension_numbers<[1], [0], [0], [1], [0, 0, 1, 1], [], []>} : vector<3x48xbf16>, vector<48x256xbf16>, vector<3x256xf32> -> vector<3x256xf32>
    %c0_3 = arith.constant 0 : index
    %c0_4 = arith.constant 0 : index
    %3 = vector.load %arg3[%c0_3, %c0_4] : memref<3x1xf32, #tpu.memory_space<vmem>>, vector<3x1xf32>
    %4 = vector.broadcast %3 : vector<3x1xf32> to vector<3x256xf32>
    %5 = arith.addf %2, %4 : vector<3x256xf32>
    %c0_5 = arith.constant 0 : index
    %c0_6 = arith.constant 0 : index
    %6 = vector.load %arg4[%c0_5, %c0_6] : memref<3x256xf32, #tpu.memory_space<vmem>>, vector<3x256xf32>
    tpu.vector_store %arg4[%c0_5, %c0_6], %5 {strides = array<i32>} : memref<3x256xf32, #tpu.memory_space<vmem>>, vector<3x256xf32>,
    return
  }
  func.func @transform_0(%arg0: i32) -> (i32, i32) {
    %c0_i32 = arith.constant 0 : i32
    %c0_i32_0 = arith.constant 0 : i32
    %c0_i32_1 = arith.constant 0 : i32
    return %c0_i32, %c0_i32_0 : i32, i32
  }
  func.func @transform_1(%arg0: i32) -> (i32, i32) {
    %c0_i32 = arith.constant 0 : i32
    %c0_i32_0 = arith.constant 0 : i32
    return %c0_i32, %arg0 : i32, i32
  }
  func.func @transform_2(%arg0: i32) -> (i32, i32) {
    %c0_i32 = arith.constant 0 : i32
    %c0_i32_0 = arith.constant 0 : i32
    %c0_i32_1 = arith.constant 0 : i32
    return %c0_i32, %c0_i32_0 : i32, i32
  }
  func.func @transform_3(%arg0: i32) -> (i32, i32) {
    %c0_i32 = arith.constant 0 : i32
    %c0_i32_0 = arith.constant 0 : i32
    return %c0_i32, %arg0 : i32, i32
  }
}

module attributes {stable_mosaic.version = 11 : i64} {
  func.func @_matmul_bias_kernel(%arg0: i32, %arg1: memref<3x72xbf16, #tpu.memory_space<vmem>>, %arg2: memref<72x256xbf16, #tpu.memory_space<vmem>>, %arg3: memref<3x1xf32, #tpu.memory_space<vmem>>, %arg4: memref<3x256xf32, #tpu.memory_space<vmem>>) attributes {dimension_semantics = [#tpu.dimension_semantics<parallel>], iteration_bounds = array<i64: 2>, scalar_prefetch = 0 : i64, scratch_operands = 0 : i64, tpu.core_type = #tpu.core_type<tc>, window_params = [{pipeline_mode = #tpu.pipeline_mode<synchronous>, transform_indices = @transform_0, window_bounds = array<i64: 3, 72>}, {transform_indices = @transform_1, window_bounds = array<i64: 72, 256>}, {pipeline_mode = #tpu.pipeline_mode<synchronous>, transform_indices = @transform_2, window_bounds = array<i64: 3, 1>}, {transform_indices = @transform_3, window_bounds = array<i64: 3, 256>}]} {
    %c0 = arith.constant 0 : index
    %c0_0 = arith.constant 0 : index
    %0 = vector.load %arg1[%c0, %c0_0] : memref<3x72xbf16, #tpu.memory_space<vmem>>, vector<3x72xbf16>
    %c0_1 = arith.constant 0 : index
    %c0_2 = arith.constant 0 : index
    %1 = vector.load %arg2[%c0_1, %c0_2] : memref<72x256xbf16, #tpu.memory_space<vmem>>, vector<72x256xbf16>
    %cst = arith.constant dense<0.000000e+00> : vector<3x256xf32>
    %2 = tpu.matmul %0, %1, %cst {dimension_numbers = #tpu.dot_dimension_numbers<[1], [0], [0], [1], [0, 0, 1, 1], [], []>} : vector<3x72xbf16>, vector<72x256xbf16>, vector<3x256xf32> -> vector<3x256xf32>
    %c0_3 = arith.constant 0 : index
    %c0_4 = arith.constant 0 : index
    %3 = vector.load %arg3[%c0_3, %c0_4] : memref<3x1xf32, #tpu.memory_space<vmem>>, vector<3x1xf32>
    %4 = vector.broadcast %3 : vector<3x1xf32> to vector<3x256xf32>
    %5 = arith.addf %2, %4 : vector<3x256xf32>
    %c0_5 = arith.constant 0 : index
    %c0_6 = arith.constant 0 : index
    %6 = vector.load %arg4[%c0_5, %c0_6] : memref<3x256xf32, #tpu.memory_space<vmem>>, vector<3x256xf32>
    tpu.vector_store %arg4[%c0_5, %c0_6], %5 {strides = array<i32>} : memref<3x256xf32, #tpu.memory_space<vmem>>, vector<3x256xf32>,
    return
  }
  func.func @transform_0(%arg0: i32) -> (i32, i32) {
    %c0_i32 = arith.constant 0 : i32
    %c0_i32_0 = arith.constant 0 : i32
    %c0_i32_1 = arith.constant 0 : i32
    return %c0_i32, %c0_i32_0 : i32, i32
  }
  func.func @transform_1(%arg0: i32) -> (i32, i32) {
    %c0_i32 = arith.constant 0 : i32
    %c0_i32_0 = arith.constant 0 : i32
    return %c0_i32, %arg0 : i32, i32
  }
  func.func @transform_2(%arg0: i32) -> (i32, i32) {
    %c0_i32 = arith.constant 0 : i32
    %c0_i32_0 = arith.constant 0 : i32
    %c0_i32_1 = arith.constant 0 : i32
    return %c0_i32, %c0_i32_0 : i32, i32
  }
  func.func @transform_3(%arg0: i32) -> (i32, i32) {
    %c0_i32 = arith.constant 0 : i32
    %c0_i32_0 = arith.constant 0 : i32
    return %c0_i32, %arg0 : i32, i32
  }
}

module attributes {stable_mosaic.version = 11 : i64} {
  func.func @_matmul_bias_kernel(%arg0: i32, %arg1: memref<3x32xbf16, #tpu.memory_space<vmem>>, %arg2: memref<32x256xbf16, #tpu.memory_space<vmem>>, %arg3: memref<3x1xf32, #tpu.memory_space<vmem>>, %arg4: memref<3x256xf32, #tpu.memory_space<vmem>>) attributes {dimension_semantics = [#tpu.dimension_semantics<parallel>], iteration_bounds = array<i64: 2>, scalar_prefetch = 0 : i64, scratch_operands = 0 : i64, tpu.core_type = #tpu.core_type<tc>, window_params = [{pipeline_mode = #tpu.pipeline_mode<synchronous>, transform_indices = @transform_0, window_bounds = array<i64: 3, 32>}, {transform_indices = @transform_1, window_bounds = array<i64: 32, 256>}, {pipeline_mode = #tpu.pipeline_mode<synchronous>, transform_indices = @transform_2, window_bounds = array<i64: 3, 1>}, {transform_indices = @transform_3, window_bounds = array<i64: 3, 256>}]} {
    %c0 = arith.constant 0 : index
    %c0_0 = arith.constant 0 : index
    %0 = vector.load %arg1[%c0, %c0_0] : memref<3x32xbf16, #tpu.memory_space<vmem>>, vector<3x32xbf16>
    %c0_1 = arith.constant 0 : index
    %c0_2 = arith.constant 0 : index
    %1 = vector.load %arg2[%c0_1, %c0_2] : memref<32x256xbf16, #tpu.memory_space<vmem>>, vector<32x256xbf16>
    %cst = arith.constant dense<0.000000e+00> : vector<3x256xf32>
    %2 = tpu.matmul %0, %1, %cst {dimension_numbers = #tpu.dot_dimension_numbers<[1], [0], [0], [1], [0, 0, 1, 1], [], []>} : vector<3x32xbf16>, vector<32x256xbf16>, vector<3x256xf32> -> vector<3x256xf32>
    %c0_3 = arith.constant 0 : index
    %c0_4 = arith.constant 0 : index
    %3 = vector.load %arg3[%c0_3, %c0_4] : memref<3x1xf32, #tpu.memory_space<vmem>>, vector<3x1xf32>
    %4 = vector.broadcast %3 : vector<3x1xf32> to vector<3x256xf32>
    %5 = arith.addf %2, %4 : vector<3x256xf32>
    %c0_5 = arith.constant 0 : index
    %c0_6 = arith.constant 0 : index
    %6 = vector.load %arg4[%c0_5, %c0_6] : memref<3x256xf32, #tpu.memory_space<vmem>>, vector<3x256xf32>
    tpu.vector_store %arg4[%c0_5, %c0_6], %5 {strides = array<i32>} : memref<3x256xf32, #tpu.memory_space<vmem>>, vector<3x256xf32>,
    return
  }
  func.func @transform_0(%arg0: i32) -> (i32, i32) {
    %c0_i32 = arith.constant 0 : i32
    %c0_i32_0 = arith.constant 0 : i32
    %c0_i32_1 = arith.constant 0 : i32
    return %c0_i32, %c0_i32_0 : i32, i32
  }
  func.func @transform_1(%arg0: i32) -> (i32, i32) {
    %c0_i32 = arith.constant 0 : i32
    %c0_i32_0 = arith.constant 0 : i32
    return %c0_i32, %arg0 : i32, i32
  }
  func.func @transform_2(%arg0: i32) -> (i32, i32) {
    %c0_i32 = arith.constant 0 : i32
    %c0_i32_0 = arith.constant 0 : i32
    %c0_i32_1 = arith.constant 0 : i32
    return %c0_i32, %c0_i32_0 : i32, i32
  }
  func.func @transform_3(%arg0: i32) -> (i32, i32) {
    %c0_i32 = arith.constant 0 : i32
    %c0_i32_0 = arith.constant 0 : i32
    return %c0_i32, %arg0 : i32, i32
  }
}

</mosaic_0001>

<bundles_post_ra>
// kernel: forward.30
= control target key start
LH: loop header
LB: loop body
LE: loop exit
PB: predicated region body
PF: predicated region fallthrough
CT: control target
= control target key end

     0   :  { %s752_s18 = smov 0   ;;  %s754_s19 = smov 0   ;;  %s816_s0 = inlined_call_operand.vmem [shape: bf16[8,27], index: 0, kind: input, shape index: {}]   ;;  %s817_s1 = inlined_call_operand.vmem [shape: bf16[27,2048], index: 1, kind: input, shape index: {}]   ;;  %s818_s2 = inlined_call_operand.vmem [shape: f32[8,1], index: 2, kind: input, shape index: {}]   ;;  %s819_s3 = inlined_call_operand.vmem [shape: bf16[8,8], index: 3, kind: input, shape index: {}]   ;;  %s820_s4 = inlined_call_operand.vmem [shape: f32[8,1], index: 4, kind: input, shape index: {}]   ;;  %s821_s5 = inlined_call_operand.vmem [shape: bf16[8,2048], index: 5, kind: output, shape index: {}]  }
   0x1   :  { %s756_s20 = smov 0  }
   0x2 LB: > { %s617_s21 = sadd.s32 4294967295, %s718_s20   ;;  %s769_s22 = sadd.s32 1, %s718_s20   ;;  %s718_s20 = sphi %s756_s20, %s824_s20   ;;  %s714_s19 = sphi %s754_s19, %s823_s19   ;;  %s710_s18 = sphi %s752_s18, %s822_s18  }
   0x3   : > { %s40_s23 = ssub.s32 %s718_s20, %s769_s22  ;;  %s43_s24 = sadd.s32 1, %s714_s19 }
   0x4   : > { %p41_p0 = scmp.eq.s32.totalorder %s40_s23, 0  ;;  %p50_p1 = scmp.ne.s32.totalorder %s714_s19, %s710_s18 }
   0x5   : > { %p51_p2 = scmp.eq.s32.totalorder %s718_s20, 0  ;;  %p620_p4 = scmp.ge.s32.totalorder %s718_s20, 4 }
   0x6   : > { %s778_s25 = scalar_select %p41_p0, %s714_s19, %s43_s24  }
   0x7   : > { %p52_p3 = por %p51_p2, %p50_p1  ;;  %177 = sbr.rel (%p620_p4) target bundleno = 22 (0x16), region = 32 }
   0xe   : > { %180 = sbr.rel (!%p52_p3) target bundleno = 22 (0x16), region = 36  ;;  %s182_s26 = sand.u32 (%p52_p3), 1, %s714_s19  }
   0xf   : > { %s646_s27 = sshll.u32 (%p52_p3), %s718_s20, 4  ;;  %s621_s28 = sshll.u32 (%p52_p3), %s182_s26, 6 }
  0x10   : > { %s187_s6 = scalar_lea.vmem (%p52_p3), %s817_s1, %s646_s27  ;;  %s184_s7 = scalar_lea.vmem (%p52_p3), [#allocation2], %s621_s28 }
  0x11   : > { %v200_v0 = vld [vmem:[%s187_s6] sm:$0xff] (%p52_p3)  ;;  %v202_v1 = vld [vmem:[%s187_s6 + $0x8] sm:$0xff] (%p52_p3) }
  0x12   : > { %v204_v2 = vld [vmem:[%s187_s6 + $0x40] sm:$0xff] (%p52_p3)  ;;  %201 = vst [vmem:[%s184_s7] sm:$0xff] (%p52_p3), %v200_v0  ;;  %203 = vst [vmem:[%s184_s7 + $0x8] sm:$0xff] (%p52_p3), %v202_v1  ;;  %v206_v3 = vld [vmem:[%s187_s6 + $0x48] sm:$0xff] (%p52_p3) }
  0x13   : > { %205 = vst [vmem:[%s184_s7 + $0x10] sm:$0xff] (%p52_p3), %v204_v2  ;;  %v208_v4 = vld [vmem:[%s187_s6 + $0x80] sm:$0xff] (%p52_p3)  ;;  %v210_v5 = vld [vmem:[%s187_s6 + $0x88] sm:$0xff] (%p52_p3)  ;;  %207 = vst [vmem:[%s184_s7 + $0x18] sm:$0xff] (%p52_p3), %v206_v3 }
  0x14   : > { %209 = vst [vmem:[%s184_s7 + $0x20] sm:$0xff] (%p52_p3), %v208_v4  ;;  %211 = vst [vmem:[%s184_s7 + $0x28] sm:$0xff] (%p52_p3), %v210_v5  ;;  %v212_v6 = vld [vmem:[%s187_s6 + $0xc0] sm:$0xff] (%p52_p3)  ;;  %v214_v7 = vld [vmem:[%s187_s6 + $0xc8] sm:$0xff] (%p52_p3) }
  0x15   : > { %213 = vst [vmem:[%s184_s7 + $0x30] sm:$0xff] %v212_v6  ;;  %215 = vst [vmem:[%s184_s7 + $0x38] sm:$0xff] %v214_v7 }
  0x16 PF: > { %p624_p5 = scmp.ge.s32.totalorder %s718_s20, 1  ;;  %p220_p6 = scmp.lt.s32.totalorder %s718_s20, 5 }
  0x18   : > { %p221_p7 = pnand %p624_p5, %p220_p6 }
  0x19   : > { %s227_s8 = sand.u32 (!%p221_p7), 1, %s710_s18   ;;  %vm317_vm0 = vcmask (!%p221_p7), 1044480   ;;  %v271_v8 = vld [vmem:[%s818_s2] sm:$0xff] (!%p221_p7)  ;;  %v720_v9 = vmov (!%p221_p7), 0   ;;  %vm318_vm1 = vcmask (!%p221_p7), 1045504   ;;  %v721_v10 = vmov (!%p221_p7), 65535  }
  0x1a   : > { %224 = sbr.rel (%p221_p7) target bundleno = 493 (0x1ed), region = 59  ;;  %s625_s11 = sshll.u32 (!%p221_p7), %s227_s8, 6  ;;  %365 = vmatprep.mubr.bf16.mxu0 (!%p221_p7), %v720_v9  ;;  %406 = vmatprep.mubr.bf16.mxu1 (!%p221_p7), %v720_v9  ;;  %v319_v11 = vsel (!%p221_p7), %vm317_vm0, 4294967295, %v721_v10  ;;  %v424_v13 = vld [vmem:[%s820_s4] sm:$0xff] (!%p221_p7)  ;;  %vm313_vm2 = vcmask (!%p221_p7), 220160   ;;  %vm434_vm3 = vcmask (!%p221_p7), 1043456  }
  0x1b   : > { %675 = vset.pattern.permute.xlu0 (!%p221_p7), %v720_v9  ;;  %s229_s12 = scalar_lea.vmem (!%p221_p7), [#allocation2], %s625_s11  ;;  %v320_v17 = vsel (!%p221_p7), %vm318_vm1, %v319_v11, 0  ;;  %v262_v26 = vld [vmem:[%s816_s0] sm:$0xf] (!%p221_p7)  ;;  %vm430_vm4 = vcmask (!%p221_p7), 64512   ;;  %s626_s23 = sshll.u32 (!%p221_p7), %s617_s21, 2 }
  0x1c   : > { %v676_v12 = vld [vmem:[%s229_s12 + $0x4] ss:$16 sps:$4 sm:$0xff] (!%p221_p7)   ;;  %274 = vperm.xlu0 (!%p221_p7), %675, %v271_v8   ;;  %v678_v14 = vld [vmem:[%s229_s12 + $0xc] ss:$16 sps:$4 sm:$0xff] (!%p221_p7)   ;;  %v680_v15 = vld [vmem:[%s229_s12] ss:$16 sps:$4 sm:$0xff] (!%p221_p7)  }
  0x1d   : > { %333 = vmatprep.subr.bf16.mxu0 (!%p221_p7), %v676_v12  ;;  %v681_v16 = vld [vmem:[%s229_s12 + $0x8] ss:$16 sps:$4 sm:$0xff] (!%p221_p7)   ;;  %374 = vmatprep.subr.bf16.mxu1 (!%p221_p7), %v678_v14  ;;  %v682_v18 = vld [vmem:[%s229_s12 + $0x24] ss:$16 sps:$4 sm:$0x3f] (!%p221_p7)   ;;  %p256_p8 = scmp.lt.s32.totalorder (!%p221_p7), %s626_s23, 15 }
  0x1e   : > { %334 = vmatpush1.bf16.msra.mxu0 (!%p221_p7), %v680_v15  ;;  %375 = vmatpush1.bf16.msra.mxu1 (!%p221_p7), %v681_v16  ;;  %v684_v19 = vld [vmem:[%s229_s12 + $0x2c] ss:$16 sps:$4 sm:$0x3f] (!%p221_p7)   ;;  %v325_v20 = vand.u32 (!%p221_p7), %v682_v18, %v320_v17  ;;  %v686_v21 = vld [vmem:[%s229_s12 + $0x20] ss:$16 sps:$4 sm:$0x3f] (!%p221_p7)  }
  0x1f   : > { %v687_v22 = vld [vmem:[%s229_s12 + $0x28] ss:$16 sps:$4 sm:$0x3f] (!%p221_p7)   ;;  %v331_v23 = vand.u32 (!%p221_p7), %v684_v19, %v320_v17  ;;  %v322_v24 = vand.u32 (!%p221_p7), %v686_v21, %v320_v17  ;;  %v423_v50 = vld [vmem:[%s819_s3] sm:$0xf] (!%p221_p7) }
  0x20   : > { %427 = vperm.xlu0 (!%p221_p7), %675, %v424_v13   ;;  %335 = vmatprep.subr.bf16.mxu0 (!%p221_p7), %v325_v20  ;;  %v328_v25 = vand.u32 (!%p221_p7), %v687_v22, %v320_v17 }
  0x21   : > { %376 = vmatprep.subr.bf16.mxu1 %v331_v23  ;;  %s826_s23 = smov (!%p256_p8, %s626_s23), 15 }
  0x22   : > { %336 = vmatpush1.bf16.msra.mxu0 %v322_v24  ;;  %377 = vmatpush1.bf16.msra.mxu1 %v328_v25  ;;  %s627_s24 = sshll.u32 %s826_s23, 2 }
  0x23   : > { %s259_s20 = scalar_lea.vmem %s821_s5, %s627_s24 }
  0x25   : > { %636 = vmatmul.mubr.msk.bf16.vlgmr.msra.gmra.mrb[0].mxu0 %vm313_vm2, %v262_v26  ;;  %637 = vmatmul.mubr.msk.bf16.vlgmr.msra.gmra.mrb[0].mxu1 %vm313_vm2, %v262_v26 }
  0x26   : > { %479 = vmatprep.mubr.bf16.mxu0 %v720_v9  ;;  %520 = vmatprep.mubr.bf16.mxu1 %v720_v9 }
  0x9b   : > { %v275_v27 = vpop.permute.xlu0 %274 }
  0x9f   : > { %v428_v51 = vpop.permute.xlu0 %427 }
  0xf8   : > { %v367_v28 = vpop.f32.mrb[0].mxu0  ;;  %v408_v29 = vpop.f32.mrb[0].mxu1 }
  0xf9   : > { %v368_v30 = vadd.f32 %v367_v28, %v275_v27  ;;  %v409_v31 = vadd.f32 %v408_v29, %v275_v27  ;;  %v369_v32 = vpop.f32.mrb[1].mxu0  ;;  %v410_v33 = vpop.f32.mrb[1].mxu1 }
  0xfa   : > { %v370_v34 = vadd.f32 %v369_v32, %v275_v27  ;;  %v411_v35 = vadd.f32 %v410_v33, %v275_v27  ;;  %v371_v36 = vpop.f32.mrb[2].mxu0  ;;  %v412_v37 = vpop.f32.mrb[2].mxu1 }
  0xfb   : > { %v415_v38 = vmul.f32 %v368_v30, %v368_v30  ;;  %v417_v39 = vmul.f32 %v409_v31, %v409_v31  ;;  %v372_v40 = vpop.f32.mrb[3].mxu0  ;;  %v413_v41 = vpop.f32.mrb[3].mxu1 }
  0xfc   : > { %v416_v42 = vmul.f32 %v370_v34, %v370_v34  ;;  %v418_v43 = vmul.f32 %v411_v35, %v411_v35 }
  0xfd   : > { %v419_v44 = vpack.c.bf16 %v415_v38, %v415_v38  ;;  %v421_v45 = vpack.c.bf16 %v417_v39, %v417_v39 }
  0xfe   : > { %v420_v46 = vpack.c.bf16 %v416_v42, %v416_v42  ;;  %v422_v47 = vpack.c.bf16 %v418_v43, %v418_v43 }
  0xff   : > { %v436_v48 = vsel %vm434_vm3, %v419_v44, 0  ;;  %v442_v49 = vsel %vm434_vm3, %v421_v45, 0 }
 0x100   : > { %638 = vmatprep.subr.msk.bf16.mxu0 %vm434_vm3, %v420_v46  ;;  %640 = vmatprep.subr.msk.bf16.mxu1 %vm434_vm3, %v422_v47 }
 0x101   : > { %448 = vmatpush1.bf16.msra.mxu0 %v436_v48  ;;  %489 = vmatpush1.bf16.msra.mxu1 %v442_v49 }
 0x104   : > { %639 = vmatmul.mubr.msk.bf16.vlgmr.msra.gmra.mrb[4].mxu0 %vm430_vm4, %v423_v50  ;;  %641 = vmatmul.mubr.msk.bf16.vlgmr.msra.gmra.mrb[4].mxu1 %vm430_vm4, %v423_v50 }
 0x1d7   : > { %v481_v52 = vpop.f32.mrb[4].mxu0  ;;  %v522_v53 = vpop.f32.mrb[4].mxu1 }
 0x1d8   : > { %v482_v54 = vadd.f32 %v481_v52, %v428_v51  ;;  %v523_v55 = vadd.f32 %v522_v53, %v428_v51  ;;  %v483_v56 = vpop.f32.mrb[5].mxu0  ;;  %v524_v57 = vpop.f32.mrb[5].mxu1 }
 0x1d9   : > { %v484_v58 = vadd.f32 %v483_v56, %v428_v51  ;;  %v525_v59 = vadd.f32 %v524_v57, %v428_v51  ;;  %v485_v60 = vpop.f32.mrb[6].mxu0  ;;  %v526_v61 = vpop.f32.mrb[6].mxu1 }
 0x1da   : > { %688 = vrsqrt.f32 %v482_v54  ;;  %v486_v62 = vpop.f32.mrb[7].mxu0  ;;  %v527_v63 = vpop.f32.mrb[7].mxu1 }
 0x1db   : > { %690 = vrsqrt.f32 %v523_v55 }
 0x1dc   : > { %692 = vrsqrt.f32 %v484_v58 }
 0x1dd   : > { %694 = vrsqrt.f32 %v525_v59 }
 0x1e4   : > { %v689_v0 = vpop.eup %688 }
 0x1e5   : > { %v691_v1 = vpop.eup %690  ;;  %v533_v2 = vmul.f32 %v689_v0, %v368_v30 }
 0x1e6   : > { %v693_v3 = vpop.eup %692  ;;  %v535_v4 = vmul.f32 %v691_v1, %v409_v31 }
 0x1e7   : > { %v695_v5 = vpop.eup %694  ;;  %v534_v6 = vmul.f32 %v693_v3, %v370_v34 }
 0x1e8   : > { %v536_v7 = vmul.f32 %v695_v5, %v411_v35 }
 0x1e9   : > { %v647_v8 = vpack.c.bf16 %v534_v6, %v533_v2 }
 0x1ea   : > { %v648_v9 = vpack.c.bf16 %v536_v7, %v535_v4 }
 0x1eb   : > { %553 = vst [vmem:[%s259_s20] sm:$0xff] %v647_v8 }
 0x1ec   : > { %554 = vst [vmem:[%s259_s20 + $0x8] sm:$0xff] %v648_v9 }
 0x1ed PF: > { %p12_p9 = scmp.ge.s32.totalorder %s769_s22, 6   ;;  %s822_s18 = smov %s714_s19 }
 0x1ee   : > { %s823_s19 = smov %s778_s25  ;;  %s824_s20 = smov %s769_s22 }
 0x1ef   :  { %14 = sbr.rel (!%p12_p9) target bundleno = 2 (0x2), region = 98 }

// kernel: forward.31
= control target key start
LH: loop header
LB: loop body
LE: loop exit
PB: predicated region body
PF: predicated region fallthrough
CT: control target
= control target key end

     0   :  { %s884_s18 = smov 0   ;;  %s886_s19 = smov 0   ;;  %s1039_s0 = inlined_call_operand.vmem [shape: bf16[8,200], index: 0, kind: input, shape index: {}]   ;;  %s1040_s1 = inlined_call_operand.vmem [shape: bf16[200,512], index: 1, kind: input, shape index: {}]   ;;  %s1041_s2 = inlined_call_operand.vmem [shape: f32[8,1], index: 2, kind: input, shape index: {}]   ;;  %s1042_s3 = inlined_call_operand.vmem [shape: bf16[8,8], index: 3, kind: input, shape index: {}]   ;;  %s1043_s4 = inlined_call_operand.vmem [shape: f32[8,1], index: 4, kind: input, shape index: {}]   ;;  %s1044_s5 = inlined_call_operand.vmem [shape: bf16[8,512], index: 5, kind: output, shape index: {}]  }
   0x1   :  { %s888_s20 = smov 0  }
   0x2 LB: > { %s711_s21 = sadd.s32 4294967295, %s851_s20   ;;  %s901_s22 = sadd.s32 1, %s851_s20   ;;  %s851_s20 = sphi %s888_s20, %s1047_s20   ;;  %s847_s19 = sphi %s886_s19, %s1046_s19   ;;  %s843_s18 = sphi %s884_s18, %s1045_s18  }
   0x3   : > { %s40_s23 = ssub.s32 %s851_s20, %s901_s22  ;;  %s43_s24 = sadd.s32 1, %s847_s19 }
   0x4   : > { %p41_p0 = scmp.eq.s32.totalorder %s40_s23, 0  ;;  %p50_p1 = scmp.ne.s32.totalorder %s847_s19, %s843_s18 }
   0x5   : > { %p51_p2 = scmp.eq.s32.totalorder %s851_s20, 0  ;;  %p714_p4 = scmp.ge.s32.totalorder %s851_s20, 2 }
   0x6   : > { %s910_s25 = scalar_select %p41_p0, %s847_s19, %s43_s24  }
   0x7   : > { %p52_p3 = por %p51_p2, %p50_p1  ;;  %177 = sbr.rel (%p714_p4) target bundleno = 31 (0x1f), region = 32 }
   0xe   : > { %180 = sbr.rel (!%p52_p3) target bundleno = 31 (0x1f), region = 36  ;;  %s182_s26 = sand.u32 (%p52_p3), 1, %s847_s19  }
   0xf   : > { %s755_s27 = sshll.u32 (%p52_p3), %s851_s20, 3  ;;  %s757_s28 = smul.u32 (%p52_p3), 200, %s182_s26 }
  0x10   : > { %s918_s6 = scalar_lea.vmem (%p52_p3), %s1040_s1, %s755_s27 }
  0x11   : > { %v263_v0 = vld [vmem:[%s918_s6] sm:$0xff] (%p52_p3)  ;;  %v265_v1 = vld [vmem:[%s918_s6 + $0x10] sm:$0xff] (%p52_p3)  ;;  %s926_s7 = scalar_lea.vmem (%p52_p3), [#allocation2], %s757_s28 }
  0x12   : > { %v267_v2 = vld [vmem:[%s918_s6 + $0x20] sm:$0xff] (%p52_p3)  ;;  %v269_v3 = vld [vmem:[%s918_s6 + $0x30] sm:$0xff] (%p52_p3)  ;;  %264 = vst [vmem:[%s926_s7] sm:$0xff] (%p52_p3), %v263_v0  ;;  %266 = vst [vmem:[%s926_s7 + $0x8] sm:$0xff] (%p52_p3), %v265_v1 }
  0x13   : > { %v271_v4 = vld [vmem:[%s918_s6 + $0x40] sm:$0xff] (%p52_p3)  ;;  %v273_v5 = vld [vmem:[%s918_s6 + $0x50] sm:$0xff] (%p52_p3)  ;;  %268 = vst [vmem:[%s926_s7 + $0x10] sm:$0xff] (%p52_p3), %v267_v2  ;;  %270 = vst [vmem:[%s926_s7 + $0x18] sm:$0xff] (%p52_p3), %v269_v3 }
  0x14   : > { %272 = vst [vmem:[%s926_s7 + $0x20] sm:$0xff] (%p52_p3), %v271_v4  ;;  %274 = vst [vmem:[%s926_s7 + $0x28] sm:$0xff] (%p52_p3), %v273_v5  ;;  %v275_v6 = vld [vmem:[%s918_s6 + $0x60] sm:$0xff] (%p52_p3)  ;;  %v277_v7 = vld [vmem:[%s918_s6 + $0x70] sm:$0xff] (%p52_p3) }
  0x15   : > { %v279_v8 = vld [vmem:[%s918_s6 + $0x80] sm:$0xff]  ;;  %276 = vst [vmem:[%s926_s7 + $0x30] sm:$0xff] %v275_v6  ;;  %278 = vst [vmem:[%s926_s7 + $0x38] sm:$0xff] %v277_v7  ;;  %v281_v9 = vld [vmem:[%s918_s6 + $0x90] sm:$0xff] }
  0x16   : > { %280 = vst [vmem:[%s926_s7 + $0x40] sm:$0xff] %v279_v8  ;;  %v283_v10 = vld [vmem:[%s918_s6 + $0xa0] sm:$0xff]  ;;  %v285_v11 = vld [vmem:[%s918_s6 + $0xb0] sm:$0xff]  ;;  %282 = vst [vmem:[%s926_s7 + $0x48] sm:$0xff] %v281_v9 }
  0x17   : > { %284 = vst [vmem:[%s926_s7 + $0x50] sm:$0xff] %v283_v10  ;;  %286 = vst [vmem:[%s926_s7 + $0x58] sm:$0xff] %v285_v11  ;;  %v287_v12 = vld [vmem:[%s918_s6 + $0xc0] sm:$0xff]  ;;  %v289_v13 = vld [vmem:[%s918_s6 + $0xd0] sm:$0xff] }
  0x18   : > { %v291_v14 = vld [vmem:[%s918_s6 + $0xe0] sm:$0xff]  ;;  %288 = vst [vmem:[%s926_s7 + $0x60] sm:$0xff] %v287_v12  ;;  %290 = vst [vmem:[%s926_s7 + $0x68] sm:$0xff] %v289_v13  ;;  %v293_v15 = vld [vmem:[%s918_s6 + $0xf0] sm:$0xff] }
  0x19   : > { %292 = vst [vmem:[%s926_s7 + $0x70] sm:$0xff] %v291_v14  ;;  %v295_v16 = vld [vmem:[%s918_s6 + $0x100] sm:$0xff]  ;;  %v297_v17 = vld [vmem:[%s918_s6 + $0x110] sm:$0xff]  ;;  %294 = vst [vmem:[%s926_s7 + $0x78] sm:$0xff] %v293_v15 }
  0x1a   : > { %296 = vst [vmem:[%s926_s7 + $0x80] sm:$0xff] %v295_v16  ;;  %298 = vst [vmem:[%s926_s7 + $0x88] sm:$0xff] %v297_v17  ;;  %v299_v18 = vld [vmem:[%s918_s6 + $0x120] sm:$0xff]  ;;  %v301_v19 = vld [vmem:[%s918_s6 + $0x130] sm:$0xff] }
  0x1b   : > { %v303_v20 = vld [vmem:[%s918_s6 + $0x140] sm:$0xff]  ;;  %300 = vst [vmem:[%s926_s7 + $0x90] sm:$0xff] %v299_v18  ;;  %302 = vst [vmem:[%s926_s7 + $0x98] sm:$0xff] %v301_v19  ;;  %v305_v21 = vld [vmem:[%s918_s6 + $0x150] sm:$0xff] }
  0x1c   : > { %304 = vst [vmem:[%s926_s7 + $0xa0] sm:$0xff] %v303_v20  ;;  %v307_v22 = vld [vmem:[%s918_s6 + $0x160] sm:$0xff]  ;;  %v309_v23 = vld [vmem:[%s918_s6 + $0x170] sm:$0xff]  ;;  %306 = vst [vmem:[%s926_s7 + $0xa8] sm:$0xff] %v305_v21 }
  0x1d   : > { %308 = vst [vmem:[%s926_s7 + $0xb0] sm:$0xff] %v307_v22  ;;  %310 = vst [vmem:[%s926_s7 + $0xb8] sm:$0xff] %v309_v23  ;;  %v311_v24 = vld [vmem:[%s918_s6 + $0x180] sm:$0xff] }
  0x1e   : > { %312 = vst [vmem:[%s926_s7 + $0xc0] sm:$0xff] %v311_v24 }
  0x1f PF: > { %p717_p5 = scmp.ge.s32.totalorder %s851_s20, 1  ;;  %p317_p6 = scmp.lt.s32.totalorder %s851_s20, 3 }
  0x21   : > { %p318_p7 = pnand %p717_p5, %p317_p6 }
  0x22   : > { %s324_s8 = sand.u32 (!%p318_p7), 1, %s843_s18   ;;  %v978_v25 = vld [vmem:[%s1039_s0] sm:$0xff] (!%p318_p7)  ;;  %vm522_vm0 = vcmask (!%p318_p7), 588800   ;;  %v853_v28 = vmov (!%p318_p7), 0   ;;  %vm526_vm1 = vcmask (!%p318_p7), 1043456   ;;  %vm585_vm2 = vcmask (!%p318_p7), 64512  }
  0x23   : > { %321 = sbr.rel (%p318_p7) target bundleno = 546 (0x222), region = 74  ;;  %v385_v26 = vld [vmem:[%s1041_s2] sm:$0xff] (!%p318_p7)  ;;  %v721_v27 = vcombine.high (!%p318_p7), %v978_v25, %v978_v25  ;;  %784 = vset.pattern.permute.xlu0 (!%p318_p7), %v853_v28  ;;  %627 = vmatprep.mubr.bf16.mxu1 (!%p318_p7), %v853_v28  ;;  %v720_v58 = vcombine.low (!%p318_p7), %v978_v25, %v978_v25  ;;  %s718_s23 = sshll.u32 (!%p318_p7), %s711_s21, 1 }
  0x24   : > { %s758_s13 = smul.u32 (!%p318_p7), 200, %s324_s8  ;;  %388 = vperm.xlu0 (!%p318_p7), %784, %v385_v26   ;;  %v579_v29 = vld [vmem:[%s1043_s4] sm:$0xff] (!%p318_p7)  ;;  %p353_p8 = scmp.lt.s32.totalorder (!%p318_p7), %s718_s23, 3 }
  0x25   : > { %749 = vmatprep.mubr.msk.bf16.mxu0 (!%p318_p7), %vm522_vm0, %v721_v27  ;;  %v578_v7 = vld [vmem:[%s1042_s3] sm:$0xf] (!%p318_p7) }
  0x26   : > { %s988_s16 = scalar_lea.vmem (!%p318_p7), [#allocation2], %s758_s13 }
  0x27   : > { %v785_v30 = vld [vmem:[%s988_s16 + $0x4] ss:$8 sps:$4 sm:$0xff] (!%p318_p7)   ;;  %v787_v31 = vld [vmem:[%s988_s16] ss:$8 sps:$4 sm:$0xff] (!%p318_p7)   ;;  %v788_v32 = vld [vmem:[%s988_s16 + $0x14] ss:$8 sps:$4 sm:$0xff] (!%p318_p7)  }
  0x28   : > { %533 = vmatprep.subr.bf16.mxu0 (!%p318_p7), %v785_v30  ;;  %582 = vperm.xlu0 (!%p318_p7), %784, %v579_v29   ;;  %v790_v33 = vld [vmem:[%s988_s16 + $0x10] ss:$8 sps:$4 sm:$0xff] (!%p318_p7)   ;;  %v791_v34 = vld [vmem:[%s988_s16 + $0x24] ss:$8 sps:$4 sm:$0xff] (!%p318_p7)   ;;  %v793_v35 = vld [vmem:[%s988_s16 + $0x20] ss:$8 sps:$4 sm:$0xff] (!%p318_p7)  }
  0x29   : > { %534 = vmatpush1.bf16.msra.mxu0 (!%p318_p7), %v787_v31  ;;  %v794_v36 = vld [vmem:[%s988_s16 + $0x34] ss:$8 sps:$4 sm:$0xff] (!%p318_p7)   ;;  %v796_v37 = vld [vmem:[%s988_s16 + $0x30] ss:$8 sps:$4 sm:$0xff] (!%p318_p7)   ;;  %v797_v38 = vld [vmem:[%s988_s16 + $0x44] ss:$8 sps:$4 sm:$0xff] (!%p318_p7)  }
  0x2a   : > { %535 = vmatprep.subr.bf16.mxu0 %v788_v32  ;;  %v799_v39 = vld [vmem:[%s988_s16 + $0x40] ss:$8 sps:$4 sm:$0xff]   ;;  %v800_v40 = vld [vmem:[%s988_s16 + $0x54] ss:$8 sps:$4 sm:$0xff]   ;;  %v802_v41 = vld [vmem:[%s988_s16 + $0x50] ss:$8 sps:$4 sm:$0xff]  }
  0x2b   : > { %v803_v42 = vld [vmem:[%s988_s16 + $0x64] ss:$8 sps:$4 sm:$0xff]   ;;  %v805_v43 = vld [vmem:[%s988_s16 + $0x60] ss:$8 sps:$4 sm:$0xff]   ;;  %v806_v44 = vld [vmem:[%s988_s16 + $0x74] ss:$8 sps:$4 sm:$0xff]  }
  0x2c   : > { %v808_v45 = vld [vmem:[%s988_s16 + $0x70] ss:$8 sps:$4 sm:$0xff]   ;;  %v809_v46 = vld [vmem:[%s988_s16 + $0x84] ss:$8 sps:$4 sm:$0xff]   ;;  %v811_v47 = vld [vmem:[%s988_s16 + $0x80] ss:$8 sps:$4 sm:$0xff]  }
  0x2d   : > { %536 = vmatpush1.bf16.msra.mxu0 %v790_v33  ;;  %v812_v48 = vld [vmem:[%s988_s16 + $0x94] ss:$8 sps:$4 sm:$0xff]   ;;  %v814_v49 = vld [vmem:[%s988_s16 + $0x90] ss:$8 sps:$4 sm:$0xff]   ;;  %v815_v50 = vld [vmem:[%s988_s16 + $0xa4] ss:$8 sps:$4 sm:$0xff]  }
  0x2e   : > { %537 = vmatprep.subr.bf16.mxu0 %v791_v34  ;;  %v817_v51 = vld [vmem:[%s988_s16 + $0xa0] ss:$8 sps:$4 sm:$0xff]   ;;  %v818_v52 = vld [vmem:[%s988_s16 + $0xb4] ss:$8 sps:$4 sm:$0xff]   ;;  %v820_v54 = vld [vmem:[%s988_s16 + $0xb0] ss:$8 sps:$4 sm:$0xff]  }
  0x2f   : > { %v384_v53 = vld [vmem:[%s988_s16 + $0xc0] sm:$0xff]  ;;  %s1049_s23 = smov (!%p353_p8, %s718_s23), 3 }
  0x30   : > { %v747_v55 = vcombine.high %v384_v53, %v384_v53  ;;  %v746_v56 = vcombine.low %v384_v53, %v384_v53  ;;  %s719_s24 = sshll.u32 %s1049_s23, 2 }
  0x31   : > { %538 = vmatpush1.bf16.msra.mxu0 %v793_v35  ;;  %s356_s28 = scalar_lea.vmem %s1044_s5, %s719_s24 }
  0x32   : > { %539 = vmatprep.subr.bf16.mxu0 %v794_v36  ;;  %v528_v57 = vsel %vm526_vm1, %v746_v56, 0 }
  0x35   : > { %540 = vmatpush1.bf16.msra.mxu0 %v796_v37 }
  0x36   : > { %541 = vmatprep.subr.bf16.mxu0 %v797_v38 }
  0x39   : > { %542 = vmatpush1.bf16.msra.mxu0 %v799_v39 }
  0x3a   : > { %543 = vmatprep.subr.bf16.mxu0 %v800_v40 }
  0x3d   : > { %544 = vmatpush1.bf16.msra.mxu0 %v802_v41 }
  0x3e   : > { %545 = vmatprep.subr.bf16.mxu0 %v803_v42 }
  0x41   : > { %546 = vmatpush1.bf16.msra.mxu0 %v805_v43 }
  0x42   : > { %547 = vmatprep.subr.bf16.mxu0 %v806_v44 }
  0x45   : > { %548 = vmatpush1.bf16.msra.mxu0 %v808_v45 }
  0x46   : > { %549 = vmatprep.subr.bf16.mxu0 %v809_v46 }
  0x49   : > { %550 = vmatpush1.bf16.msra.mxu0 %v811_v47 }
  0x4a   : > { %551 = vmatprep.subr.bf16.mxu0 %v812_v48 }
  0x4d   : > { %552 = vmatpush1.bf16.msra.mxu0 %v814_v49 }
  0x4e   : > { %553 = vmatprep.subr.bf16.mxu0 %v815_v50 }
  0x51   : > { %554 = vmatpush1.bf16.msra.mxu0 %v817_v51 }
  0x52   : > { %555 = vmatprep.subr.bf16.mxu0 %v818_v52 }
  0x55   : > { %556 = vmatpush1.bf16.msra.mxu0 %v820_v54 }
  0x56   : > { %748 = vmatprep.subr.msk.bf16.mxu0 %vm526_vm1, %v747_v55 }
  0x59   : > { %558 = vmatpush1.bf16.msra.mxu0 %v528_v57 }
  0x5c   : > { %566 = vmatmul.mubr.bf16.vlgmr.msra.gmra.mrb[0].mxu0 %v720_v58 }
  0xa3   : > { %v389_v59 = vpop.permute.xlu0 %388 }
  0xa7   : > { %v583_v8 = vpop.permute.xlu0 %582 }
 0x12f   : > { %v567_v60 = vpop.f32.mrb[0].mxu0 }
 0x130   : > { %v568_v61 = vadd.f32 %v567_v60, %v389_v59  ;;  %v569_v62 = vpop.f32.mrb[1].mxu0 }
 0x131   : > { %v570_v63 = vadd.f32 %v569_v62, %v389_v59  ;;  %v571_v0 = vpop.f32.mrb[2].mxu0 }
 0x132   : > { %v574_v1 = vmul.f32 %v568_v61, %v568_v61  ;;  %v572_v2 = vpop.f32.mrb[3].mxu0 }
 0x133   : > { %v575_v3 = vmul.f32 %v570_v63, %v570_v63 }
 0x134   : > { %v576_v4 = vpack.c.bf16 %v574_v1, %v574_v1 }
 0x135   : > { %v577_v5 = vpack.c.bf16 %v575_v3, %v575_v3 }
 0x136   : > { %v590_v6 = vsel %vm526_vm1, %v576_v4, 0 }
 0x137   : > { %750 = vmatprep.subr.msk.bf16.mxu1 %vm526_vm1, %v577_v5 }
 0x138   : > { %596 = vmatpush1.bf16.msra.mxu1 %v590_v6 }
 0x13b   : > { %751 = vmatmul.mubr.msk.bf16.vlgmr.msra.gmra.mrb[0].mxu1 %vm585_vm2, %v578_v7 }
 0x20e   : > { %v629_v9 = vpop.f32.mrb[0].mxu1 }
 0x20f   : > { %v630_v10 = vadd.f32 %v629_v9, %v583_v8  ;;  %v631_v11 = vpop.f32.mrb[1].mxu1 }
 0x210   : > { %v632_v12 = vadd.f32 %v631_v11, %v583_v8  ;;  %v633_v13 = vpop.f32.mrb[2].mxu1 }
 0x211   : > { %825 = vrsqrt.f32 %v630_v10  ;;  %v634_v14 = vpop.f32.mrb[3].mxu1 }
 0x212   : > { %827 = vrsqrt.f32 %v632_v12 }
 0x21b   : > { %v826_v15 = vpop.eup %825 }
 0x21c   : > { %v828_v16 = vpop.eup %827  ;;  %v638_v17 = vmul.f32 %v826_v15, %v568_v61 }
 0x21d   : > { %v639_v18 = vmul.f32 %v828_v16, %v570_v63 }
 0x21f   : > { %v756_v19 = vpack.c.bf16 %v639_v18, %v638_v17 }
 0x221   : > { %648 = vst [vmem:[%s356_s28] sm:$0xff] %v756_v19 }
 0x222 PF: > { %p12_p9 = scmp.ge.s32.totalorder %s901_s22, 4   ;;  %s1045_s18 = smov %s847_s19 }
 0x223   : > { %s1046_s19 = smov %s910_s25  ;;  %s1047_s20 = smov %s901_s22 }
 0x224   :  { %14 = sbr.rel (!%p12_p9) target bundleno = 2 (0x2), region = 113 }

// kernel: forward.32
= control target key start
LH: loop header
LB: loop body
LE: loop exit
PB: predicated region body
PF: predicated region fallthrough
CT: control target
= control target key end

     0   :  { %s779_s18 = smov 0   ;;  %s781_s19 = smov 0   ;;  %s916_s0 = inlined_call_operand.vmem [shape: bf16[8,200], index: 0, kind: input, shape index: {}]   ;;  %s917_s1 = inlined_call_operand.vmem [shape: bf16[200,256], index: 1, kind: input, shape index: {}]   ;;  %s918_s2 = inlined_call_operand.vmem [shape: f32[8,1], index: 2, kind: input, shape index: {}]   ;;  %s919_s3 = inlined_call_operand.vmem [shape: bf16[8,8], index: 3, kind: input, shape index: {}]   ;;  %s920_s4 = inlined_call_operand.vmem [shape: f32[8,1], index: 4, kind: input, shape index: {}]   ;;  %s921_s5 = inlined_call_operand.vmem [shape: bf16[8,256], index: 5, kind: output, shape index: {}]  }
   0x1   :  { %s783_s20 = smov 0  }
   0x2 LB: > { %s641_s21 = sadd.s32 4294967295, %s744_s20   ;;  %s796_s22 = sadd.s32 1, %s744_s20   ;;  %s744_s20 = sphi %s783_s20, %s924_s20   ;;  %s740_s19 = sphi %s781_s19, %s923_s19   ;;  %s736_s18 = sphi %s779_s18, %s922_s18  }
   0x3   : > { %s40_s23 = ssub.s32 %s744_s20, %s796_s22  ;;  %s43_s24 = sadd.s32 1, %s740_s19 }
   0x4   : > { %p41_p0 = scmp.eq.s32.totalorder %s40_s23, 0  ;;  %p50_p1 = scmp.ne.s32.totalorder %s740_s19, %s736_s18 }
   0x5   : > { %p51_p2 = scmp.eq.s32.totalorder %s744_s20, 0  ;;  %p644_p4 = scmp.ge.s32.totalorder %s744_s20, 2 }
   0x6   : > { %s805_s25 = scalar_select %p41_p0, %s740_s19, %s43_s24  }
   0x7   : > { %p52_p3 = por %p51_p2, %p50_p1  ;;  %177 = sbr.rel (%p644_p4) target bundleno = 35 (0x23), region = 32 }
   0xe   : > { %180 = sbr.rel (!%p52_p3) target bundleno = 35 (0x23), region = 36  ;;  %s182_s26 = sand.u32 (%p52_p3), 1, %s740_s19  }
   0xf   : > { %s645_s27 = sshll.u32 (%p52_p3), %s744_s20, 2  ;;  %s675_s28 = smul.u32 (%p52_p3), 100, %s182_s26 }
  0x10   : > { %s813_s6 = scalar_lea.vmem (%p52_p3), %s917_s1, %s645_s27 }
  0x11   : > { %v202_v0 = vld [vmem:[%s813_s6] sm:$0xf] (%p52_p3)  ;;  %v204_v1 = vld [vmem:[%s813_s6 + $0x8] sm:$0xf] (%p52_p3)  ;;  %v206_v2 = vld [vmem:[%s813_s6 + $0x10] sm:$0xf] (%p52_p3) }
  0x12   : > { %v208_v3 = vld [vmem:[%s813_s6 + $0x18] sm:$0xf] (%p52_p3)  ;;  %v210_v4 = vld [vmem:[%s813_s6 + $0x20] sm:$0xf] (%p52_p3)  ;;  %s820_s7 = scalar_lea.vmem (%p52_p3), [#allocation2], %s675_s28 }
  0x13   : > { %203 = vst [vmem:[%s820_s7] sm:$0xf] (%p52_p3), %v202_v0  ;;  %205 = vst [vmem:[%s820_s7 + $0x4] sm:$0xf] (%p52_p3), %v204_v1  ;;  %v212_v5 = vld [vmem:[%s813_s6 + $0x28] sm:$0xf] (%p52_p3) }
  0x14   : > { %207 = vst [vmem:[%s820_s7 + $0x8] sm:$0xf] (%p52_p3), %v206_v2  ;;  %209 = vst [vmem:[%s820_s7 + $0xc] sm:$0xf] (%p52_p3), %v208_v3  ;;  %v214_v6 = vld [vmem:[%s813_s6 + $0x30] sm:$0xf] (%p52_p3) }
  0x15   : > { %211 = vst [vmem:[%s820_s7 + $0x10] sm:$0xf] %v210_v4  ;;  %v216_v7 = vld [vmem:[%s813_s6 + $0x38] sm:$0xf]  ;;  %213 = vst [vmem:[%s820_s7 + $0x14] sm:$0xf] %v212_v5 }
  0x16   : > { %215 = vst [vmem:[%s820_s7 + $0x18] sm:$0xf] %v214_v6  ;;  %217 = vst [vmem:[%s820_s7 + $0x1c] sm:$0xf] %v216_v7  ;;  %v218_v8 = vld [vmem:[%s813_s6 + $0x40] sm:$0xf] }
  0x17   : > { %v220_v9 = vld [vmem:[%s813_s6 + $0x48] sm:$0xf]  ;;  %v222_v10 = vld [vmem:[%s813_s6 + $0x50] sm:$0xf]  ;;  %219 = vst [vmem:[%s820_s7 + $0x20] sm:$0xf] %v218_v8 }
  0x18   : > { %221 = vst [vmem:[%s820_s7 + $0x24] sm:$0xf] %v220_v9  ;;  %223 = vst [vmem:[%s820_s7 + $0x28] sm:$0xf] %v222_v10  ;;  %v224_v11 = vld [vmem:[%s813_s6 + $0x58] sm:$0xf] }
  0x19   : > { %v226_v12 = vld [vmem:[%s813_s6 + $0x60] sm:$0xf]  ;;  %v228_v13 = vld [vmem:[%s813_s6 + $0x68] sm:$0xf]  ;;  %225 = vst [vmem:[%s820_s7 + $0x2c] sm:$0xf] %v224_v11 }
  0x1a   : > { %227 = vst [vmem:[%s820_s7 + $0x30] sm:$0xf] %v226_v12  ;;  %229 = vst [vmem:[%s820_s7 + $0x34] sm:$0xf] %v228_v13  ;;  %v230_v14 = vld [vmem:[%s813_s6 + $0x70] sm:$0xf] }
  0x1b   : > { %v232_v15 = vld [vmem:[%s813_s6 + $0x78] sm:$0xf]  ;;  %v234_v16 = vld [vmem:[%s813_s6 + $0x80] sm:$0xf]  ;;  %231 = vst [vmem:[%s820_s7 + $0x38] sm:$0xf] %v230_v14 }
  0x1c   : > { %233 = vst [vmem:[%s820_s7 + $0x3c] sm:$0xf] %v232_v15  ;;  %235 = vst [vmem:[%s820_s7 + $0x40] sm:$0xf] %v234_v16  ;;  %v236_v17 = vld [vmem:[%s813_s6 + $0x88] sm:$0xf] }
  0x1d   : > { %v238_v18 = vld [vmem:[%s813_s6 + $0x90] sm:$0xf]  ;;  %v240_v19 = vld [vmem:[%s813_s6 + $0x98] sm:$0xf]  ;;  %237 = vst [vmem:[%s820_s7 + $0x44] sm:$0xf] %v236_v17 }
  0x1e   : > { %239 = vst [vmem:[%s820_s7 + $0x48] sm:$0xf] %v238_v18  ;;  %241 = vst [vmem:[%s820_s7 + $0x4c] sm:$0xf] %v240_v19  ;;  %v242_v20 = vld [vmem:[%s813_s6 + $0xa0] sm:$0xf] }
  0x1f   : > { %v244_v21 = vld [vmem:[%s813_s6 + $0xa8] sm:$0xf]  ;;  %v246_v22 = vld [vmem:[%s813_s6 + $0xb0] sm:$0xf]  ;;  %243 = vst [vmem:[%s820_s7 + $0x50] sm:$0xf] %v242_v20 }
  0x20   : > { %245 = vst [vmem:[%s820_s7 + $0x54] sm:$0xf] %v244_v21  ;;  %247 = vst [vmem:[%s820_s7 + $0x58] sm:$0xf] %v246_v22  ;;  %v248_v23 = vld [vmem:[%s813_s6 + $0xb8] sm:$0xf] }
  0x21   : > { %v250_v24 = vld [vmem:[%s813_s6 + $0xc0] sm:$0xf]  ;;  %249 = vst [vmem:[%s820_s7 + $0x5c] sm:$0xf] %v248_v23 }
  0x22   : > { %251 = vst [vmem:[%s820_s7 + $0x60] sm:$0xf] %v250_v24 }
  0x23 PF: > { %p646_p5 = scmp.ge.s32.totalorder %s744_s20, 1  ;;  %p323_p6 = scmp.lt.s32.totalorder %s744_s20, 3 }
  0x25   : > { %p324_p7 = pnand %p646_p5, %p323_p6 }
  0x26   : > { %s330_s8 = sand.u32 (!%p324_p7), 1, %s736_s18   ;;  %v361_v25 = vld [vmem:[%s916_s0] sm:$0xff] (!%p324_p7)  ;;  %vm474_vm0 = vcmask (!%p324_p7), 588800   ;;  %v746_v27 = vmov (!%p324_p7), 0   ;;  %vm478_vm1 = vcmask (!%p324_p7), 1043456   ;;  %v747_v45 = vmov (!%p324_p7), 0.0  }
  0x27   : > { %327 = sbr.rel (%p324_p7) target bundleno = 547 (0x223), region = 77  ;;  %v387_v26 = vld [vmem:[%s918_s2] sm:$0xff] (!%p324_p7)  ;;  %482 = vmatprep.subr.bf16.mxu0 (!%p324_p7), %v746_v27  ;;  %v649_v28 = vcombine.high (!%p324_p7), %v361_v25, %v361_v25  ;;  %704 = vset.pattern.permute.xlu0 (!%p324_p7), %v746_v27  ;;  %v648_v44 = vcombine.low (!%p324_p7), %v361_v25, %v361_v25  ;;  %vm748_vm2 = vmmov (!%p324_p7), 0   ;;  %vm531_vm3 = vcmask (!%p324_p7), 64512   ;;  %p356_p8 = scmp.lt.s32.totalorder (!%p324_p7), %s641_s21, 1 }
  0x28   : > { %s676_s13 = smul.u32 (!%p324_p7), 100, %s330_s8  ;;  %390 = vperm.xlu0 (!%p324_p7), %704, %v387_v26   ;;  %v525_v29 = vld [vmem:[%s920_s4] sm:$0xff] (!%p324_p7)  ;;  %669 = vmatprep.subr.bf16.mxu1 (!%p324_p7), %v747_v45 }
  0x29   : > { %663 = vmatprep.mubr.msk.bf16.mxu0 (!%p324_p7), %vm474_vm0, %v649_v28  ;;  %671 = vmatprep.mubr.msk.bf16.mxu1 (!%p324_p7), %vm748_vm2, %v747_v45  ;;  %v524_v55 = vld [vmem:[%s919_s3] sm:$0xf] (!%p324_p7) }
  0x2a   : > { %s879_s16 = scalar_lea.vmem (!%p324_p7), [#allocation2], %s676_s13 }
  0x2b   : > { %v705_v30 = vld [vmem:[%s879_s16] sm:$0xff] (!%p324_p7)   ;;  %v706_v31 = vld [vmem:[%s879_s16 + $0x8] sm:$0xff] (!%p324_p7)   ;;  %v707_v32 = vld [vmem:[%s879_s16 + $0x10] sm:$0xff] (!%p324_p7)  }
  0x2c   : > { %483 = vmatpush1.bf16.msra.mxu0 (!%p324_p7), %v705_v30  ;;  %528 = vperm.xlu0 (!%p324_p7), %704, %v525_v29   ;;  %v708_v33 = vld [vmem:[%s879_s16 + $0x18] sm:$0xff] (!%p324_p7)   ;;  %v709_v34 = vld [vmem:[%s879_s16 + $0x20] sm:$0xff] (!%p324_p7)   ;;  %v710_v35 = vld [vmem:[%s879_s16 + $0x28] sm:$0xff] (!%p324_p7)  }
  0x2d   : > { %484 = vmatprep.subr.bf16.mxu0 (!%p324_p7), %v746_v27  ;;  %v711_v36 = vld [vmem:[%s879_s16 + $0x30] sm:$0xff] (!%p324_p7)   ;;  %v712_v37 = vld [vmem:[%s879_s16 + $0x38] sm:$0xff] (!%p324_p7)   ;;  %v713_v38 = vld [vmem:[%s879_s16 + $0x40] sm:$0xff] (!%p324_p7)  }
  0x2e   : > { %v714_v39 = vld [vmem:[%s879_s16 + $0x48] sm:$0xff]   ;;  %v715_v40 = vld [vmem:[%s879_s16 + $0x50] sm:$0xff]   ;;  %v716_v41 = vld [vmem:[%s879_s16 + $0x58] sm:$0xff]   ;;  %s926_s21 = smov (!%p356_p8, %s641_s21), 1 }
  0x2f   : > { %v717_v42 = vld [vmem:[%s879_s16 + $0x60] ss:$0 sps:$4 sm:$0xff]   ;;  %s647_s23 = sshll.u32 %s926_s21, 2 }
  0x30   : > { %485 = vmatpush1.bf16.msra.mxu0 %v706_v31  ;;  %v480_v43 = vsel %vm478_vm1, %v717_v42, 0  ;;  %s359_s27 = scalar_lea.vmem %s921_s5, %s647_s23 }
  0x31   : > { %486 = vmatprep.subr.bf16.mxu0 %v746_v27 }
  0x34   : > { %487 = vmatpush1.bf16.msra.mxu0 %v707_v32 }
  0x35   : > { %488 = vmatprep.subr.bf16.mxu0 %v746_v27 }
  0x38   : > { %489 = vmatpush1.bf16.msra.mxu0 %v708_v33 }
  0x39   : > { %490 = vmatprep.subr.bf16.mxu0 %v746_v27 }
  0x3c   : > { %491 = vmatpush1.bf16.msra.mxu0 %v709_v34 }
  0x3d   : > { %492 = vmatprep.subr.bf16.mxu0 %v746_v27 }
  0x40   : > { %493 = vmatpush1.bf16.msra.mxu0 %v710_v35 }
  0x41   : > { %494 = vmatprep.subr.bf16.mxu0 %v746_v27 }
  0x44   : > { %495 = vmatpush1.bf16.msra.mxu0 %v711_v36 }
  0x45   : > { %496 = vmatprep.subr.bf16.mxu0 %v746_v27 }
  0x48   : > { %497 = vmatpush1.bf16.msra.mxu0 %v712_v37 }
  0x49   : > { %498 = vmatprep.subr.bf16.mxu0 %v746_v27 }
  0x4c   : > { %499 = vmatpush1.bf16.msra.mxu0 %v713_v38 }
  0x4d   : > { %500 = vmatprep.subr.bf16.mxu0 %v746_v27 }
  0x50   : > { %501 = vmatpush1.bf16.msra.mxu0 %v714_v39 }
  0x51   : > { %502 = vmatprep.subr.bf16.mxu0 %v746_v27 }
  0x54   : > { %503 = vmatpush1.bf16.msra.mxu0 %v715_v40 }
  0x55   : > { %504 = vmatprep.subr.bf16.mxu0 %v746_v27 }
  0x58   : > { %505 = vmatpush1.bf16.msra.mxu0 %v716_v41 }
  0x59   : > { %506 = vmatprep.subr.bf16.mxu0 %v746_v27 }
  0x5c   : > { %507 = vmatpush1.bf16.msra.mxu0 %v480_v43 }
  0x5f   : > { %515 = vmatmul.mubr.bf16.vlgmr.msra.gmra.mrb[0].mxu0 %v648_v44 }
  0xa7   : > { %v391_v46 = vpop.permute.xlu0 %390 }
  0xab   : > { %v529_v56 = vpop.permute.xlu0 %528 }
 0x132   : > { %v516_v47 = vpop.f32.mrb[0].mxu0 }
 0x133   : > { %v517_v48 = vadd.f32 %v516_v47, %v391_v46  ;;  %v518_v49 = vpop.f32.mrb[1].mxu0 }
 0x134   : > { %v519_v50 = vpop.f32.mrb[2].mxu0 }
 0x135   : > { %v522_v51 = vmul.f32 %v517_v48, %v517_v48  ;;  %v520_v52 = vpop.f32.mrb[3].mxu0 }
 0x137   : > { %v523_v53 = vpack.c.bf16 %v522_v51, %v522_v51 }
 0x139   : > { %v536_v54 = vsel %vm478_vm1, %v523_v53, 0 }
 0x13a   : > { %670 = vmatpush3.bf16.msra.mxu1 %v536_v54 }
 0x13d   : > { %672 = vmatmul.mubr.msk.bf16.vlgmr.msra.gmra.mrb[0].mxu1 %vm531_vm3, %v524_v55 }
 0x210   : > { %v572_v57 = vpop.f32.mrb[0].mxu1 }
 0x211   : > { %v573_v58 = vadd.f32 %v572_v57, %v529_v56  ;;  %v673_v59 = vpop.f32.mrb[1].mxu1 }
 0x212   : > { %v575_v60 = vpop.f32.mrb[2].mxu1 }
 0x213   : > { %720 = vrsqrt.f32 %v573_v58  ;;  %v674_v61 = vpop.f32.mrb[3].mxu1 }
 0x21d   : > { %v721_v62 = vpop.eup %720 }
 0x21e   : > { %v579_v63 = vmul.f32 %v721_v62, %v517_v48 }
 0x220   : > { %v580_v0 = vpack.c.bf16 %v579_v63, %v579_v63 }
 0x222   : > { %581 = vst [vmem:[%s359_s27] sm:$0xf] %v580_v0 }
 0x223 PF: > { %p12_p9 = scmp.ge.s32.totalorder %s796_s22, 4   ;;  %s922_s18 = smov %s740_s19 }
 0x224   : > { %s923_s19 = smov %s805_s25  ;;  %s924_s20 = smov %s796_s22 }
 0x225   :  { %14 = sbr.rel (!%p12_p9) target bundleno = 2 (0x2), region = 116 }

// kernel: forward.33
= control target key start
LH: loop header
LB: loop body
LE: loop exit
PB: predicated region body
PF: predicated region fallthrough
CT: control target
= control target key end

     0   :  { %s694_s12 = smov 0   ;;  %s696_s13 = smov 0   ;;  %s839_s0 = inlined_call_operand.vmem [shape: bf16[12,200], index: 0, kind: input, shape index: {}]   ;;  %s840_s1 = inlined_call_operand.vmem [shape: bf16[200,256], index: 1, kind: input, shape index: {}]   ;;  %s841_s2 = inlined_call_operand.vmem [shape: f32[12,1], index: 2, kind: input, shape index: {}]   ;;  %s842_s3 = inlined_call_operand.vmem [shape: f32[12,256], index: 3, kind: output, shape index: {}]  }
   0x1   :  { %s698_s14 = smov 0  }
   0x2 LB: > { %s578_s15 = sadd.s32 4294967295, %s671_s14   ;;  %s711_s16 = sadd.s32 1, %s671_s14   ;;  %s671_s14 = sphi %s698_s14, %s846_s14   ;;  %s667_s13 = sphi %s696_s13, %s845_s13   ;;  %s663_s12 = sphi %s694_s12, %s844_s12  }
   0x3   : > { %s38_s17 = ssub.s32 %s671_s14, %s711_s16  ;;  %s41_s18 = sadd.s32 1, %s667_s13 }
   0x4   : > { %p39_p0 = scmp.eq.s32.totalorder %s38_s17, 0  ;;  %p48_p1 = scmp.ne.s32.totalorder %s667_s13, %s663_s12 }
   0x5   : > { %p49_p2 = scmp.eq.s32.totalorder %s671_s14, 0  ;;  %p99_p3 = scmp.eq.s32.totalorder %s578_s15, 1 }
   0x6   : > { %s722_s19 = scalar_select %p39_p0, %s667_s13, %s41_s18  }
   0x7   : > { %p50_p4 = por %p49_p2, %p48_p1  ;;  %p724_p5 = por %p99_p3, %p48_p1 }
   0x8   : > { %p581_p6 = scmp.ge.s32.totalorder %s671_s14, 2 }
   0xa   : > { %127 = sbr.rel (%p581_p6) target bundleno = 38 (0x26), region = 24 }
  0x11   : > { %130 = sbr.rel (!%p50_p4) target bundleno = 38 (0x26), region = 28  ;;  %s132_s21 = sand.u32 (%p50_p4), 1, %s667_s13  }
  0x12   : > { %s582_s22 = sshll.u32 (%p50_p4), %s671_s14, 2  ;;  %s605_s23 = smul.u32 (%p50_p4), 100, %s132_s21 }
  0x13   : > { %s734_s26 = scalar_lea.vmem (%p50_p4), %s840_s1, %s582_s22 }
  0x14   : > { %v152_v0 = vld [vmem:[%s734_s26] sm:$0xf] (%p50_p4)  ;;  %v154_v1 = vld [vmem:[%s734_s26 + $0x8] sm:$0xf] (%p50_p4)  ;;  %v156_v2 = vld [vmem:[%s734_s26 + $0x10] sm:$0xf] (%p50_p4) }
  0x15   : > { %v158_v3 = vld [vmem:[%s734_s26 + $0x18] sm:$0xf] (%p50_p4)  ;;  %v160_v4 = vld [vmem:[%s734_s26 + $0x20] sm:$0xf] (%p50_p4)  ;;  %s741_s27 = scalar_lea.vmem (%p50_p4), [#allocation2], %s605_s23 }
  0x16   : > { %153 = vst [vmem:[%s741_s27] sm:$0xf] (%p50_p4), %v152_v0  ;;  %155 = vst [vmem:[%s741_s27 + $0x4] sm:$0xf] (%p50_p4), %v154_v1  ;;  %v162_v5 = vld [vmem:[%s734_s26 + $0x28] sm:$0xf] (%p50_p4) }
  0x17   : > { %157 = vst [vmem:[%s741_s27 + $0x8] sm:$0xf] (%p50_p4), %v156_v2  ;;  %159 = vst [vmem:[%s741_s27 + $0xc] sm:$0xf] (%p50_p4), %v158_v3  ;;  %v164_v6 = vld [vmem:[%s734_s26 + $0x30] sm:$0xf] (%p50_p4) }
  0x18   : > { %161 = vst [vmem:[%s741_s27 + $0x10] sm:$0xf] %v160_v4  ;;  %v166_v7 = vld [vmem:[%s734_s26 + $0x38] sm:$0xf]  ;;  %163 = vst [vmem:[%s741_s27 + $0x14] sm:$0xf] %v162_v5 }
  0x19   : > { %165 = vst [vmem:[%s741_s27 + $0x18] sm:$0xf] %v164_v6  ;;  %167 = vst [vmem:[%s741_s27 + $0x1c] sm:$0xf] %v166_v7  ;;  %v168_v8 = vld [vmem:[%s734_s26 + $0x40] sm:$0xf] }
  0x1a   : > { %v170_v9 = vld [vmem:[%s734_s26 + $0x48] sm:$0xf]  ;;  %v172_v10 = vld [vmem:[%s734_s26 + $0x50] sm:$0xf]  ;;  %169 = vst [vmem:[%s741_s27 + $0x20] sm:$0xf] %v168_v8 }
  0x1b   : > { %171 = vst [vmem:[%s741_s27 + $0x24] sm:$0xf] %v170_v9  ;;  %173 = vst [vmem:[%s741_s27 + $0x28] sm:$0xf] %v172_v10  ;;  %v174_v11 = vld [vmem:[%s734_s26 + $0x58] sm:$0xf] }
  0x1c   : > { %v176_v12 = vld [vmem:[%s734_s26 + $0x60] sm:$0xf]  ;;  %v178_v13 = vld [vmem:[%s734_s26 + $0x68] sm:$0xf]  ;;  %175 = vst [vmem:[%s741_s27 + $0x2c] sm:$0xf] %v174_v11 }
  0x1d   : > { %177 = vst [vmem:[%s741_s27 + $0x30] sm:$0xf] %v176_v12  ;;  %179 = vst [vmem:[%s741_s27 + $0x34] sm:$0xf] %v178_v13  ;;  %v180_v14 = vld [vmem:[%s734_s26 + $0x70] sm:$0xf] }
  0x1e   : > { %v182_v15 = vld [vmem:[%s734_s26 + $0x78] sm:$0xf]  ;;  %v184_v16 = vld [vmem:[%s734_s26 + $0x80] sm:$0xf]  ;;  %181 = vst [vmem:[%s741_s27 + $0x38] sm:$0xf] %v180_v14 }
  0x1f   : > { %183 = vst [vmem:[%s741_s27 + $0x3c] sm:$0xf] %v182_v15  ;;  %185 = vst [vmem:[%s741_s27 + $0x40] sm:$0xf] %v184_v16  ;;  %v186_v17 = vld [vmem:[%s734_s26 + $0x88] sm:$0xf] }
  0x20   : > { %v188_v18 = vld [vmem:[%s734_s26 + $0x90] sm:$0xf]  ;;  %v190_v19 = vld [vmem:[%s734_s26 + $0x98] sm:$0xf]  ;;  %187 = vst [vmem:[%s741_s27 + $0x44] sm:$0xf] %v186_v17 }
  0x21   : > { %189 = vst [vmem:[%s741_s27 + $0x48] sm:$0xf] %v188_v18  ;;  %191 = vst [vmem:[%s741_s27 + $0x4c] sm:$0xf] %v190_v19  ;;  %v192_v20 = vld [vmem:[%s734_s26 + $0xa0] sm:$0xf] }
  0x22   : > { %v194_v21 = vld [vmem:[%s734_s26 + $0xa8] sm:$0xf]  ;;  %v196_v22 = vld [vmem:[%s734_s26 + $0xb0] sm:$0xf]  ;;  %193 = vst [vmem:[%s741_s27 + $0x50] sm:$0xf] %v192_v20 }
  0x23   : > { %195 = vst [vmem:[%s741_s27 + $0x54] sm:$0xf] %v194_v21  ;;  %197 = vst [vmem:[%s741_s27 + $0x58] sm:$0xf] %v196_v22  ;;  %v198_v23 = vld [vmem:[%s734_s26 + $0xb8] sm:$0xf] }
  0x24   : > { %v200_v24 = vld [vmem:[%s734_s26 + $0xc0] sm:$0xf]  ;;  %199 = vst [vmem:[%s741_s27 + $0x5c] sm:$0xf] %v198_v23 }
  0x25   : > { %201 = vst [vmem:[%s741_s27 + $0x60] sm:$0xf] %v200_v24 }
  0x26 PF: > { %p583_p7 = scmp.ge.s32.totalorder %s671_s14, 1  ;;  %p273_p8 = scmp.lt.s32.totalorder %s671_s14, 3 }
  0x28   : > { %p274_p9 = pnand %p583_p7, %p273_p8 }
  0x29   : > { %s280_s28 = sand.u32 (!%p274_p9), 1, %s663_s12   ;;  %v673_v25 = vmov (!%p274_p9), 0   ;;  %vm426_vm0 = vcmask (!%p274_p9), 588800   ;;  %v330_v26 = vld [vmem:[%s841_s2] sm:$0xff] (!%p274_p9)  ;;  %v331_v28 = vld [vmem:[%s841_s2 + $0x8] sm:$0xf] (!%p274_p9) }
  0x2a   : > { %277 = sbr.rel (%p274_p9) target bundleno = 323 (0x143), region = 69  ;;  %434 = vmatprep.subr.bf16.mxu0 (!%p274_p9), %v673_v25  ;;  %632 = vset.pattern.permute.xlu0 (!%p274_p9), %v673_v25  ;;  %v648_v27 = vld [vmem:[%s839_s0 + $0x4] ss:$8 sps:$4 sm:$0x3f] (!%p274_p9)   ;;  %vm430_vm1 = vcmask (!%p274_p9), 1043456   ;;  %s584_s17 = sshll.u32 (!%p274_p9), %s280_s28, 4 }
  0x2b   : > { %s606_s29 = smul.u32 (!%p274_p9), 100, %s280_s28  ;;  %334 = vperm.xlu0 (!%p274_p9), %632, %v330_v26   ;;  %600 = vmatprep.mubr.msk.bf16.mxu0 (!%p274_p9), %vm426_vm0, %v648_v27  ;;  %v646_v43 = vld [vmem:[%s839_s0] ss:$8 sps:$4 sm:$0x3f] (!%p274_p9)   ;;  %s301_s18 = scalar_lea.vmem (!%p274_p9), [#allocation3], %s584_s17 }
  0x2d   : > { %s802_s9 = scalar_lea.vmem (!%p274_p9), [#allocation2], %s606_s29 }
  0x2e   : > { %v633_v29 = vld [vmem:[%s802_s9] sm:$0xff] (!%p274_p9)   ;;  %v634_v30 = vld [vmem:[%s802_s9 + $0x8] sm:$0xff] (!%p274_p9)   ;;  %v635_v31 = vld [vmem:[%s802_s9 + $0x10] sm:$0xff] (!%p274_p9)  }
  0x2f   : > { %435 = vmatpush1.bf16.msra.mxu0 (!%p274_p9), %v633_v29  ;;  %339 = vperm.xlu0 (!%p274_p9), %632, %v331_v28   ;;  %v636_v32 = vld [vmem:[%s802_s9 + $0x18] sm:$0xff] (!%p274_p9)   ;;  %v637_v33 = vld [vmem:[%s802_s9 + $0x20] sm:$0xff] (!%p274_p9)   ;;  %v638_v34 = vld [vmem:[%s802_s9 + $0x28] sm:$0xff] (!%p274_p9)  }
  0x30   : > { %436 = vmatprep.subr.bf16.mxu0 (!%p274_p9), %v673_v25  ;;  %v639_v35 = vld [vmem:[%s802_s9 + $0x30] sm:$0xff] (!%p274_p9)   ;;  %v640_v36 = vld [vmem:[%s802_s9 + $0x38] sm:$0xff] (!%p274_p9)   ;;  %v641_v37 = vld [vmem:[%s802_s9 + $0x40] sm:$0xff] (!%p274_p9)  }
  0x31   : > { %v642_v38 = vld [vmem:[%s802_s9 + $0x48] sm:$0xff]   ;;  %v643_v39 = vld [vmem:[%s802_s9 + $0x50] sm:$0xff]   ;;  %v644_v40 = vld [vmem:[%s802_s9 + $0x58] sm:$0xff]   ;;  %s602_s21 = sshll.u32 (%p724_p5), %s578_s15, 3 }
  0x32   : > { %v645_v41 = vld [vmem:[%s802_s9 + $0x60] ss:$0 sps:$4 sm:$0xff]   ;;  %s485_s23 = scalar_lea.vmem (%p724_p5), %s842_s3, %s602_s21 }
  0x33   : > { %437 = vmatpush1.bf16.msra.mxu0 %v634_v30  ;;  %v432_v42 = vsel %vm430_vm1, %v645_v41, 0 }
  0x34   : > { %438 = vmatprep.subr.bf16.mxu0 %v673_v25 }
  0x37   : > { %439 = vmatpush1.bf16.msra.mxu0 %v635_v31 }
  0x38   : > { %440 = vmatprep.subr.bf16.mxu0 %v673_v25 }
  0x3b   : > { %441 = vmatpush1.bf16.msra.mxu0 %v636_v32 }
  0x3c   : > { %442 = vmatprep.subr.bf16.mxu0 %v673_v25 }
  0x3f   : > { %443 = vmatpush1.bf16.msra.mxu0 %v637_v33 }
  0x40   : > { %444 = vmatprep.subr.bf16.mxu0 %v673_v25 }
  0x43   : > { %445 = vmatpush1.bf16.msra.mxu0 %v638_v34 }
  0x44   : > { %446 = vmatprep.subr.bf16.mxu0 %v673_v25 }
  0x47   : > { %447 = vmatpush1.bf16.msra.mxu0 %v639_v35 }
  0x48   : > { %448 = vmatprep.subr.bf16.mxu0 %v673_v25 }
  0x4b   : > { %449 = vmatpush1.bf16.msra.mxu0 %v640_v36 }
  0x4c   : > { %450 = vmatprep.subr.bf16.mxu0 %v673_v25 }
  0x4f   : > { %451 = vmatpush1.bf16.msra.mxu0 %v641_v37 }
  0x50   : > { %452 = vmatprep.subr.bf16.mxu0 %v673_v25 }
  0x53   : > { %453 = vmatpush1.bf16.msra.mxu0 %v642_v38 }
  0x54   : > { %454 = vmatprep.subr.bf16.mxu0 %v673_v25 }
  0x57   : > { %455 = vmatpush1.bf16.msra.mxu0 %v643_v39 }
  0x58   : > { %456 = vmatprep.subr.bf16.mxu0 %v673_v25 }
  0x5b   : > { %457 = vmatpush1.bf16.msra.mxu0 %v644_v40 }
  0x5c   : > { %458 = vmatprep.subr.bf16.mxu0 %v673_v25 }
  0x5f   : > { %459 = vmatpush1.bf16.msra.mxu0 %v432_v42 }
  0x62   : > { %467 = vmatmul.mubr.bf16.vlgmr.msra.gmra.mrb[0].mxu0 %v646_v43 }
  0xaa   : > { %v335_v44 = vpop.permute.xlu0 %334 }
  0xae   : > { %v340_v48 = vpop.permute.xlu0 %339 }
 0x134   : > { %483 = sbr.rel (!%p724_p5) target bundleno = 323 (0x143), region = 77 }
 0x135   : > { %v468_v45 = vpop.f32.mrb[0].mxu0 }
 0x136   : > { %v469_v46 = vadd.f32 %v468_v45, %v335_v44  ;;  %v470_v47 = vpop.f32.mrb[1].mxu0 }
 0x137   : > { %v471_v49 = vpop.f32.mrb[2].mxu0 }
 0x138   : > { %475 = vst [vmem:[%s301_s18] sm:$0xff] %v469_v46  ;;  %v472_v50 = vadd.f32 %v471_v49, %v340_v48  ;;  %v473_v51 = vpop.f32.mrb[3].mxu0 }
 0x13a   : > { %476 = vst [vmem:[%s301_s18 + $0x8] sm:$0xf] %v472_v50 }
 0x13f   : > { %v515_v52 = vld [vmem:[%s301_s18] sm:$0xff] }
 0x140   : > { %516 = vst [vmem:[%s485_s23] sm:$0xff] %v515_v52 }
 0x141   : > { %v517_v53 = vld [vmem:[%s301_s18 + $0x8] sm:$0xff] }
 0x142   : > { %518 = vst [vmem:[%s485_s23 + $0x10] sm:$0xff] %v517_v53 }
 0x143 PF: > { %p10_p10 = scmp.ge.s32.totalorder %s711_s16, 4   ;;  %s844_s12 = smov %s667_s13 }
 0x144   : > { %s845_s13 = smov %s722_s19  ;;  %s846_s14 = smov %s711_s16 }
 0x145   :  { %12 = sbr.rel (!%p10_p10) target bundleno = 2 (0x2), region = 146 }

// kernel: forward.34
= control target key start
LH: loop header
LB: loop body
LE: loop exit
PB: predicated region body
PF: predicated region fallthrough
CT: control target
= control target key end

     0   :  { %s562_s12 = smov 0   ;;  %s564_s13 = smov 0   ;;  %s622_s0 = inlined_call_operand.vmem [shape: bf16[8,108], index: 0, kind: input, shape index: {}]   ;;  %s623_s1 = inlined_call_operand.vmem [shape: bf16[108,256], index: 1, kind: input, shape index: {}]   ;;  %s624_s2 = inlined_call_operand.vmem [shape: f32[8,1], index: 2, kind: input, shape index: {}]   ;;  %s625_s3 = inlined_call_operand.vmem [shape: bf16[8,256], index: 3, kind: output, shape index: {}]  }
   0x1   :  { %s566_s14 = smov 0  }
   0x2 LB: > { %s435_s15 = sadd.s32 4294967295, %s537_s14   ;;  %s579_s16 = sadd.s32 1, %s537_s14   ;;  %s537_s14 = sphi %s566_s14, %s628_s14   ;;  %s533_s13 = sphi %s564_s13, %s627_s13   ;;  %s529_s12 = sphi %s562_s12, %s626_s12  }
   0x3   : > { %s38_s17 = ssub.s32 %s537_s14, %s579_s16  ;;  %s41_s18 = sadd.s32 1, %s533_s13 }
   0x4   : > { %p39_p0 = scmp.eq.s32.totalorder %s38_s17, 0  ;;  %p48_p1 = scmp.ne.s32.totalorder %s533_s13, %s529_s12 }
   0x5   : > { %p49_p2 = scmp.eq.s32.totalorder %s537_s14, 0  ;;  %p438_p4 = scmp.ge.s32.totalorder %s537_s14, 2 }
   0x6   : > { %s588_s19 = scalar_select %p39_p0, %s533_s13, %s41_s18  }
   0x7   : > { %p50_p3 = por %p49_p2, %p48_p1  ;;  %127 = sbr.rel (%p438_p4) target bundleno = 27 (0x1b), region = 24 }
   0xe   : > { %130 = sbr.rel (!%p50_p3) target bundleno = 27 (0x1b), region = 28  ;;  %s132_s20 = sand.u32 (%p50_p3), 1, %s533_s13  }
   0xf   : > { %s439_s21 = sshll.u32 (%p50_p3), %s537_s14, 2  ;;  %s478_s22 = smul.u32 (%p50_p3), 56, %s132_s20 }
  0x10   : > { %s136_s25 = scalar_lea.vmem (%p50_p3), %s623_s1, %s439_s21 }
  0x11   : > { %v152_v0 = vld [vmem:[%s136_s25] sm:$0xf] (%p50_p3)  ;;  %v154_v1 = vld [vmem:[%s136_s25 + $0x8] sm:$0xf] (%p50_p3)  ;;  %v156_v2 = vld [vmem:[%s136_s25 + $0x10] sm:$0xf] (%p50_p3) }
  0x12   : > { %v158_v3 = vld [vmem:[%s136_s25 + $0x18] sm:$0xf] (%p50_p3)  ;;  %v160_v4 = vld [vmem:[%s136_s25 + $0x20] sm:$0xf] (%p50_p3)  ;;  %s134_s26 = scalar_lea.vmem (%p50_p3), [#allocation2], %s478_s22 }
  0x13   : > { %153 = vst [vmem:[%s134_s26] sm:$0xf] (%p50_p3), %v152_v0  ;;  %155 = vst [vmem:[%s134_s26 + $0x4] sm:$0xf] (%p50_p3), %v154_v1  ;;  %v162_v5 = vld [vmem:[%s136_s25 + $0x28] sm:$0xf] (%p50_p3) }
  0x14   : > { %157 = vst [vmem:[%s134_s26 + $0x8] sm:$0xf] (%p50_p3), %v156_v2  ;;  %159 = vst [vmem:[%s134_s26 + $0xc] sm:$0xf] (%p50_p3), %v158_v3  ;;  %v164_v6 = vld [vmem:[%s136_s25 + $0x30] sm:$0xf] (%p50_p3) }
  0x15   : > { %161 = vst [vmem:[%s134_s26 + $0x10] sm:$0xf] %v160_v4  ;;  %v166_v7 = vld [vmem:[%s136_s25 + $0x38] sm:$0xf]  ;;  %163 = vst [vmem:[%s134_s26 + $0x14] sm:$0xf] %v162_v5 }
  0x16   : > { %165 = vst [vmem:[%s134_s26 + $0x18] sm:$0xf] %v164_v6  ;;  %167 = vst [vmem:[%s134_s26 + $0x1c] sm:$0xf] %v166_v7  ;;  %v168_v8 = vld [vmem:[%s136_s25 + $0x40] sm:$0xf] }
  0x17   : > { %v170_v9 = vld [vmem:[%s136_s25 + $0x48] sm:$0xf]  ;;  %v172_v10 = vld [vmem:[%s136_s25 + $0x50] sm:$0xf]  ;;  %169 = vst [vmem:[%s134_s26 + $0x20] sm:$0xf] %v168_v8 }
  0x18   : > { %171 = vst [vmem:[%s134_s26 + $0x24] sm:$0xf] %v170_v9  ;;  %173 = vst [vmem:[%s134_s26 + $0x28] sm:$0xf] %v172_v10  ;;  %v174_v11 = vld [vmem:[%s136_s25 + $0x58] sm:$0xf] }
  0x19   : > { %v176_v12 = vld [vmem:[%s136_s25 + $0x60] sm:$0xf]  ;;  %v178_v13 = vld [vmem:[%s136_s25 + $0x68] sm:$0xf]  ;;  %175 = vst [vmem:[%s134_s26 + $0x2c] sm:$0xf] %v174_v11 }
  0x1a   : > { %177 = vst [vmem:[%s134_s26 + $0x30] sm:$0xf] %v176_v12  ;;  %179 = vst [vmem:[%s134_s26 + $0x34] sm:$0xf] %v178_v13 }
  0x1b PF: > { %p440_p5 = scmp.ge.s32.totalorder %s537_s14, 1  ;;  %p229_p6 = scmp.lt.s32.totalorder %s537_s14, 3 }
  0x1d   : > { %p230_p7 = pnand %p440_p5, %p229_p6 }
  0x1e   : > { %s236_s27 = sand.u32 (!%p230_p7), 1, %s529_s12   ;;  %v539_v14 = vmov (!%p230_p7), 0.0   ;;  %vm540_vm0 = vmmov (!%p230_p7), 0   ;;  %v278_v15 = vld [vmem:[%s624_s2] sm:$0xff] (!%p230_p7)  ;;  %v541_v16 = vmov (!%p230_p7), 0   ;;  %vm329_vm1 = vcmask (!%p230_p7), 1045504  }
  0x1f   : > { %233 = sbr.rel (%p230_p7) target bundleno = 282 (0x11a), region = 69  ;;  %460 = vmatprep.subr.bf16.mxu0 (!%p230_p7), %v539_v14  ;;  %474 = vmatprep.mubr.msk.bf16.mxu0 (!%p230_p7), %vm540_vm0, %v539_v14  ;;  %v263_v25 = vld [vmem:[%s622_s0] sm:$0xf] (!%p230_p7)  ;;  %vm325_vm2 = vcmask (!%p230_p7), 883712   ;;  %p258_p8 = scmp.lt.s32.totalorder (!%p230_p7), %s435_s15, 1 }
  0x20   : > { %s479_s28 = smul.u32 (!%p230_p7), 56, %s236_s27  ;;  %507 = vset.pattern.permute.xlu0 (!%p230_p7), %v541_v16 }
  0x21   : > { %281 = vperm.xlu0 (!%p230_p7), %507, %v278_v15  }
  0x22   : > { %s238_s4 = scalar_lea.vmem (!%p230_p7), [#allocation2], %s479_s28 }
  0x23   : > { %v508_v17 = vld [vmem:[%s238_s4] sm:$0xff] (!%p230_p7)   ;;  %v509_v18 = vld [vmem:[%s238_s4 + $0x8] sm:$0xff] (!%p230_p7)   ;;  %v510_v19 = vld [vmem:[%s238_s4 + $0x10] sm:$0xff] (!%p230_p7)  }
  0x24   : > { %461 = vmatpush3.bf16.msra.mxu0 (!%p230_p7), %v508_v17  ;;  %v511_v20 = vld [vmem:[%s238_s4 + $0x18] sm:$0xff] (!%p230_p7)   ;;  %v512_v21 = vld [vmem:[%s238_s4 + $0x20] sm:$0xff] (!%p230_p7)   ;;  %v513_v22 = vld [vmem:[%s238_s4 + $0x28] sm:$0xff] (!%p230_p7)  }
  0x25   : > { %462 = vmatprep.subr.bf16.mxu0 (!%p230_p7), %v539_v14  ;;  %v514_v23 = vld [vmem:[%s238_s4 + $0x30] sm:$0x3f] (!%p230_p7)  }
  0x26   : > { %v331_v24 = vsel %vm329_vm1, %v514_v23, 0  ;;  %s630_s15 = smov (!%p258_p8, %s435_s15), 1 }
  0x27   : > { %s441_s7 = sshll.u32 %s630_s15, 2 }
  0x28   : > { %463 = vmatpush3.bf16.msra.mxu0 %v509_v18  ;;  %s261_s10 = scalar_lea.vmem %s625_s3, %s441_s7 }
  0x29   : > { %464 = vmatprep.subr.bf16.mxu0 %v539_v14 }
  0x2c   : > { %465 = vmatpush3.bf16.msra.mxu0 %v510_v19 }
  0x2d   : > { %466 = vmatprep.subr.bf16.mxu0 %v539_v14 }
  0x30   : > { %467 = vmatpush3.bf16.msra.mxu0 %v511_v20 }
  0x31   : > { %468 = vmatprep.subr.bf16.mxu0 %v539_v14 }
  0x34   : > { %469 = vmatpush3.bf16.msra.mxu0 %v512_v21 }
  0x35   : > { %470 = vmatprep.subr.bf16.mxu0 %v539_v14 }
  0x38   : > { %471 = vmatpush3.bf16.msra.mxu0 %v513_v22 }
  0x39   : > { %472 = vmatprep.subr.bf16.mxu0 %v539_v14 }
  0x3c   : > { %473 = vmatpush3.bf16.msra.mxu0 %v331_v24 }
  0x3f   : > { %475 = vmatmul.mubr.msk.bf16.vlgmr.msra.gmra.mrb[0].mxu0 %vm325_vm2, %v263_v25 }
  0xa0   : > { %v282_v26 = vpop.permute.xlu0 %281 }
 0x112   : > { %v367_v27 = vpop.f32.mrb[0].mxu0 }
 0x113   : > { %v368_v28 = vadd.f32 %v367_v27, %v282_v26  ;;  %v476_v29 = vpop.f32.mrb[1].mxu0 }
 0x114   : > { %v370_v30 = vpop.f32.mrb[2].mxu0 }
 0x115   : > { %v373_v31 = vmax.f32 %v368_v28, 0.0  ;;  %v477_v32 = vpop.f32.mrb[3].mxu0 }
 0x117   : > { %v374_v33 = vpack.c.bf16 %v373_v31, %v373_v31 }
 0x119   : > { %375 = vst [vmem:[%s261_s10] sm:$0xf] %v374_v33 }
 0x11a PF: > { %p10_p9 = scmp.ge.s32.totalorder %s579_s16, 4   ;;  %s626_s12 = smov %s533_s13 }
 0x11b   : > { %s627_s13 = smov %s588_s19  ;;  %s628_s14 = smov %s579_s16 }
 0x11c   :  { %12 = sbr.rel (!%p10_p9) target bundleno = 2 (0x2), region = 108 }

// kernel: forward.35
= control target key start
LH: loop header
LB: loop body
LE: loop exit
PB: predicated region body
PF: predicated region fallthrough
CT: control target
= control target key end

     0   :  { %s643_s12 = smov 0   ;;  %s645_s13 = smov 0   ;;  %s772_s0 = inlined_call_operand.vmem [shape: bf16[8,200], index: 0, kind: input, shape index: {}]   ;;  %s773_s1 = inlined_call_operand.vmem [shape: bf16[200,256], index: 1, kind: input, shape index: {}]   ;;  %s774_s2 = inlined_call_operand.vmem [shape: f32[8,1], index: 2, kind: input, shape index: {}]   ;;  %s775_s3 = inlined_call_operand.vmem [shape: bf16[8,256], index: 3, kind: output, shape index: {}]  }
   0x1   :  { %s647_s14 = smov 0  }
   0x2 LB: > { %s530_s15 = sadd.s32 4294967295, %s620_s14   ;;  %s660_s16 = sadd.s32 1, %s620_s14   ;;  %s620_s14 = sphi %s647_s14, %s778_s14   ;;  %s616_s13 = sphi %s645_s13, %s777_s13   ;;  %s612_s12 = sphi %s643_s12, %s776_s12  }
   0x3   : > { %s38_s17 = ssub.s32 %s620_s14, %s660_s16  ;;  %s41_s18 = sadd.s32 1, %s616_s13 }
   0x4   : > { %p39_p0 = scmp.eq.s32.totalorder %s38_s17, 0  ;;  %p48_p1 = scmp.ne.s32.totalorder %s616_s13, %s612_s12 }
   0x5   : > { %p49_p2 = scmp.eq.s32.totalorder %s620_s14, 0  ;;  %p533_p4 = scmp.ge.s32.totalorder %s620_s14, 2 }
   0x6   : > { %s669_s19 = scalar_select %p39_p0, %s616_s13, %s41_s18  }
   0x7   : > { %p50_p3 = por %p49_p2, %p48_p1  ;;  %127 = sbr.rel (%p533_p4) target bundleno = 35 (0x23), region = 24 }
   0xe   : > { %130 = sbr.rel (!%p50_p3) target bundleno = 35 (0x23), region = 28  ;;  %s132_s20 = sand.u32 (%p50_p3), 1, %s616_s13  }
   0xf   : > { %s534_s21 = sshll.u32 (%p50_p3), %s620_s14, 2  ;;  %s555_s22 = smul.u32 (%p50_p3), 100, %s132_s20 }
  0x10   : > { %s677_s25 = scalar_lea.vmem (%p50_p3), %s773_s1, %s534_s21 }
  0x11   : > { %v152_v0 = vld [vmem:[%s677_s25] sm:$0xf] (%p50_p3)  ;;  %v154_v1 = vld [vmem:[%s677_s25 + $0x8] sm:$0xf] (%p50_p3)  ;;  %v156_v2 = vld [vmem:[%s677_s25 + $0x10] sm:$0xf] (%p50_p3) }
  0x12   : > { %v158_v3 = vld [vmem:[%s677_s25 + $0x18] sm:$0xf] (%p50_p3)  ;;  %v160_v4 = vld [vmem:[%s677_s25 + $0x20] sm:$0xf] (%p50_p3)  ;;  %s684_s26 = scalar_lea.vmem (%p50_p3), [#allocation2], %s555_s22 }
  0x13   : > { %153 = vst [vmem:[%s684_s26] sm:$0xf] (%p50_p3), %v152_v0  ;;  %155 = vst [vmem:[%s684_s26 + $0x4] sm:$0xf] (%p50_p3), %v154_v1  ;;  %v162_v5 = vld [vmem:[%s677_s25 + $0x28] sm:$0xf] (%p50_p3) }
  0x14   : > { %157 = vst [vmem:[%s684_s26 + $0x8] sm:$0xf] (%p50_p3), %v156_v2  ;;  %159 = vst [vmem:[%s684_s26 + $0xc] sm:$0xf] (%p50_p3), %v158_v3  ;;  %v164_v6 = vld [vmem:[%s677_s25 + $0x30] sm:$0xf] (%p50_p3) }
  0x15   : > { %161 = vst [vmem:[%s684_s26 + $0x10] sm:$0xf] %v160_v4  ;;  %v166_v7 = vld [vmem:[%s677_s25 + $0x38] sm:$0xf]  ;;  %163 = vst [vmem:[%s684_s26 + $0x14] sm:$0xf] %v162_v5 }
  0x16   : > { %165 = vst [vmem:[%s684_s26 + $0x18] sm:$0xf] %v164_v6  ;;  %167 = vst [vmem:[%s684_s26 + $0x1c] sm:$0xf] %v166_v7  ;;  %v168_v8 = vld [vmem:[%s677_s25 + $0x40] sm:$0xf] }
  0x17   : > { %v170_v9 = vld [vmem:[%s677_s25 + $0x48] sm:$0xf]  ;;  %v172_v10 = vld [vmem:[%s677_s25 + $0x50] sm:$0xf]  ;;  %169 = vst [vmem:[%s684_s26 + $0x20] sm:$0xf] %v168_v8 }
  0x18   : > { %171 = vst [vmem:[%s684_s26 + $0x24] sm:$0xf] %v170_v9  ;;  %173 = vst [vmem:[%s684_s26 + $0x28] sm:$0xf] %v172_v10  ;;  %v174_v11 = vld [vmem:[%s677_s25 + $0x58] sm:$0xf] }
  0x19   : > { %v176_v12 = vld [vmem:[%s677_s25 + $0x60] sm:$0xf]  ;;  %v178_v13 = vld [vmem:[%s677_s25 + $0x68] sm:$0xf]  ;;  %175 = vst [vmem:[%s684_s26 + $0x2c] sm:$0xf] %v174_v11 }
  0x1a   : > { %177 = vst [vmem:[%s684_s26 + $0x30] sm:$0xf] %v176_v12  ;;  %179 = vst [vmem:[%s684_s26 + $0x34] sm:$0xf] %v178_v13  ;;  %v180_v14 = vld [vmem:[%s677_s25 + $0x70] sm:$0xf] }
  0x1b   : > { %v182_v15 = vld [vmem:[%s677_s25 + $0x78] sm:$0xf]  ;;  %v184_v16 = vld [vmem:[%s677_s25 + $0x80] sm:$0xf]  ;;  %181 = vst [vmem:[%s684_s26 + $0x38] sm:$0xf] %v180_v14 }
  0x1c   : > { %183 = vst [vmem:[%s684_s26 + $0x3c] sm:$0xf] %v182_v15  ;;  %185 = vst [vmem:[%s684_s26 + $0x40] sm:$0xf] %v184_v16  ;;  %v186_v17 = vld [vmem:[%s677_s25 + $0x88] sm:$0xf] }
  0x1d   : > { %v188_v18 = vld [vmem:[%s677_s25 + $0x90] sm:$0xf]  ;;  %v190_v19 = vld [vmem:[%s677_s25 + $0x98] sm:$0xf]  ;;  %187 = vst [vmem:[%s684_s26 + $0x44] sm:$0xf] %v186_v17 }
  0x1e   : > { %189 = vst [vmem:[%s684_s26 + $0x48] sm:$0xf] %v188_v18  ;;  %191 = vst [vmem:[%s684_s26 + $0x4c] sm:$0xf] %v190_v19  ;;  %v192_v20 = vld [vmem:[%s677_s25 + $0xa0] sm:$0xf] }
  0x1f   : > { %v194_v21 = vld [vmem:[%s677_s25 + $0xa8] sm:$0xf]  ;;  %v196_v22 = vld [vmem:[%s677_s25 + $0xb0] sm:$0xf]  ;;  %193 = vst [vmem:[%s684_s26 + $0x50] sm:$0xf] %v192_v20 }
  0x20   : > { %195 = vst [vmem:[%s684_s26 + $0x54] sm:$0xf] %v194_v21  ;;  %197 = vst [vmem:[%s684_s26 + $0x58] sm:$0xf] %v196_v22  ;;  %v198_v23 = vld [vmem:[%s677_s25 + $0xb8] sm:$0xf] }
  0x21   : > { %v200_v24 = vld [vmem:[%s677_s25 + $0xc0] sm:$0xf]  ;;  %199 = vst [vmem:[%s684_s26 + $0x5c] sm:$0xf] %v198_v23 }
  0x22   : > { %201 = vst [vmem:[%s684_s26 + $0x60] sm:$0xf] %v200_v24 }
  0x23 PF: > { %p535_p5 = scmp.ge.s32.totalorder %s620_s14, 1  ;;  %p273_p6 = scmp.lt.s32.totalorder %s620_s14, 3 }
  0x25   : > { %p274_p7 = pnand %p535_p5, %p273_p6 }
  0x26   : > { %s280_s27 = sand.u32 (!%p274_p7), 1, %s612_s12   ;;  %v307_v25 = vld [vmem:[%s772_s0] sm:$0xff] (!%p274_p7)  ;;  %vm420_vm0 = vcmask (!%p274_p7), 588800   ;;  %v622_v27 = vmov (!%p274_p7), 0   ;;  %vm424_vm1 = vcmask (!%p274_p7), 1043456   ;;  %p302_p8 = scmp.lt.s32.totalorder (!%p274_p7), %s530_s15, 1 }
  0x27   : > { %277 = sbr.rel (%p274_p7) target bundleno = 314 (0x13a), region = 69  ;;  %v333_v26 = vld [vmem:[%s774_s2] sm:$0xff] (!%p274_p7)  ;;  %428 = vmatprep.subr.bf16.mxu0 (!%p274_p7), %v622_v27  ;;  %v538_v28 = vcombine.high (!%p274_p7), %v307_v25, %v307_v25  ;;  %582 = vset.pattern.permute.xlu0 (!%p274_p7), %v622_v27  ;;  %v537_v43 = vcombine.low (!%p274_p7), %v307_v25, %v307_v25 }
  0x28   : > { %s556_s5 = smul.u32 (!%p274_p7), 100, %s280_s27  ;;  %336 = vperm.xlu0 (!%p274_p7), %582, %v333_v26  }
  0x29   : > { %552 = vmatprep.mubr.msk.bf16.mxu0 (!%p274_p7), %vm420_vm0, %v538_v28 }
  0x2a   : > { %s740_s6 = scalar_lea.vmem (!%p274_p7), [#allocation2], %s556_s5 }
  0x2b   : > { %v583_v29 = vld [vmem:[%s740_s6] sm:$0xff] (!%p274_p7)   ;;  %v584_v30 = vld [vmem:[%s740_s6 + $0x8] sm:$0xff] (!%p274_p7)   ;;  %v585_v31 = vld [vmem:[%s740_s6 + $0x10] sm:$0xff] (!%p274_p7)  }
  0x2c   : > { %429 = vmatpush1.bf16.msra.mxu0 (!%p274_p7), %v583_v29  ;;  %v586_v32 = vld [vmem:[%s740_s6 + $0x18] sm:$0xff] (!%p274_p7)   ;;  %v587_v33 = vld [vmem:[%s740_s6 + $0x20] sm:$0xff] (!%p274_p7)   ;;  %v588_v34 = vld [vmem:[%s740_s6 + $0x28] sm:$0xff] (!%p274_p7)  }
  0x2d   : > { %430 = vmatprep.subr.bf16.mxu0 (!%p274_p7), %v622_v27  ;;  %v589_v35 = vld [vmem:[%s740_s6 + $0x30] sm:$0xff] (!%p274_p7)   ;;  %v590_v36 = vld [vmem:[%s740_s6 + $0x38] sm:$0xff] (!%p274_p7)   ;;  %v591_v37 = vld [vmem:[%s740_s6 + $0x40] sm:$0xff] (!%p274_p7)  }
  0x2e   : > { %v592_v38 = vld [vmem:[%s740_s6 + $0x48] sm:$0xff]   ;;  %v593_v39 = vld [vmem:[%s740_s6 + $0x50] sm:$0xff]   ;;  %v594_v40 = vld [vmem:[%s740_s6 + $0x58] sm:$0xff]   ;;  %s780_s15 = smov (!%p302_p8, %s530_s15), 1 }
  0x2f   : > { %v595_v41 = vld [vmem:[%s740_s6 + $0x60] ss:$0 sps:$4 sm:$0xff]   ;;  %s536_s7 = sshll.u32 %s780_s15, 2 }
  0x30   : > { %431 = vmatpush1.bf16.msra.mxu0 %v584_v30  ;;  %v426_v42 = vsel %vm424_vm1, %v595_v41, 0  ;;  %s305_s10 = scalar_lea.vmem %s775_s3, %s536_s7 }
  0x31   : > { %432 = vmatprep.subr.bf16.mxu0 %v622_v27 }
  0x34   : > { %433 = vmatpush1.bf16.msra.mxu0 %v585_v31 }
  0x35   : > { %434 = vmatprep.subr.bf16.mxu0 %v622_v27 }
  0x38   : > { %435 = vmatpush1.bf16.msra.mxu0 %v586_v32 }
  0x39   : > { %436 = vmatprep.subr.bf16.mxu0 %v622_v27 }
  0x3c   : > { %437 = vmatpush1.bf16.msra.mxu0 %v587_v33 }
  0x3d   : > { %438 = vmatprep.subr.bf16.mxu0 %v622_v27 }
  0x40   : > { %439 = vmatpush1.bf16.msra.mxu0 %v588_v34 }
  0x41   : > { %440 = vmatprep.subr.bf16.mxu0 %v622_v27 }
  0x44   : > { %441 = vmatpush1.bf16.msra.mxu0 %v589_v35 }
  0x45   : > { %442 = vmatprep.subr.bf16.mxu0 %v622_v27 }
  0x48   : > { %443 = vmatpush1.bf16.msra.mxu0 %v590_v36 }
  0x49   : > { %444 = vmatprep.subr.bf16.mxu0 %v622_v27 }
  0x4c   : > { %445 = vmatpush1.bf16.msra.mxu0 %v591_v37 }
  0x4d   : > { %446 = vmatprep.subr.bf16.mxu0 %v622_v27 }
  0x50   : > { %447 = vmatpush1.bf16.msra.mxu0 %v592_v38 }
  0x51   : > { %448 = vmatprep.subr.bf16.mxu0 %v622_v27 }
  0x54   : > { %449 = vmatpush1.bf16.msra.mxu0 %v593_v39 }
  0x55   : > { %450 = vmatprep.subr.bf16.mxu0 %v622_v27 }
  0x58   : > { %451 = vmatpush1.bf16.msra.mxu0 %v594_v40 }
  0x59   : > { %452 = vmatprep.subr.bf16.mxu0 %v622_v27 }
  0x5c   : > { %453 = vmatpush1.bf16.msra.mxu0 %v426_v42 }
  0x5f   : > { %461 = vmatmul.mubr.bf16.vlgmr.msra.gmra.mrb[0].mxu0 %v537_v43 }
  0xa7   : > { %v337_v44 = vpop.permute.xlu0 %336 }
 0x132   : > { %v462_v45 = vpop.f32.mrb[0].mxu0 }
 0x133   : > { %v463_v46 = vadd.f32 %v462_v45, %v337_v44  ;;  %v464_v47 = vpop.f32.mrb[1].mxu0 }
 0x134   : > { %v465_v48 = vpop.f32.mrb[2].mxu0 }
 0x135   : > { %v468_v49 = vmax.f32 %v463_v46, 0.0  ;;  %v466_v50 = vpop.f32.mrb[3].mxu0 }
 0x137   : > { %v469_v51 = vpack.c.bf16 %v468_v49, %v468_v49 }
 0x139   : > { %470 = vst [vmem:[%s305_s10] sm:$0xf] %v469_v51 }
 0x13a PF: > { %p10_p9 = scmp.ge.s32.totalorder %s660_s16, 4   ;;  %s776_s12 = smov %s616_s13 }
 0x13b   : > { %s777_s13 = smov %s669_s19  ;;  %s778_s14 = smov %s660_s16 }
 0x13c   :  { %12 = sbr.rel (!%p10_p9) target bundleno = 2 (0x2), region = 108 }

// kernel: forward.36
= control target key start
LH: loop header
LB: loop body
LE: loop exit
PB: predicated region body
PF: predicated region fallthrough
CT: control target
= control target key end

     0   :  { %s642_s12 = smov 0   ;;  %s644_s13 = smov 0   ;;  %s771_s0 = inlined_call_operand.vmem [shape: bf16[8,200], index: 0, kind: input, shape index: {}]   ;;  %s772_s1 = inlined_call_operand.vmem [shape: bf16[200,256], index: 1, kind: input, shape index: {}]   ;;  %s773_s2 = inlined_call_operand.vmem [shape: f32[8,1], index: 2, kind: input, shape index: {}]   ;;  %s774_s3 = inlined_call_operand.vmem [shape: bf16[8,256], index: 3, kind: output, shape index: {}]  }
   0x1   :  { %s646_s14 = smov 0  }
   0x2 LB: > { %s529_s15 = sadd.s32 4294967295, %s619_s14   ;;  %s659_s16 = sadd.s32 1, %s619_s14   ;;  %s619_s14 = sphi %s646_s14, %s777_s14   ;;  %s615_s13 = sphi %s644_s13, %s776_s13   ;;  %s611_s12 = sphi %s642_s12, %s775_s12  }
   0x3   : > { %s38_s17 = ssub.s32 %s619_s14, %s659_s16  ;;  %s41_s18 = sadd.s32 1, %s615_s13 }
   0x4   : > { %p39_p0 = scmp.eq.s32.totalorder %s38_s17, 0  ;;  %p48_p1 = scmp.ne.s32.totalorder %s615_s13, %s611_s12 }
   0x5   : > { %p49_p2 = scmp.eq.s32.totalorder %s619_s14, 0  ;;  %p532_p4 = scmp.ge.s32.totalorder %s619_s14, 2 }
   0x6   : > { %s668_s19 = scalar_select %p39_p0, %s615_s13, %s41_s18  }
   0x7   : > { %p50_p3 = por %p49_p2, %p48_p1  ;;  %127 = sbr.rel (%p532_p4) target bundleno = 35 (0x23), region = 24 }
   0xe   : > { %130 = sbr.rel (!%p50_p3) target bundleno = 35 (0x23), region = 28  ;;  %s132_s20 = sand.u32 (%p50_p3), 1, %s615_s13  }
   0xf   : > { %s533_s21 = sshll.u32 (%p50_p3), %s619_s14, 2  ;;  %s554_s22 = smul.u32 (%p50_p3), 100, %s132_s20 }
  0x10   : > { %s676_s25 = scalar_lea.vmem (%p50_p3), %s772_s1, %s533_s21 }
  0x11   : > { %v152_v0 = vld [vmem:[%s676_s25] sm:$0xf] (%p50_p3)  ;;  %v154_v1 = vld [vmem:[%s676_s25 + $0x8] sm:$0xf] (%p50_p3)  ;;  %v156_v2 = vld [vmem:[%s676_s25 + $0x10] sm:$0xf] (%p50_p3) }
  0x12   : > { %v158_v3 = vld [vmem:[%s676_s25 + $0x18] sm:$0xf] (%p50_p3)  ;;  %v160_v4 = vld [vmem:[%s676_s25 + $0x20] sm:$0xf] (%p50_p3)  ;;  %s683_s26 = scalar_lea.vmem (%p50_p3), [#allocation2], %s554_s22 }
  0x13   : > { %153 = vst [vmem:[%s683_s26] sm:$0xf] (%p50_p3), %v152_v0  ;;  %155 = vst [vmem:[%s683_s26 + $0x4] sm:$0xf] (%p50_p3), %v154_v1  ;;  %v162_v5 = vld [vmem:[%s676_s25 + $0x28] sm:$0xf] (%p50_p3) }
  0x14   : > { %157 = vst [vmem:[%s683_s26 + $0x8] sm:$0xf] (%p50_p3), %v156_v2  ;;  %159 = vst [vmem:[%s683_s26 + $0xc] sm:$0xf] (%p50_p3), %v158_v3  ;;  %v164_v6 = vld [vmem:[%s676_s25 + $0x30] sm:$0xf] (%p50_p3) }
  0x15   : > { %161 = vst [vmem:[%s683_s26 + $0x10] sm:$0xf] %v160_v4  ;;  %v166_v7 = vld [vmem:[%s676_s25 + $0x38] sm:$0xf]  ;;  %163 = vst [vmem:[%s683_s26 + $0x14] sm:$0xf] %v162_v5 }
  0x16   : > { %165 = vst [vmem:[%s683_s26 + $0x18] sm:$0xf] %v164_v6  ;;  %167 = vst [vmem:[%s683_s26 + $0x1c] sm:$0xf] %v166_v7  ;;  %v168_v8 = vld [vmem:[%s676_s25 + $0x40] sm:$0xf] }
  0x17   : > { %v170_v9 = vld [vmem:[%s676_s25 + $0x48] sm:$0xf]  ;;  %v172_v10 = vld [vmem:[%s676_s25 + $0x50] sm:$0xf]  ;;  %169 = vst [vmem:[%s683_s26 + $0x20] sm:$0xf] %v168_v8 }
  0x18   : > { %171 = vst [vmem:[%s683_s26 + $0x24] sm:$0xf] %v170_v9  ;;  %173 = vst [vmem:[%s683_s26 + $0x28] sm:$0xf] %v172_v10  ;;  %v174_v11 = vld [vmem:[%s676_s25 + $0x58] sm:$0xf] }
  0x19   : > { %v176_v12 = vld [vmem:[%s676_s25 + $0x60] sm:$0xf]  ;;  %v178_v13 = vld [vmem:[%s676_s25 + $0x68] sm:$0xf]  ;;  %175 = vst [vmem:[%s683_s26 + $0x2c] sm:$0xf] %v174_v11 }
  0x1a   : > { %177 = vst [vmem:[%s683_s26 + $0x30] sm:$0xf] %v176_v12  ;;  %179 = vst [vmem:[%s683_s26 + $0x34] sm:$0xf] %v178_v13  ;;  %v180_v14 = vld [vmem:[%s676_s25 + $0x70] sm:$0xf] }
  0x1b   : > { %v182_v15 = vld [vmem:[%s676_s25 + $0x78] sm:$0xf]  ;;  %v184_v16 = vld [vmem:[%s676_s25 + $0x80] sm:$0xf]  ;;  %181 = vst [vmem:[%s683_s26 + $0x38] sm:$0xf] %v180_v14 }
  0x1c   : > { %183 = vst [vmem:[%s683_s26 + $0x3c] sm:$0xf] %v182_v15  ;;  %185 = vst [vmem:[%s683_s26 + $0x40] sm:$0xf] %v184_v16  ;;  %v186_v17 = vld [vmem:[%s676_s25 + $0x88] sm:$0xf] }
  0x1d   : > { %v188_v18 = vld [vmem:[%s676_s25 + $0x90] sm:$0xf]  ;;  %v190_v19 = vld [vmem:[%s676_s25 + $0x98] sm:$0xf]  ;;  %187 = vst [vmem:[%s683_s26 + $0x44] sm:$0xf] %v186_v17 }
  0x1e   : > { %189 = vst [vmem:[%s683_s26 + $0x48] sm:$0xf] %v188_v18  ;;  %191 = vst [vmem:[%s683_s26 + $0x4c] sm:$0xf] %v190_v19  ;;  %v192_v20 = vld [vmem:[%s676_s25 + $0xa0] sm:$0xf] }
  0x1f   : > { %v194_v21 = vld [vmem:[%s676_s25 + $0xa8] sm:$0xf]  ;;  %v196_v22 = vld [vmem:[%s676_s25 + $0xb0] sm:$0xf]  ;;  %193 = vst [vmem:[%s683_s26 + $0x50] sm:$0xf] %v192_v20 }
  0x20   : > { %195 = vst [vmem:[%s683_s26 + $0x54] sm:$0xf] %v194_v21  ;;  %197 = vst [vmem:[%s683_s26 + $0x58] sm:$0xf] %v196_v22  ;;  %v198_v23 = vld [vmem:[%s676_s25 + $0xb8] sm:$0xf] }
  0x21   : > { %v200_v24 = vld [vmem:[%s676_s25 + $0xc0] sm:$0xf]  ;;  %199 = vst [vmem:[%s683_s26 + $0x5c] sm:$0xf] %v198_v23 }
  0x22   : > { %201 = vst [vmem:[%s683_s26 + $0x60] sm:$0xf] %v200_v24 }
  0x23 PF: > { %p534_p5 = scmp.ge.s32.totalorder %s619_s14, 1  ;;  %p273_p6 = scmp.lt.s32.totalorder %s619_s14, 3 }
  0x25   : > { %p274_p7 = pnand %p534_p5, %p273_p6 }
  0x26   : > { %s280_s27 = sand.u32 (!%p274_p7), 1, %s611_s12   ;;  %v307_v25 = vld [vmem:[%s771_s0] sm:$0xff] (!%p274_p7)  ;;  %vm420_vm0 = vcmask (!%p274_p7), 588800   ;;  %v621_v27 = vmov (!%p274_p7), 0   ;;  %vm424_vm1 = vcmask (!%p274_p7), 1043456   ;;  %p302_p8 = scmp.lt.s32.totalorder (!%p274_p7), %s529_s15, 1 }
  0x27   : > { %277 = sbr.rel (%p274_p7) target bundleno = 312 (0x138), region = 69  ;;  %v333_v26 = vld [vmem:[%s773_s2] sm:$0xff] (!%p274_p7)  ;;  %428 = vmatprep.subr.bf16.mxu0 (!%p274_p7), %v621_v27  ;;  %v537_v28 = vcombine.high (!%p274_p7), %v307_v25, %v307_v25  ;;  %581 = vset.pattern.permute.xlu0 (!%p274_p7), %v621_v27  ;;  %v536_v43 = vcombine.low (!%p274_p7), %v307_v25, %v307_v25 }
  0x28   : > { %s555_s5 = smul.u32 (!%p274_p7), 100, %s280_s27  ;;  %336 = vperm.xlu0 (!%p274_p7), %581, %v333_v26  }
  0x29   : > { %551 = vmatprep.mubr.msk.bf16.mxu0 (!%p274_p7), %vm420_vm0, %v537_v28 }
  0x2a   : > { %s739_s6 = scalar_lea.vmem (!%p274_p7), [#allocation2], %s555_s5 }
  0x2b   : > { %v582_v29 = vld [vmem:[%s739_s6] sm:$0xff] (!%p274_p7)   ;;  %v583_v30 = vld [vmem:[%s739_s6 + $0x8] sm:$0xff] (!%p274_p7)   ;;  %v584_v31 = vld [vmem:[%s739_s6 + $0x10] sm:$0xff] (!%p274_p7)  }
  0x2c   : > { %429 = vmatpush1.bf16.msra.mxu0 (!%p274_p7), %v582_v29  ;;  %v585_v32 = vld [vmem:[%s739_s6 + $0x18] sm:$0xff] (!%p274_p7)   ;;  %v586_v33 = vld [vmem:[%s739_s6 + $0x20] sm:$0xff] (!%p274_p7)   ;;  %v587_v34 = vld [vmem:[%s739_s6 + $0x28] sm:$0xff] (!%p274_p7)  }
  0x2d   : > { %430 = vmatprep.subr.bf16.mxu0 (!%p274_p7), %v621_v27  ;;  %v588_v35 = vld [vmem:[%s739_s6 + $0x30] sm:$0xff] (!%p274_p7)   ;;  %v589_v36 = vld [vmem:[%s739_s6 + $0x38] sm:$0xff] (!%p274_p7)   ;;  %v590_v37 = vld [vmem:[%s739_s6 + $0x40] sm:$0xff] (!%p274_p7)  }
  0x2e   : > { %v591_v38 = vld [vmem:[%s739_s6 + $0x48] sm:$0xff]   ;;  %v592_v39 = vld [vmem:[%s739_s6 + $0x50] sm:$0xff]   ;;  %v593_v40 = vld [vmem:[%s739_s6 + $0x58] sm:$0xff]   ;;  %s779_s15 = smov (!%p302_p8, %s529_s15), 1 }
  0x2f   : > { %v594_v41 = vld [vmem:[%s739_s6 + $0x60] ss:$0 sps:$4 sm:$0xff]   ;;  %s535_s7 = sshll.u32 %s779_s15, 2 }
  0x30   : > { %431 = vmatpush1.bf16.msra.mxu0 %v583_v30  ;;  %v426_v42 = vsel %vm424_vm1, %v594_v41, 0  ;;  %s305_s10 = scalar_lea.vmem %s774_s3, %s535_s7 }
  0x31   : > { %432 = vmatprep.subr.bf16.mxu0 %v621_v27 }
  0x34   : > { %433 = vmatpush1.bf16.msra.mxu0 %v584_v31 }
  0x35   : > { %434 = vmatprep.subr.bf16.mxu0 %v621_v27 }
  0x38   : > { %435 = vmatpush1.bf16.msra.mxu0 %v585_v32 }
  0x39   : > { %436 = vmatprep.subr.bf16.mxu0 %v621_v27 }
  0x3c   : > { %437 = vmatpush1.bf16.msra.mxu0 %v586_v33 }
  0x3d   : > { %438 = vmatprep.subr.bf16.mxu0 %v621_v27 }
  0x40   : > { %439 = vmatpush1.bf16.msra.mxu0 %v587_v34 }
  0x41   : > { %440 = vmatprep.subr.bf16.mxu0 %v621_v27 }
  0x44   : > { %441 = vmatpush1.bf16.msra.mxu0 %v588_v35 }
  0x45   : > { %442 = vmatprep.subr.bf16.mxu0 %v621_v27 }
  0x48   : > { %443 = vmatpush1.bf16.msra.mxu0 %v589_v36 }
  0x49   : > { %444 = vmatprep.subr.bf16.mxu0 %v621_v27 }
  0x4c   : > { %445 = vmatpush1.bf16.msra.mxu0 %v590_v37 }
  0x4d   : > { %446 = vmatprep.subr.bf16.mxu0 %v621_v27 }
  0x50   : > { %447 = vmatpush1.bf16.msra.mxu0 %v591_v38 }
  0x51   : > { %448 = vmatprep.subr.bf16.mxu0 %v621_v27 }
  0x54   : > { %449 = vmatpush1.bf16.msra.mxu0 %v592_v39 }
  0x55   : > { %450 = vmatprep.subr.bf16.mxu0 %v621_v27 }
  0x58   : > { %451 = vmatpush1.bf16.msra.mxu0 %v593_v40 }
  0x59   : > { %452 = vmatprep.subr.bf16.mxu0 %v621_v27 }
  0x5c   : > { %453 = vmatpush1.bf16.msra.mxu0 %v426_v42 }
  0x5f   : > { %461 = vmatmul.mubr.bf16.vlgmr.msra.gmra.mrb[0].mxu0 %v536_v43 }
  0xa7   : > { %v337_v44 = vpop.permute.xlu0 %336 }
 0x132   : > { %v462_v45 = vpop.f32.mrb[0].mxu0 }
 0x133   : > { %v463_v46 = vadd.f32 %v462_v45, %v337_v44  ;;  %v464_v47 = vpop.f32.mrb[1].mxu0 }
 0x134   : > { %v465_v48 = vpop.f32.mrb[2].mxu0 }
 0x135   : > { %v468_v49 = vpack.c.bf16 %v463_v46, %v463_v46  ;;  %v466_v50 = vpop.f32.mrb[3].mxu0 }
 0x137   : > { %469 = vst [vmem:[%s305_s10] sm:$0xf] %v468_v49 }
 0x138 PF: > { %p10_p9 = scmp.ge.s32.totalorder %s659_s16, 4   ;;  %s775_s12 = smov %s615_s13 }
 0x139   : > { %s776_s13 = smov %s668_s19  ;;  %s777_s14 = smov %s659_s16 }
 0x13a   :  { %12 = sbr.rel (!%p10_p9) target bundleno = 2 (0x2), region = 108 }

// kernel: forward.37
= control target key start
LH: loop header
LB: loop body
LE: loop exit
PB: predicated region body
PF: predicated region fallthrough
CT: control target
= control target key end

     0   :  { %s513_s12 = smov 0   ;;  %s515_s13 = smov 0   ;;  %s573_s0 = inlined_call_operand.vmem [shape: bf16[8,72], index: 0, kind: input, shape index: {}]   ;;  %s574_s1 = inlined_call_operand.vmem [shape: bf16[72,256], index: 1, kind: input, shape index: {}]   ;;  %s575_s2 = inlined_call_operand.vmem [shape: f32[8,1], index: 2, kind: input, shape index: {}]   ;;  %s576_s3 = inlined_call_operand.vmem [shape: bf16[8,256], index: 3, kind: output, shape index: {}]  }
   0x1   :  { %s517_s14 = smov 0  }
   0x2 LB: > { %s396_s15 = sadd.s32 4294967295, %s488_s14   ;;  %s530_s16 = sadd.s32 1, %s488_s14   ;;  %s488_s14 = sphi %s517_s14, %s579_s14   ;;  %s484_s13 = sphi %s515_s13, %s578_s13   ;;  %s480_s12 = sphi %s513_s12, %s577_s12  }
   0x3   : > { %s38_s17 = ssub.s32 %s488_s14, %s530_s16  ;;  %s41_s18 = sadd.s32 1, %s484_s13 }
   0x4   : > { %p39_p0 = scmp.eq.s32.totalorder %s38_s17, 0  ;;  %p48_p1 = scmp.ne.s32.totalorder %s484_s13, %s480_s12 }
   0x5   : > { %p49_p2 = scmp.eq.s32.totalorder %s488_s14, 0  ;;  %p399_p4 = scmp.ge.s32.totalorder %s488_s14, 2 }
   0x6   : > { %s539_s19 = scalar_select %p39_p0, %s484_s13, %s41_s18  }
   0x7   : > { %p50_p3 = por %p49_p2, %p48_p1  ;;  %127 = sbr.rel (%p399_p4) target bundleno = 24 (0x18), region = 24 }
   0xe   : > { %130 = sbr.rel (!%p50_p3) target bundleno = 24 (0x18), region = 28  ;;  %s132_s20 = sand.u32 (%p50_p3), 1, %s484_s13  }
   0xf   : > { %s400_s21 = sshll.u32 (%p50_p3), %s488_s14, 2  ;;  %s431_s22 = smul.u32 (%p50_p3), 36, %s132_s20 }
  0x10   : > { %s136_s25 = scalar_lea.vmem (%p50_p3), %s574_s1, %s400_s21 }
  0x11   : > { %v152_v0 = vld [vmem:[%s136_s25] sm:$0xf] (%p50_p3)  ;;  %v154_v1 = vld [vmem:[%s136_s25 + $0x8] sm:$0xf] (%p50_p3)  ;;  %v156_v2 = vld [vmem:[%s136_s25 + $0x10] sm:$0xf] (%p50_p3) }
  0x12   : > { %v158_v3 = vld [vmem:[%s136_s25 + $0x18] sm:$0xf] (%p50_p3)  ;;  %v160_v4 = vld [vmem:[%s136_s25 + $0x20] sm:$0xf] (%p50_p3)  ;;  %s134_s26 = scalar_lea.vmem (%p50_p3), [#allocation2], %s431_s22 }
  0x13   : > { %153 = vst [vmem:[%s134_s26] sm:$0xf] (%p50_p3), %v152_v0  ;;  %155 = vst [vmem:[%s134_s26 + $0x4] sm:$0xf] (%p50_p3), %v154_v1  ;;  %v162_v5 = vld [vmem:[%s136_s25 + $0x28] sm:$0xf] (%p50_p3) }
  0x14   : > { %157 = vst [vmem:[%s134_s26 + $0x8] sm:$0xf] (%p50_p3), %v156_v2  ;;  %159 = vst [vmem:[%s134_s26 + $0xc] sm:$0xf] (%p50_p3), %v158_v3  ;;  %v164_v6 = vld [vmem:[%s136_s25 + $0x30] sm:$0xf] (%p50_p3) }
  0x15   : > { %161 = vst [vmem:[%s134_s26 + $0x10] sm:$0xf] %v160_v4  ;;  %v166_v7 = vld [vmem:[%s136_s25 + $0x38] sm:$0xf]  ;;  %163 = vst [vmem:[%s134_s26 + $0x14] sm:$0xf] %v162_v5 }
  0x16   : > { %165 = vst [vmem:[%s134_s26 + $0x18] sm:$0xf] %v164_v6  ;;  %167 = vst [vmem:[%s134_s26 + $0x1c] sm:$0xf] %v166_v7  ;;  %v168_v8 = vld [vmem:[%s136_s25 + $0x40] sm:$0xf] }
  0x17   : > { %169 = vst [vmem:[%s134_s26 + $0x20] sm:$0xf] %v168_v8 }
  0x18 PF: > { %p401_p5 = scmp.ge.s32.totalorder %s488_s14, 1  ;;  %p209_p6 = scmp.lt.s32.totalorder %s488_s14, 3 }
  0x1a   : > { %p210_p7 = pnand %p401_p5, %p209_p6 }
  0x1b   : > { %s216_s27 = sand.u32 (!%p210_p7), 1, %s480_s12   ;;  %v490_v9 = vmov (!%p210_p7), 0.0   ;;  %vm491_vm0 = vmmov (!%p210_p7), 0   ;;  %v253_v10 = vld [vmem:[%s575_s2] sm:$0xff] (!%p210_p7)  ;;  %v492_v11 = vmov (!%p210_p7), 0   ;;  %vm290_vm1 = vcmask (!%p210_p7), 1043456  }
  0x1c   : > { %213 = sbr.rel (%p210_p7) target bundleno = 271 (0x10f), region = 69  ;;  %417 = vmatprep.subr.bf16.mxu0 (!%p210_p7), %v490_v9  ;;  %427 = vmatprep.mubr.msk.bf16.mxu0 (!%p210_p7), %vm491_vm0, %v490_v9  ;;  %v243_v18 = vld [vmem:[%s573_s0] sm:$0xf] (!%p210_p7)  ;;  %vm286_vm2 = vcmask (!%p210_p7), 588800   ;;  %p238_p8 = scmp.lt.s32.totalorder (!%p210_p7), %s396_s15, 1 }
  0x1d   : > { %s432_s28 = smul.u32 (!%p210_p7), 36, %s216_s27  ;;  %460 = vset.pattern.permute.xlu0 (!%p210_p7), %v492_v11 }
  0x1e   : > { %256 = vperm.xlu0 (!%p210_p7), %460, %v253_v10  }
  0x1f   : > { %s218_s4 = scalar_lea.vmem (!%p210_p7), [#allocation2], %s432_s28 }
  0x20   : > { %v461_v12 = vld [vmem:[%s218_s4] sm:$0xff] (!%p210_p7)   ;;  %v462_v13 = vld [vmem:[%s218_s4 + $0x8] sm:$0xff] (!%p210_p7)   ;;  %v463_v14 = vld [vmem:[%s218_s4 + $0x10] sm:$0xff] (!%p210_p7)  }
  0x21   : > { %418 = vmatpush3.bf16.msra.mxu0 (!%p210_p7), %v461_v12  ;;  %v464_v15 = vld [vmem:[%s218_s4 + $0x18] sm:$0xff] (!%p210_p7)   ;;  %v465_v16 = vld [vmem:[%s218_s4 + $0x20] ss:$0 sps:$4 sm:$0xff] (!%p210_p7)  }
  0x22   : > { %419 = vmatprep.subr.bf16.mxu0 (!%p210_p7), %v490_v9  ;;  %v292_v17 = vsel (!%p210_p7), %vm290_vm1, %v465_v16, 0 }
  0x23   : > { %s581_s15 = smov (!%p238_p8, %s396_s15), 1 }
  0x24   : > { %s402_s7 = sshll.u32 %s581_s15, 2 }
  0x25   : > { %420 = vmatpush3.bf16.msra.mxu0 %v462_v13  ;;  %s241_s10 = scalar_lea.vmem %s576_s3, %s402_s7 }
  0x26   : > { %421 = vmatprep.subr.bf16.mxu0 %v490_v9 }
  0x29   : > { %422 = vmatpush3.bf16.msra.mxu0 %v463_v14 }
  0x2a   : > { %423 = vmatprep.subr.bf16.mxu0 %v490_v9 }
  0x2d   : > { %424 = vmatpush3.bf16.msra.mxu0 %v464_v15 }
  0x2e   : > { %425 = vmatprep.subr.bf16.mxu0 %v490_v9 }
  0x31   : > { %426 = vmatpush3.bf16.msra.mxu0 %v292_v17 }
  0x34   : > { %428 = vmatmul.mubr.msk.bf16.vlgmr.msra.gmra.mrb[0].mxu0 %vm286_vm2, %v243_v18 }
  0x9d   : > { %v257_v19 = vpop.permute.xlu0 %256 }
 0x107   : > { %v328_v20 = vpop.f32.mrb[0].mxu0 }
 0x108   : > { %v329_v21 = vadd.f32 %v328_v20, %v257_v19  ;;  %v429_v22 = vpop.f32.mrb[1].mxu0 }
 0x109   : > { %v331_v23 = vpop.f32.mrb[2].mxu0 }
 0x10a   : > { %v334_v24 = vmax.f32 %v329_v21, 0.0  ;;  %v430_v25 = vpop.f32.mrb[3].mxu0 }
 0x10c   : > { %v335_v26 = vpack.c.bf16 %v334_v24, %v334_v24 }
 0x10e   : > { %336 = vst [vmem:[%s241_s10] sm:$0xf] %v335_v26 }
 0x10f PF: > { %p10_p9 = scmp.ge.s32.totalorder %s530_s16, 4   ;;  %s577_s12 = smov %s484_s13 }
 0x110   : > { %s578_s13 = smov %s539_s19  ;;  %s579_s14 = smov %s530_s16 }
 0x111   :  { %12 = sbr.rel (!%p10_p9) target bundleno = 2 (0x2), region = 108 }

// kernel: forward.38
= control target key start
LH: loop header
LB: loop body
LE: loop exit
PB: predicated region body
PF: predicated region fallthrough
CT: control target
= control target key end

     0   :  { %s475_s12 = smov 0   ;;  %s477_s13 = smov 0   ;;  %s535_s0 = inlined_call_operand.vmem [shape: bf16[8,48], index: 0, kind: input, shape index: {}]   ;;  %s536_s1 = inlined_call_operand.vmem [shape: bf16[48,256], index: 1, kind: input, shape index: {}]   ;;  %s537_s2 = inlined_call_operand.vmem [shape: f32[8,1], index: 2, kind: input, shape index: {}]   ;;  %s538_s3 = inlined_call_operand.vmem [shape: bf16[8,256], index: 3, kind: output, shape index: {}]  }
   0x1   :  { %s479_s14 = smov 0  }
   0x2 LB: > { %s368_s15 = sadd.s32 4294967295, %s450_s14   ;;  %s492_s16 = sadd.s32 1, %s450_s14   ;;  %s450_s14 = sphi %s479_s14, %s541_s14   ;;  %s446_s13 = sphi %s477_s13, %s540_s13   ;;  %s442_s12 = sphi %s475_s12, %s539_s12  }
   0x3   : > { %s38_s17 = ssub.s32 %s450_s14, %s492_s16  ;;  %s41_s18 = sadd.s32 1, %s446_s13 }
   0x4   : > { %p39_p0 = scmp.eq.s32.totalorder %s38_s17, 0  ;;  %p48_p1 = scmp.ne.s32.totalorder %s446_s13, %s442_s12 }
   0x5   : > { %p49_p2 = scmp.eq.s32.totalorder %s450_s14, 0  ;;  %p371_p4 = scmp.ge.s32.totalorder %s450_s14, 2 }
   0x6   : > { %s501_s19 = scalar_select %p39_p0, %s446_s13, %s41_s18  }
   0x7   : > { %p50_p3 = por %p49_p2, %p48_p1  ;;  %127 = sbr.rel (%p371_p4) target bundleno = 22 (0x16), region = 24 }
   0xe   : > { %130 = sbr.rel (!%p50_p3) target bundleno = 22 (0x16), region = 28  ;;  %s132_s20 = sand.u32 (%p50_p3), 1, %s446_s13  }
   0xf   : > { %s372_s21 = sshll.u32 (%p50_p3), %s450_s14, 2  ;;  %s395_s22 = smul.u32 (%p50_p3), 24, %s132_s20 }
  0x10   : > { %s136_s25 = scalar_lea.vmem (%p50_p3), %s536_s1, %s372_s21 }
  0x11   : > { %v152_v0 = vld [vmem:[%s136_s25] sm:$0xf] (%p50_p3)  ;;  %v154_v1 = vld [vmem:[%s136_s25 + $0x8] sm:$0xf] (%p50_p3)  ;;  %v156_v2 = vld [vmem:[%s136_s25 + $0x10] sm:$0xf] (%p50_p3) }
  0x12   : > { %v158_v3 = vld [vmem:[%s136_s25 + $0x18] sm:$0xf] (%p50_p3)  ;;  %v160_v4 = vld [vmem:[%s136_s25 + $0x20] sm:$0xf] (%p50_p3)  ;;  %s134_s26 = scalar_lea.vmem (%p50_p3), [#allocation2], %s395_s22 }
  0x13   : > { %153 = vst [vmem:[%s134_s26] sm:$0xf] (%p50_p3), %v152_v0  ;;  %155 = vst [vmem:[%s134_s26 + $0x4] sm:$0xf] (%p50_p3), %v154_v1  ;;  %v162_v5 = vld [vmem:[%s136_s25 + $0x28] sm:$0xf] (%p50_p3) }
  0x14   : > { %157 = vst [vmem:[%s134_s26 + $0x8] sm:$0xf] (%p50_p3), %v156_v2  ;;  %159 = vst [vmem:[%s134_s26 + $0xc] sm:$0xf] (%p50_p3), %v158_v3 }
  0x15   : > { %161 = vst [vmem:[%s134_s26 + $0x10] sm:$0xf] %v160_v4  ;;  %163 = vst [vmem:[%s134_s26 + $0x14] sm:$0xf] %v162_v5 }
  0x16 PF: > { %p373_p5 = scmp.ge.s32.totalorder %s450_s14, 1  ;;  %p197_p6 = scmp.lt.s32.totalorder %s450_s14, 3 }
  0x18   : > { %p198_p7 = pnand %p373_p5, %p197_p6 }
  0x19   : > { %s204_s27 = sand.u32 (!%p198_p7), 1, %s442_s12   ;;  %v452_v6 = vmov (!%p198_p7), 0.0   ;;  %vm453_vm0 = vmmov (!%p198_p7), 0   ;;  %v238_v7 = vld [vmem:[%s537_s2] sm:$0xff] (!%p198_p7)  ;;  %v454_v8 = vmov (!%p198_p7), 0   ;;  %vm262_vm1 = vcmask (!%p198_p7), 392192  }
  0x1a   : > { %201 = sbr.rel (%p198_p7) target bundleno = 261 (0x105), region = 69  ;;  %385 = vmatprep.subr.bf16.mxu0 (!%p198_p7), %v452_v6  ;;  %391 = vmatprep.mubr.msk.bf16.mxu0 (!%p198_p7), %vm453_vm0, %v452_v6  ;;  %v231_v12 = vld [vmem:[%s535_s0] sm:$0xf] (!%p198_p7)  ;;  %p226_p8 = scmp.lt.s32.totalorder (!%p198_p7), %s368_s15, 1 }
  0x1b   : > { %s396_s28 = smul.u32 (!%p198_p7), 24, %s204_s27  ;;  %424 = vset.pattern.permute.xlu0 (!%p198_p7), %v454_v8 }
  0x1c   : > { %241 = vperm.xlu0 (!%p198_p7), %424, %v238_v7  }
  0x1d   : > { %s206_s4 = scalar_lea.vmem (!%p198_p7), [#allocation2], %s396_s28 }
  0x1e   : > { %v425_v9 = vld [vmem:[%s206_s4] sm:$0xff] (!%p198_p7)   ;;  %v426_v10 = vld [vmem:[%s206_s4 + $0x8] sm:$0xff] (!%p198_p7)   ;;  %v427_v11 = vld [vmem:[%s206_s4 + $0x10] sm:$0xff] (!%p198_p7)  }
  0x1f   : > { %386 = vmatpush3.bf16.msra.mxu0 (!%p198_p7), %v425_v9 }
  0x20   : > { %387 = vmatprep.subr.bf16.mxu0 (!%p198_p7), %v452_v6 }
  0x21   : > { %s543_s15 = smov (!%p226_p8, %s368_s15), 1 }
  0x22   : > { %s374_s7 = sshll.u32 %s543_s15, 2 }
  0x23   : > { %388 = vmatpush3.bf16.msra.mxu0 %v426_v10  ;;  %s229_s10 = scalar_lea.vmem %s538_s3, %s374_s7 }
  0x24   : > { %389 = vmatprep.subr.bf16.mxu0 %v452_v6 }
  0x27   : > { %390 = vmatpush3.bf16.msra.mxu0 %v427_v11 }
  0x2a   : > { %392 = vmatmul.mubr.msk.bf16.vlgmr.msra.gmra.mrb[0].mxu0 %vm262_vm1, %v231_v12 }
  0x9b   : > { %v242_v13 = vpop.permute.xlu0 %241 }
  0xfd   : > { %v300_v14 = vpop.f32.mrb[0].mxu0 }
  0xfe   : > { %v301_v15 = vadd.f32 %v300_v14, %v242_v13  ;;  %v393_v16 = vpop.f32.mrb[1].mxu0 }
  0xff   : > { %v303_v17 = vpop.f32.mrb[2].mxu0 }
 0x100   : > { %v306_v18 = vmax.f32 %v301_v15, 0.0  ;;  %v394_v19 = vpop.f32.mrb[3].mxu0 }
 0x102   : > { %v307_v20 = vpack.c.bf16 %v306_v18, %v306_v18 }
 0x104   : > { %308 = vst [vmem:[%s229_s10] sm:$0xf] %v307_v20 }
 0x105 PF: > { %p10_p9 = scmp.ge.s32.totalorder %s492_s16, 4   ;;  %s539_s12 = smov %s446_s13 }
 0x106   : > { %s540_s13 = smov %s501_s19  ;;  %s541_s14 = smov %s492_s16 }
 0x107   :  { %12 = sbr.rel (!%p10_p9) target bundleno = 2 (0x2), region = 108 }

// kernel: forward.40
= control target key start
LH: loop header
LB: loop body
LE: loop exit
PB: predicated region body
PF: predicated region fallthrough
CT: control target
= control target key end

     0   :  { %s454_s12 = smov 0   ;;  %s456_s13 = smov 0   ;;  %s514_s0 = inlined_call_operand.vmem [shape: bf16[8,32], index: 0, kind: input, shape index: {}]   ;;  %s515_s1 = inlined_call_operand.vmem [shape: bf16[32,256], index: 1, kind: input, shape index: {}]   ;;  %s516_s2 = inlined_call_operand.vmem [shape: f32[8,1], index: 2, kind: input, shape index: {}]   ;;  %s517_s3 = inlined_call_operand.vmem [shape: bf16[8,256], index: 3, kind: output, shape index: {}]  }
   0x1   :  { %s458_s14 = smov 0  }
   0x2 LB: > { %s352_s15 = sadd.s32 4294967295, %s429_s14   ;;  %s471_s16 = sadd.s32 1, %s429_s14   ;;  %s429_s14 = sphi %s458_s14, %s520_s14   ;;  %s425_s13 = sphi %s456_s13, %s519_s13   ;;  %s421_s12 = sphi %s454_s12, %s518_s12  }
   0x3   : > { %s38_s17 = ssub.s32 %s429_s14, %s471_s16  ;;  %s41_s18 = sadd.s32 1, %s425_s13 }
   0x4   : > { %p39_p0 = scmp.eq.s32.totalorder %s38_s17, 0  ;;  %p48_p1 = scmp.ne.s32.totalorder %s425_s13, %s421_s12 }
   0x5   : > { %p49_p2 = scmp.eq.s32.totalorder %s429_s14, 0  ;;  %p355_p4 = scmp.ge.s32.totalorder %s429_s14, 2 }
   0x6   : > { %s480_s19 = scalar_select %p39_p0, %s425_s13, %s41_s18  }
   0x7   : > { %p50_p3 = por %p49_p2, %p48_p1  ;;  %127 = sbr.rel (%p355_p4) target bundleno = 21 (0x15), region = 24 }
   0xe   : > { %130 = sbr.rel (!%p50_p3) target bundleno = 21 (0x15), region = 28  ;;  %s132_s20 = sand.u32 (%p50_p3), 1, %s425_s13  }
   0xf   : > { %s357_s21 = sshll.u32 (%p50_p3), %s429_s14, 2  ;;  %s356_s22 = sshll.u32 (%p50_p3), %s132_s20, 4 }
  0x10   : > { %s136_s25 = scalar_lea.vmem (%p50_p3), %s515_s1, %s357_s21  ;;  %s134_s26 = scalar_lea.vmem (%p50_p3), [#allocation2], %s356_s22 }
  0x11   : > { %v152_v0 = vld [vmem:[%s136_s25] sm:$0xf] (%p50_p3)  ;;  %v154_v1 = vld [vmem:[%s136_s25 + $0x8] sm:$0xf] (%p50_p3)  ;;  %v156_v2 = vld [vmem:[%s136_s25 + $0x10] sm:$0xf] (%p50_p3) }
  0x12   : > { %153 = vst [vmem:[%s134_s26] sm:$0xf] (%p50_p3), %v152_v0  ;;  %155 = vst [vmem:[%s134_s26 + $0x4] sm:$0xf] (%p50_p3), %v154_v1  ;;  %v158_v3 = vld [vmem:[%s136_s25 + $0x18] sm:$0xf] (%p50_p3) }
  0x13   : > { %157 = vst [vmem:[%s134_s26 + $0x8] sm:$0xf] (%p50_p3), %v156_v2  ;;  %159 = vst [vmem:[%s134_s26 + $0xc] sm:$0xf] (%p50_p3), %v158_v3 }
  0x15 PF: > { %p358_p5 = scmp.ge.s32.totalorder %s429_s14, 1  ;;  %p189_p6 = scmp.lt.s32.totalorder %s429_s14, 3 }
  0x17   : > { %p190_p7 = pnand %p358_p5, %p189_p6 }
  0x18   : > { %s196_s27 = sand.u32 (!%p190_p7), 1, %s421_s12   ;;  %v431_v4 = vmov (!%p190_p7), 0.0   ;;  %vm432_vm0 = vmmov (!%p190_p7), 0   ;;  %v228_v5 = vld [vmem:[%s516_s2] sm:$0xff] (!%p190_p7)  ;;  %v433_v6 = vmov (!%p190_p7), 0   ;;  %vm246_vm1 = vcmask (!%p190_p7), 261120  }
  0x19   : > { %193 = sbr.rel (%p190_p7) target bundleno = 254 (0xfe), region = 69  ;;  %369 = vmatprep.subr.bf16.mxu0 (!%p190_p7), %v431_v4  ;;  %s359_s28 = sshll.u32 (!%p190_p7), %s196_s27, 4  ;;  %373 = vmatprep.mubr.msk.bf16.mxu0 (!%p190_p7), %vm432_vm0, %v431_v4  ;;  %v223_v9 = vld [vmem:[%s514_s0] sm:$0xf] (!%p190_p7) }
  0x1a   : > { %404 = vset.pattern.permute.xlu0 (!%p190_p7), %v433_v6  ;;  %s198_s4 = scalar_lea.vmem (!%p190_p7), [#allocation2], %s359_s28  ;;  %p218_p8 = scmp.lt.s32.totalorder (!%p190_p7), %s352_s15, 1 }
  0x1b   : > { %v405_v7 = vld [vmem:[%s198_s4] sm:$0xff] (!%p190_p7)   ;;  %231 = vperm.xlu0 (!%p190_p7), %404, %v228_v5   ;;  %v406_v8 = vld [vmem:[%s198_s4 + $0x8] sm:$0xff] (!%p190_p7)  }
  0x1c   : > { %370 = vmatpush3.bf16.msra.mxu0 (!%p190_p7), %v405_v7 }
  0x1d   : > { %371 = vmatprep.subr.bf16.mxu0 (!%p190_p7), %v431_v4 }
  0x20   : > { %372 = vmatpush3.bf16.msra.mxu0 %v406_v8  ;;  %s522_s15 = smov (!%p218_p8, %s352_s15), 1 }
  0x21   : > { %s360_s7 = sshll.u32 %s522_s15, 2 }
  0x22   : > { %s221_s10 = scalar_lea.vmem %s517_s3, %s360_s7 }
  0x23   : > { %374 = vmatmul.mubr.msk.bf16.vlgmr.msra.gmra.mrb[0].mxu0 %vm246_vm1, %v223_v9 }
  0x9a   : > { %v232_v10 = vpop.permute.xlu0 %231 }
  0xf6   : > { %v284_v11 = vpop.f32.mrb[0].mxu0 }
  0xf7   : > { %v285_v12 = vadd.f32 %v284_v11, %v232_v10  ;;  %v375_v13 = vpop.f32.mrb[1].mxu0 }
  0xf8   : > { %v287_v14 = vpop.f32.mrb[2].mxu0 }
  0xf9   : > { %v290_v15 = vmax.f32 %v285_v12, 0.0  ;;  %v376_v16 = vpop.f32.mrb[3].mxu0 }
  0xfb   : > { %v291_v17 = vpack.c.bf16 %v290_v15, %v290_v15 }
  0xfd   : > { %292 = vst [vmem:[%s221_s10] sm:$0xf] %v291_v17 }
  0xfe PF: > { %p10_p9 = scmp.ge.s32.totalorder %s471_s16, 4   ;;  %s518_s12 = smov %s425_s13 }
  0xff   : > { %s519_s13 = smov %s480_s19  ;;  %s520_s14 = smov %s471_s16 }
 0x100   :  { %12 = sbr.rel (!%p10_p9) target bundleno = 2 (0x2), region = 108 }

// kernel: forward.46
= control target key start
LH: loop header
LB: loop body
LE: loop exit
PB: predicated region body
PF: predicated region fallthrough
CT: control target
= control target key end

     0   :  { %s677_s12 = smov 0   ;;  %s809_s0 = inlined_call_operand.vmem [shape: f32[16,512], index: 0, kind: input, shape index: {}]   ;;  %s810_s1 = inlined_call_operand.vmem [shape: f32[16,512], index: 1, kind: input, shape index: {}]   ;;  %s811_s2 = inlined_call_operand.vmem [shape: bf16[16,512], index: 2, kind: output, shape index: {0}]   ;;  %s812_s3 = inlined_call_operand.vmem [shape: f32[16,512], index: 3, kind: output, shape index: {1}]  }
   0x1 LB: > { %s574_s13 = sadd.s32 4294967295, %s655_s12   ;;  %p578_p0 = scmp.ge.s32.totalorder %s655_s12, 1  ;;  %s655_s12 = sphi %s677_s12, %s14_s12  }
   0x2   : > { %p150_p1 = scmp.lt.s32.totalorder %s655_s12, 3 }
   0x4   : > { %p151_p2 = pnand %p578_p0, %p150_p1 }
   0x5   : > { %p184_p3 = scmp.lt.s32.totalorder (!%p151_p2), %s574_s13, 1 }
   0x6   : > { %154 = sbr.rel (%p151_p2) target bundleno = 100 (0x64), region = 28 }
   0xd   : > { %s814_s13 = smov (!%p184_p3, %s574_s13), 1 }
   0xe   : > { %s685_s14 = sshll.u32 %s814_s13, 5  ;;  %s593_s15 = sshll.u32 %s814_s13, 4 }
   0xf   : > { %s188_s18 = scalar_lea.vmem %s809_s0, %s685_s14  ;;  %s193_s21 = scalar_lea.vmem %s810_s1, %s685_s14 }
  0x10   : > { %v204_v0 = vld [vmem:[%s188_s18] sm:$0xff]  ;;  %v205_v1 = vld [vmem:[%s188_s18 + $0x8] sm:$0xff]  ;;  %v214_v6 = vld [vmem:[%s193_s21 + $0x10] sm:$0xff]  ;;  %s198_s24 = scalar_lea.vmem %s811_s2, %s593_s15  ;;  %s793_s27 = scalar_lea.vmem %s812_s3, %s685_s14 }
  0x11   : > { %v212_v2 = vld [vmem:[%s193_s21] sm:$0xff]  ;;  %v597_v3 = vround.rtne.f32 %v204_v0  ;;  %v598_v4 = vround.rtne.f32 %v205_v1  ;;  %v213_v5 = vld [vmem:[%s193_s21 + $0x8] sm:$0xff]  ;;  %v215_v8 = vld [vmem:[%s193_s21 + $0x18] sm:$0xff]  ;;  %v218_v10 = vmax.f32 %v214_v6, 0.11 }
  0x12   : > { %v216_v7 = vmax.f32 %v212_v2, 0.11  ;;  %v217_v9 = vmax.f32 %v213_v5, 0.11  ;;  %v206_v12 = vld [vmem:[%s188_s18 + $0x10] sm:$0xff]  ;;  %v207_v13 = vld [vmem:[%s188_s18 + $0x18] sm:$0xff] }
  0x13   : > { %v595_v11 = vpack.c.bf16 %v598_v4, %v597_v3  ;;  %v219_v14 = vmax.f32 %v215_v8, 0.11  ;;  %v599_v15 = vround.rtne.f32 %v206_v12  ;;  %v600_v16 = vround.rtne.f32 %v207_v13 }
  0x14   : > { %609 = vrcp.f32 %v216_v7  ;;  %v228_v17 = vand.u32 2147483647, %v597_v3  ;;  %v229_v18 = vand.u32 2147483647, %v598_v4 }
  0x15   : > { %611 = vrcp.f32 %v217_v9  ;;  %468 = vst [vmem:[%s198_s24] sm:$0xff] %v595_v11  ;;  %v596_v19 = vpack.c.bf16 %v600_v16, %v599_v15  ;;  %v230_v24 = vand.u32 2147483647, %v599_v15  ;;  %v231_v27 = vand.u32 2147483647, %v600_v16 }
  0x16   : > { %613 = vrcp.f32 %v218_v10  ;;  %v232_v20 = vsub.f32 0.5, %v228_v17  ;;  %v336_v21 = vsub.f32 -0.5, %v228_v17  ;;  %v233_v22 = vsub.f32 0.5, %v229_v18 }
  0x17   : > { %615 = vrcp.f32 %v219_v14  ;;  %469 = vst [vmem:[%s198_s24 + $0x8] sm:$0xff] %v596_v19  ;;  %v337_v23 = vsub.f32 -0.5, %v229_v18  ;;  %v234_v32 = vsub.f32 0.5, %v230_v24  ;;  %v338_v36 = vsub.f32 -0.5, %v230_v24 }
  0x18   : > { %v235_v39 = vsub.f32 0.5, %v231_v27  ;;  %v339_v45 = vsub.f32 -0.5, %v231_v27 }
  0x1e   : > { %v610_v25 = vpop.eup %609 }
  0x1f   : > { %v612_v26 = vpop.eup %611  ;;  %v236_v28 = vmul.f32 %v610_v25, %v232_v20  ;;  %v340_v29 = vmul.f32 %v610_v25, %v336_v21 }
  0x20   : > { %v237_v30 = vmul.f32 %v612_v26, %v233_v22  ;;  %v341_v31 = vmul.f32 %v612_v26, %v337_v23  ;;  %v614_v35 = vpop.eup %613 }
  0x21   : > { %v698_v33 = vmul.f32 -0.70710677, %v236_v28  ;;  %v700_v34 = vmul.f32 -0.70710677, %v340_v29  ;;  %v616_v42 = vpop.eup %615  ;;  %v238_v48 = vmul.f32 %v614_v35, %v234_v32  ;;  %v342_v50 = vmul.f32 %v614_v35, %v338_v36 }
  0x22   : > { %v702_v37 = vmul.f32 -0.70710677, %v237_v30  ;;  %v704_v38 = vmul.f32 -0.70710677, %v341_v31  ;;  %v239_v54 = vmul.f32 %v616_v42, %v235_v39  ;;  %v343_v57 = vmul.f32 %v616_v42, %v339_v45 }
  0x23   : > { %v244_v40 = vand.u32 2147483647, %v698_v33  ;;  %v348_v41 = vand.u32 2147483647, %v700_v34  ;;  %v710_v56 = vmul.f32 -0.70710677, %v238_v48 }
  0x24   : > { %v245_v43 = vand.u32 2147483647, %v702_v37  ;;  %v349_v44 = vand.u32 2147483647, %v704_v38  ;;  %v712_v58 = vmul.f32 -0.70710677, %v342_v50 }
  0x25   : > { %v248_v46 = vmul.f32 0.3275911, %v244_v40  ;;  %v352_v47 = vmul.f32 0.3275911, %v348_v41  ;;  %v300_v59 = vsub.f32 0.0, %v244_v40  ;;  %v404_v63 = vsub.f32 0.0, %v348_v41 }
  0x26   : > { %v249_v49 = vmul.f32 0.3275911, %v245_v43  ;;  %v353_v53 = vmul.f32 0.3275911, %v349_v44  ;;  %v246_v61 = vand.u32 2147483647, %v710_v56 }
  0x27   : > { %v252_v51 = vadd.f32 1.0, %v248_v46  ;;  %v356_v52 = vadd.f32 1.0, %v352_v47  ;;  %v715_v62 = vmul.f32 -0.70710677, %v239_v54  ;;  %v350_v0 = vand.u32 2147483647, %v712_v58 }
  0x28   : > { %v253_v55 = vadd.f32 1.0, %v249_v49  ;;  %v357_v60 = vadd.f32 1.0, %v353_v53  ;;  %v250_v1 = vmul.f32 0.3275911, %v246_v61  ;;  %v719_v3 = vmul.f32 -0.70710677, %v343_v57 }
  0x29   : > { %617 = vrcp.f32 %v252_v51  ;;  %v247_v2 = vand.u32 2147483647, %v715_v62  ;;  %v301_v4 = vsub.f32 0.0, %v245_v43  ;;  %v405_v5 = vsub.f32 0.0, %v349_v44 }
  0x2a   : > { %619 = vrcp.f32 %v356_v52  ;;  %v354_v6 = vmul.f32 0.3275911, %v350_v0  ;;  %v304_v7 = vmul.f32 %v300_v59, %v244_v40  ;;  %v254_v8 = vadd.f32 1.0, %v250_v1 }
  0x2b   : > { %621 = vrcp.f32 %v253_v55  ;;  %v251_v9 = vmul.f32 0.3275911, %v247_v2  ;;  %v408_v10 = vmul.f32 %v404_v63, %v348_v41  ;;  %v302_v12 = vsub.f32 0.0, %v246_v61 }
  0x2c   : > { %623 = vrcp.f32 %v357_v60  ;;  %v358_v11 = vadd.f32 1.0, %v354_v6  ;;  %v351_v14 = vand.u32 2147483647, %v719_v3  ;;  %v305_v15 = vmul.f32 %v301_v4, %v245_v43 }
  0x2d   : > { %625 = vrcp.f32 %v254_v8  ;;  %v255_v13 = vadd.f32 1.0, %v251_v9  ;;  %v409_v16 = vmul.f32 %v405_v5, %v349_v44  ;;  %v308_v18 = vmul.f32 1.442695, %v304_v7 }
  0x2e   : > { %627 = vrcp.f32 %v358_v11  ;;  %v406_v19 = vsub.f32 0.0, %v350_v0  ;;  %v355_v20 = vmul.f32 0.3275911, %v351_v14  ;;  %v412_v23 = vmul.f32 1.442695, %v408_v10 }
  0x2f   : > { %v306_v25 = vmul.f32 %v302_v12, %v246_v61  ;;  %629 = vrcp.f32 %v255_v13  ;;  %v310_v28 = vmul.f32 1.442695, %v305_v15  ;;  %v414_v29 = vmul.f32 1.442695, %v409_v16 }
  0x30   : > { %v359_v26 = vadd.f32 1.0, %v355_v20  ;;  %631 = vpow2.f32 %v308_v18  ;;  %v410_v32 = vmul.f32 %v406_v19, %v350_v0  ;;  %v303_v35 = vsub.f32 0.0, %v247_v2 }
  0x31   : > { %v312_v42 = vmul.f32 1.442695, %v306_v25  ;;  %v407_v43 = vsub.f32 0.0, %v351_v14  ;;  %vm320_vm0 = vcmp.ge.f32.partialorder %v698_v33, 0.0  ;;  %vm424_vm1 = vcmp.ge.f32.partialorder %v700_v34, 0.0 }
  0x32   : > { %633 = vrcp.f32 %v359_v26  ;;  %v416_v49 = vmul.f32 1.442695, %v410_v32  ;;  %v307_v50 = vmul.f32 %v303_v35, %v247_v2  ;;  %vm321_vm2 = vcmp.ge.f32.partialorder %v702_v37, 0.0 }
  0x33   : > { %v722_v17 = vpop.eup %617  ;;  %635 = vpow2.f32 %v412_v23  ;;  %v411_v60 = vmul.f32 %v407_v43, %v351_v14  ;;  %vm425_vm3 = vcmp.ge.f32.partialorder %v704_v38, 0.0  ;;  %vm322_vm4 = vcmp.ge.f32.partialorder %v710_v56, 0.0 }
  0x34   : > { %v724_v21 = vpop.eup %619  ;;  %v264_v22 = vmul.f32 1.0614054, %v722_v17  ;;  %637 = vpow2.f32 %v310_v28  ;;  %v314_v6 = vmul.f32 1.442695, %v307_v50  ;;  %vm426_vm5 = vcmp.ge.f32.partialorder %v712_v58, 0.0 }
  0x35   : > { %v368_v24 = vmul.f32 1.0614054, %v724_v21  ;;  %v728_v30 = vpop.eup %621  ;;  %639 = vpow2.f32 %v414_v29  ;;  %v418_v15 = vmul.f32 1.442695, %v411_v60  ;;  %vm323_vm6 = vcmp.ge.f32.partialorder %v715_v62, 0.0 }
  0x36   : > { %v268_v27 = vadd.f32 -1.4531521, %v264_v22  ;;  %v265_v39 = vmul.f32 1.0614054, %v728_v30  ;;  %v732_v40 = vpop.eup %623  ;;  %641 = vpow2.f32 %v312_v42  ;;  %vm427_vm7 = vcmp.ge.f32.partialorder %v719_v3, 0.0 }
  0x37   : > { %v372_v31 = vadd.f32 -1.4531521, %v368_v24  ;;  %v369_v46 = vmul.f32 1.0614054, %v732_v40  ;;  %v736_v47 = vpop.eup %625  ;;  %643 = vpow2.f32 %v416_v49 }
  0x38   : > { %v272_v36 = vmul.f32 %v722_v17, %v268_v27  ;;  %v269_v45 = vadd.f32 -1.4531521, %v265_v39  ;;  %v738_v51 = vpop.eup %627  ;;  %v266_v55 = vmul.f32 1.0614054, %v736_v47  ;;  %645 = vpow2.f32 %v314_v6 }
  0x39   : > { %v376_v41 = vmul.f32 %v724_v21, %v372_v31  ;;  %v373_v54 = vadd.f32 -1.4531521, %v369_v46  ;;  %v370_v59 = vmul.f32 1.0614054, %v738_v51  ;;  %v746_v2 = vpop.eup %629  ;;  %647 = vpow2.f32 %v418_v15 }
  0x3a   : > { %v276_v44 = vadd.f32 1.4214138, %v272_v36  ;;  %v273_v53 = vmul.f32 %v728_v30, %v269_v45  ;;  %v270_v1 = vadd.f32 -1.4531521, %v266_v55  ;;  %v632_v11 = vpop.eup %631  ;;  %v267_v14 = vmul.f32 1.0614054, %v746_v2 }
  0x3b   : > { %v380_v48 = vadd.f32 1.4214138, %v376_v41  ;;  %v377_v0 = vmul.f32 %v732_v40, %v373_v54  ;;  %v374_v5 = vadd.f32 -1.4531521, %v370_v59 }
  0x3c   : > { %v280_v52 = vmul.f32 %v722_v17, %v276_v44  ;;  %v277_v63 = vadd.f32 1.4214138, %v273_v53  ;;  %v274_v10 = vmul.f32 %v736_v47, %v270_v1  ;;  %v756_v16 = vpop.eup %633  ;;  %v271_v26 = vadd.f32 -1.4531521, %v267_v14 }
  0x3d   : > { %v384_v57 = vmul.f32 %v724_v21, %v380_v48  ;;  %v381_v9 = vadd.f32 1.4214138, %v377_v0  ;;  %v378_v13 = vmul.f32 %v738_v51, %v374_v5  ;;  %v636_v23 = vpop.eup %635  ;;  %v371_v42 = vmul.f32 1.0614054, %v756_v16 }
  0x3e   : > { %v284_v61 = vadd.f32 -0.28449672, %v280_v52  ;;  %v281_v8 = vmul.f32 %v728_v30, %v277_v63  ;;  %v278_v22 = vadd.f32 1.4214138, %v274_v10  ;;  %v638_v27 = vpop.eup %637  ;;  %v275_v41 = vmul.f32 %v746_v2, %v271_v26 }
  0x3f   : > { %v388_v4 = vadd.f32 -0.28449672, %v384_v57  ;;  %v385_v20 = vmul.f32 %v732_v40, %v381_v9  ;;  %v382_v25 = vadd.f32 1.4214138, %v378_v13  ;;  %v640_v35 = vpop.eup %639 }
  0x40   : > { %v288_v7 = vmul.f32 %v722_v17, %v284_v61  ;;  %v285_v19 = vadd.f32 -0.28449672, %v281_v8  ;;  %v282_v32 = vmul.f32 %v736_v47, %v278_v22  ;;  %v642_v46 = vpop.eup %641  ;;  %v279_v50 = vadd.f32 1.4214138, %v275_v41 }
  0x41   : > { %v392_v12 = vmul.f32 %v724_v21, %v388_v4  ;;  %v389_v31 = vadd.f32 -0.28449672, %v385_v20  ;;  %v386_v39 = vmul.f32 %v738_v51, %v382_v25  ;;  %v644_v57 = vpop.eup %643 }
  0x42   : > { %v292_v18 = vadd.f32 0.2548296, %v288_v7  ;;  %v289_v29 = vmul.f32 %v728_v30, %v285_v19  ;;  %v286_v45 = vadd.f32 -0.28449672, %v282_v32  ;;  %v283_v61 = vmul.f32 %v746_v2, %v279_v50  ;;  %v646_v13 = vpop.eup %645 }
  0x43   : > { %v396_v24 = vadd.f32 0.2548296, %v392_v12  ;;  %v390_v49 = vadd.f32 -0.28449672, %v386_v39 }
  0x44   : > { %v296_v28 = vmul.f32 %v722_v17, %v292_v18  ;;  %v293_v44 = vadd.f32 0.2548296, %v289_v29  ;;  %v393_v17 = vmul.f32 %v732_v40, %v389_v31  ;;  %v290_v55 = vmul.f32 %v736_v47, %v286_v45 }
  0x45   : > { %v400_v36 = vmul.f32 %v724_v21, %v396_v24  ;;  %v375_v21 = vadd.f32 -1.4531521, %v371_v42  ;;  %v394_v60 = vmul.f32 %v738_v51, %v390_v49  ;;  %v287_v8 = vadd.f32 -0.28449672, %v283_v61 }
  0x46   : > { %v316_v43 = vmul.f32 %v632_v11, %v296_v28  ;;  %v297_v53 = vmul.f32 %v728_v30, %v293_v44  ;;  %v397_v54 = vadd.f32 0.2548296, %v393_v17  ;;  %v294_v5 = vadd.f32 0.2548296, %v290_v55 }
  0x47   : > { %v420_v48 = vmul.f32 %v636_v23, %v400_v36  ;;  %v379_v63 = vmul.f32 %v756_v16, %v375_v21  ;;  %v398_v7 = vadd.f32 0.2548296, %v394_v60  ;;  %v291_v33 = vmul.f32 %v746_v2, %v287_v8 }
  0x48   : > { %v324_v52 = vsub.f32 2.0, %v316_v43  ;;  %v317_v1 = vmul.f32 %v638_v27, %v297_v53  ;;  %v401_v4 = vmul.f32 %v732_v40, %v397_v54  ;;  %v298_v12 = vmul.f32 %v736_v47, %v294_v5 }
  0x49   : > { %v428_v59 = vsub.f32 2.0, %v420_v48  ;;  %v402_v14 = vmul.f32 %v738_v51, %v398_v7  ;;  %v383_v18 = vadd.f32 1.4214138, %v379_v63  ;;  %v295_v24 = vadd.f32 0.2548296, %v291_v33 }
  0x4a   : > { %v328_v0 = vsel %vm320_vm0, %v316_v43, %v324_v52  ;;  %v325_v10 = vsub.f32 2.0, %v317_v1  ;;  %v421_v11 = vmul.f32 %v640_v35, %v401_v4  ;;  %v318_v20 = vmul.f32 %v642_v46, %v298_v12 }
  0x4b   : > { %v332_v6 = vmul.f32 0.5, %v328_v0  ;;  %v432_v30 = vsel %vm424_vm1, %v420_v48, %v428_v59  ;;  %v422_v23 = vmul.f32 %v644_v57, %v402_v14  ;;  %v387_v25 = vmul.f32 %v756_v16, %v383_v18 }
  0x4c   : > { %v436_v9 = vmul.f32 0.5, %v432_v30  ;;  %v329_v34 = vsel %vm321_vm2, %v317_v1, %v325_v10  ;;  %v429_v19 = vsub.f32 2.0, %v421_v11  ;;  %v326_v26 = vsub.f32 2.0, %v318_v20 }
  0x4d   : > { %v333_v22 = vmul.f32 0.5, %v329_v34  ;;  %v430_v15 = vsub.f32 2.0, %v422_v23  ;;  %v299_v27 = vmul.f32 %v746_v2, %v295_v24  ;;  %v391_v28 = vadd.f32 -0.28449672, %v387_v25  ;;  %v648_v2 = vpop.eup %647 }
  0x4e   : > { %v440_v40 = vsub.f32 %v332_v6, %v436_v9  ;;  %v433_v51 = vsel %vm425_vm3, %v421_v11, %v429_v19  ;;  %v330_v31 = vsel %vm322_vm4, %v318_v20, %v326_v26 }
  0x4f   : > { %v437_v37 = vmul.f32 0.5, %v433_v51  ;;  %v334_v32 = vmul.f32 0.5, %v330_v31  ;;  %v434_v35 = vsel %vm426_vm5, %v422_v23, %v430_v15  ;;  %v319_v58 = vmul.f32 %v646_v13, %v299_v27 }
  0x50   : > { %v444_v47 = vmax.f32 %v440_v40, 1e-09  ;;  %v438_v36 = vmul.f32 0.5, %v434_v35  ;;  %v395_v39 = vmul.f32 %v756_v16, %v391_v28 }
  0x51   : > { %v441_v38 = vsub.f32 %v333_v22, %v437_v37  ;;  %v327_v43 = vsub.f32 2.0, %v319_v58 }
  0x52   : > { %v448_v29 = vmin.f32 %v444_v47, 1.0  ;;  %v442_v42 = vsub.f32 %v334_v32, %v438_v36  ;;  %v399_v44 = vadd.f32 0.2548296, %v395_v39 }
  0x53   : > { %v445_v41 = vmax.f32 %v441_v38, 1e-09  ;;  %v331_v48 = vsel %vm323_vm6, %v319_v58, %v327_v43 }
  0x54   : > { %470 = vst [vmem:[%s793_s27] sm:$0xff] %v448_v29  ;;  %v446_v56 = vmax.f32 %v442_v42, 1e-09  ;;  %v403_v45 = vmul.f32 %v756_v16, %v399_v44  ;;  %v335_v21 = vmul.f32 0.5, %v331_v48 }
  0x55   : > { %v449_v17 = vmin.f32 %v445_v41, 1.0 }
  0x56   : > { %v450_v46 = vmin.f32 %v446_v56, 1.0  ;;  %v423_v49 = vmul.f32 %v648_v2, %v403_v45 }
  0x57   : > { %471 = vst [vmem:[%s793_s27 + $0x8] sm:$0xff] %v449_v17 }
  0x58   : > { %472 = vst [vmem:[%s793_s27 + $0x10] sm:$0xff] %v450_v46  ;;  %v431_v50 = vsub.f32 2.0, %v423_v49 }
  0x5a   : > { %v435_v52 = vsel %vm427_vm7, %v423_v49, %v431_v50 }
  0x5b   : > { %v439_v53 = vmul.f32 0.5, %v435_v52 }
  0x5d   : > { %v443_v54 = vsub.f32 %v335_v21, %v439_v53 }
  0x5f   : > { %v447_v55 = vmax.f32 %v443_v54, 1e-09 }
  0x61   : > { %v451_v57 = vmin.f32 %v447_v55, 1.0 }
  0x63   : > { %473 = vst [vmem:[%s793_s27 + $0x18] sm:$0xff] %v451_v57 }
  0x64 PF: > { %s14_s12 = sadd.s32 1, %s655_s12  }
  0x65   : > { %p11_p4 = scmp.ge.s32.totalorder %s14_s12, 4  }
  0x67   :  { %13 = sbr.rel (!%p11_p4) target bundleno = 1 (0x1), region = 73 }

// kernel: forward.45
= control target key start
LH: loop header
LB: loop body
LE: loop exit
PB: predicated region body
PF: predicated region fallthrough
CT: control target
= control target key end

     0   :  { %s569_s12 = smov 0   ;;  %s571_s13 = smov 0   ;;  %s642_s0 = inlined_call_operand.vmem [shape: bf16[12,72], index: 0, kind: input, shape index: {}]   ;;  %s643_s1 = inlined_call_operand.vmem [shape: bf16[72,256], index: 1, kind: input, shape index: {}]   ;;  %s644_s2 = inlined_call_operand.vmem [shape: f32[12,1], index: 2, kind: input, shape index: {}]   ;;  %s645_s3 = inlined_call_operand.vmem [shape: f32[12,256], index: 3, kind: output, shape index: {}]  }
   0x1   :  { %s573_s14 = smov 0  }
   0x2 LB: > { %s448_s15 = sadd.s32 4294967295, %s544_s14   ;;  %s586_s16 = sadd.s32 1, %s544_s14   ;;  %s544_s14 = sphi %s573_s14, %s649_s14   ;;  %s540_s13 = sphi %s571_s13, %s648_s13   ;;  %s536_s12 = sphi %s569_s12, %s647_s12  }
   0x3   : > { %s38_s17 = ssub.s32 %s544_s14, %s586_s16  ;;  %s41_s18 = sadd.s32 1, %s540_s13 }
   0x4   : > { %p39_p0 = scmp.eq.s32.totalorder %s38_s17, 0  ;;  %p48_p1 = scmp.ne.s32.totalorder %s540_s13, %s536_s12 }
   0x5   : > { %p49_p2 = scmp.eq.s32.totalorder %s544_s14, 0  ;;  %p99_p3 = scmp.eq.s32.totalorder %s448_s15, 1 }
   0x6   : > { %s597_s19 = scalar_select %p39_p0, %s540_s13, %s41_s18  }
   0x7   : > { %p50_p4 = por %p49_p2, %p48_p1  ;;  %p599_p5 = por %p99_p3, %p48_p1 }
   0x8   : > { %p451_p6 = scmp.ge.s32.totalorder %s544_s14, 2 }
   0xa   : > { %127 = sbr.rel (%p451_p6) target bundleno = 27 (0x1b), region = 24 }
  0x11   : > { %130 = sbr.rel (!%p50_p4) target bundleno = 27 (0x1b), region = 28  ;;  %s132_s21 = sand.u32 (%p50_p4), 1, %s540_s13  }
  0x12   : > { %s452_s22 = sshll.u32 (%p50_p4), %s544_s14, 2  ;;  %s486_s23 = smul.u32 (%p50_p4), 36, %s132_s21 }
  0x13   : > { %s136_s26 = scalar_lea.vmem (%p50_p4), %s643_s1, %s452_s22 }
  0x14   : > { %v152_v0 = vld [vmem:[%s136_s26] sm:$0xf] (%p50_p4)  ;;  %v154_v1 = vld [vmem:[%s136_s26 + $0x8] sm:$0xf] (%p50_p4)  ;;  %v156_v2 = vld [vmem:[%s136_s26 + $0x10] sm:$0xf] (%p50_p4) }
  0x15   : > { %v158_v3 = vld [vmem:[%s136_s26 + $0x18] sm:$0xf] (%p50_p4)  ;;  %v160_v4 = vld [vmem:[%s136_s26 + $0x20] sm:$0xf] (%p50_p4)  ;;  %s134_s27 = scalar_lea.vmem (%p50_p4), [#allocation2], %s486_s23 }
  0x16   : > { %153 = vst [vmem:[%s134_s27] sm:$0xf] (%p50_p4), %v152_v0  ;;  %155 = vst [vmem:[%s134_s27 + $0x4] sm:$0xf] (%p50_p4), %v154_v1  ;;  %v162_v5 = vld [vmem:[%s136_s26 + $0x28] sm:$0xf] (%p50_p4) }
  0x17   : > { %157 = vst [vmem:[%s134_s27 + $0x8] sm:$0xf] (%p50_p4), %v156_v2  ;;  %159 = vst [vmem:[%s134_s27 + $0xc] sm:$0xf] (%p50_p4), %v158_v3  ;;  %v164_v6 = vld [vmem:[%s136_s26 + $0x30] sm:$0xf] (%p50_p4) }
  0x18   : > { %161 = vst [vmem:[%s134_s27 + $0x10] sm:$0xf] %v160_v4  ;;  %v166_v7 = vld [vmem:[%s136_s26 + $0x38] sm:$0xf]  ;;  %163 = vst [vmem:[%s134_s27 + $0x14] sm:$0xf] %v162_v5 }
  0x19   : > { %165 = vst [vmem:[%s134_s27 + $0x18] sm:$0xf] %v164_v6  ;;  %167 = vst [vmem:[%s134_s27 + $0x1c] sm:$0xf] %v166_v7  ;;  %v168_v8 = vld [vmem:[%s136_s26 + $0x40] sm:$0xf] }
  0x1a   : > { %169 = vst [vmem:[%s134_s27 + $0x20] sm:$0xf] %v168_v8 }
  0x1b PF: > { %p453_p7 = scmp.ge.s32.totalorder %s544_s14, 1  ;;  %p209_p8 = scmp.lt.s32.totalorder %s544_s14, 3 }
  0x1d   : > { %p210_p9 = pnand %p453_p7, %p209_p8 }
  0x1e   : > { %s216_s28 = sand.u32 (!%p210_p9), 1, %s536_s12   ;;  %v546_v9 = vmov (!%p210_p9), 0.0   ;;  %vm547_vm0 = vmmov (!%p210_p9), 0   ;;  %v250_v10 = vld [vmem:[%s644_s2] sm:$0xff] (!%p210_p9)  ;;  %v548_v11 = vmov (!%p210_p9), 0   ;;  %vm298_vm1 = vcmask (!%p210_p9), 1043456  }
  0x1f   : > { %213 = sbr.rel (%p210_p9) target bundleno = 282 (0x11a), region = 69  ;;  %472 = vmatprep.subr.bf16.mxu0 (!%p210_p9), %v546_v9  ;;  %482 = vmatprep.mubr.msk.bf16.mxu0 (!%p210_p9), %vm547_vm0, %v546_v9  ;;  %v251_v13 = vld [vmem:[%s644_s2 + $0x8] sm:$0xf] (!%p210_p9)  ;;  %v521_v19 = vld [vmem:[%s642_s0] sm:$0x3f] (!%p210_p9)   ;;  %vm294_vm2 = vcmask (!%p210_p9), 588800  }
  0x20   : > { %s487_s29 = smul.u32 (!%p210_p9), 36, %s216_s28  ;;  %515 = vset.pattern.permute.xlu0 (!%p210_p9), %v548_v11  ;;  %s454_s10 = sshll.u32 (!%p210_p9), %s216_s28, 4 }
  0x21   : > { %254 = vperm.xlu0 (!%p210_p9), %515, %v250_v10   ;;  %s237_s11 = scalar_lea.vmem (!%p210_p9), [#allocation3], %s454_s10 }
  0x22   : > { %s218_s5 = scalar_lea.vmem (!%p210_p9), [#allocation2], %s487_s29 }
  0x23   : > { %v516_v12 = vld [vmem:[%s218_s5] sm:$0xff] (!%p210_p9)   ;;  %v517_v14 = vld [vmem:[%s218_s5 + $0x8] sm:$0xff] (!%p210_p9)   ;;  %v518_v15 = vld [vmem:[%s218_s5 + $0x10] sm:$0xff] (!%p210_p9)  }
  0x24   : > { %473 = vmatpush3.bf16.msra.mxu0 (!%p210_p9), %v516_v12  ;;  %v519_v16 = vld [vmem:[%s218_s5 + $0x18] sm:$0xff] (!%p210_p9)   ;;  %v520_v17 = vld [vmem:[%s218_s5 + $0x20] ss:$0 sps:$4 sm:$0xff] (!%p210_p9)  }
  0x25   : > { %474 = vmatprep.subr.bf16.mxu0 (!%p210_p9), %v546_v9  ;;  %259 = vperm.xlu0 (!%p210_p9), %515, %v251_v13   ;;  %v300_v18 = vsel (!%p210_p9), %vm298_vm1, %v520_v17, 0 }
  0x26   : > { %s463_s17 = sshll.u32 (%p599_p5), %s448_s15, 3 }
  0x27   : > { %s355_s21 = scalar_lea.vmem (%p599_p5), %s645_s3, %s463_s17 }
  0x28   : > { %475 = vmatpush3.bf16.msra.mxu0 %v517_v14 }
  0x29   : > { %476 = vmatprep.subr.bf16.mxu0 %v546_v9 }
  0x2c   : > { %477 = vmatpush3.bf16.msra.mxu0 %v518_v15 }
  0x2d   : > { %478 = vmatprep.subr.bf16.mxu0 %v546_v9 }
  0x30   : > { %479 = vmatpush3.bf16.msra.mxu0 %v519_v16 }
  0x31   : > { %480 = vmatprep.subr.bf16.mxu0 %v546_v9 }
  0x34   : > { %481 = vmatpush3.bf16.msra.mxu0 %v300_v18 }
  0x37   : > { %483 = vmatmul.mubr.msk.bf16.vlgmr.msra.gmra.mrb[0].mxu0 %vm294_vm2, %v521_v19 }
  0xa0   : > { %v255_v20 = vpop.permute.xlu0 %254 }
  0xa4   : > { %v260_v24 = vpop.permute.xlu0 %259 }
 0x10a   : > { %v336_v21 = vpop.f32.mrb[0].mxu0 }
 0x10b   : > { %v337_v22 = vadd.f32 %v336_v21, %v255_v20  ;;  %v484_v23 = vpop.f32.mrb[1].mxu0  ;;  %353 = sbr.rel (!%p599_p5) target bundleno = 282 (0x11a), region = 77 }
 0x10c   : > { %v339_v25 = vpop.f32.mrb[2].mxu0 }
 0x10d   : > { %v343_v26 = vmax.f32 %v337_v22, 0.0  ;;  %v340_v27 = vadd.f32 %v339_v25, %v260_v24  ;;  %v485_v28 = vpop.f32.mrb[3].mxu0 }
 0x10f   : > { %345 = vst [vmem:[%s237_s11] sm:$0xff] %v343_v26  ;;  %v344_v29 = vmax.f32 %v340_v27, 0.0 }
 0x111   : > { %346 = vst [vmem:[%s237_s11 + $0x8] sm:$0xf] %v344_v29 }
 0x116   : > { %v385_v30 = vld [vmem:[%s237_s11] sm:$0xff] }
 0x117   : > { %386 = vst [vmem:[%s355_s21] sm:$0xff] %v385_v30 }
 0x118   : > { %v387_v31 = vld [vmem:[%s237_s11 + $0x8] sm:$0xff] }
 0x119   : > { %388 = vst [vmem:[%s355_s21 + $0x10] sm:$0xff] %v387_v31 }
 0x11a PF: > { %p10_p10 = scmp.ge.s32.totalorder %s586_s16, 4   ;;  %s647_s12 = smov %s540_s13 }
 0x11b   : > { %s648_s13 = smov %s597_s19  ;;  %s649_s14 = smov %s586_s16 }
 0x11c   :  { %12 = sbr.rel (!%p10_p10) target bundleno = 2 (0x2), region = 146 }

// kernel: forward.47
= control target key start
LH: loop header
LB: loop body
LE: loop exit
PB: predicated region body
PF: predicated region fallthrough
CT: control target
= control target key end

     0   :  { %s701_s18 = smov 0   ;;  %s703_s19 = smov 0   ;;  %s767_s0 = inlined_call_operand.vmem [shape: bf16[8,108], index: 0, kind: input, shape index: {}]   ;;  %s768_s1 = inlined_call_operand.vmem [shape: bf16[108,256], index: 1, kind: input, shape index: {}]   ;;  %s769_s2 = inlined_call_operand.vmem [shape: f32[8,1], index: 2, kind: input, shape index: {}]   ;;  %s770_s3 = inlined_call_operand.vmem [shape: bf16[8,8], index: 3, kind: input, shape index: {}]   ;;  %s771_s4 = inlined_call_operand.vmem [shape: f32[8,1], index: 4, kind: input, shape index: {}]   ;;  %s772_s5 = inlined_call_operand.vmem [shape: bf16[8,256], index: 5, kind: output, shape index: {}]  }
   0x1   :  { %s705_s20 = smov 0  }
   0x2 LB: > { %s553_s21 = sadd.s32 4294967295, %s666_s20   ;;  %s718_s22 = sadd.s32 1, %s666_s20   ;;  %s666_s20 = sphi %s705_s20, %s775_s20   ;;  %s662_s19 = sphi %s703_s19, %s774_s19   ;;  %s658_s18 = sphi %s701_s18, %s773_s18  }
   0x3   : > { %s40_s23 = ssub.s32 %s666_s20, %s718_s22  ;;  %s43_s24 = sadd.s32 1, %s662_s19 }
   0x4   : > { %p41_p0 = scmp.eq.s32.totalorder %s40_s23, 0  ;;  %p50_p1 = scmp.ne.s32.totalorder %s662_s19, %s658_s18 }
   0x5   : > { %p51_p2 = scmp.eq.s32.totalorder %s666_s20, 0  ;;  %p556_p4 = scmp.ge.s32.totalorder %s666_s20, 2 }
   0x6   : > { %s727_s25 = scalar_select %p41_p0, %s662_s19, %s43_s24  }
   0x7   : > { %p52_p3 = por %p51_p2, %p50_p1  ;;  %177 = sbr.rel (%p556_p4) target bundleno = 27 (0x1b), region = 32 }
   0xe   : > { %180 = sbr.rel (!%p52_p3) target bundleno = 27 (0x1b), region = 36  ;;  %s182_s26 = sand.u32 (%p52_p3), 1, %s662_s19  }
   0xf   : > { %s557_s27 = sshll.u32 (%p52_p3), %s666_s20, 2  ;;  %s605_s28 = smul.u32 (%p52_p3), 56, %s182_s26 }
  0x10   : > { %s186_s6 = scalar_lea.vmem (%p52_p3), %s768_s1, %s557_s27 }
  0x11   : > { %v202_v0 = vld [vmem:[%s186_s6] sm:$0xf] (%p52_p3)  ;;  %v204_v1 = vld [vmem:[%s186_s6 + $0x8] sm:$0xf] (%p52_p3)  ;;  %v206_v2 = vld [vmem:[%s186_s6 + $0x10] sm:$0xf] (%p52_p3) }
  0x12   : > { %v208_v3 = vld [vmem:[%s186_s6 + $0x18] sm:$0xf] (%p52_p3)  ;;  %v210_v4 = vld [vmem:[%s186_s6 + $0x20] sm:$0xf] (%p52_p3)  ;;  %s184_s7 = scalar_lea.vmem (%p52_p3), [#allocation2], %s605_s28 }
  0x13   : > { %203 = vst [vmem:[%s184_s7] sm:$0xf] (%p52_p3), %v202_v0  ;;  %205 = vst [vmem:[%s184_s7 + $0x4] sm:$0xf] (%p52_p3), %v204_v1  ;;  %v212_v5 = vld [vmem:[%s186_s6 + $0x28] sm:$0xf] (%p52_p3) }
  0x14   : > { %207 = vst [vmem:[%s184_s7 + $0x8] sm:$0xf] (%p52_p3), %v206_v2  ;;  %209 = vst [vmem:[%s184_s7 + $0xc] sm:$0xf] (%p52_p3), %v208_v3  ;;  %v214_v6 = vld [vmem:[%s186_s6 + $0x30] sm:$0xf] (%p52_p3) }
  0x15   : > { %211 = vst [vmem:[%s184_s7 + $0x10] sm:$0xf] %v210_v4  ;;  %v216_v7 = vld [vmem:[%s186_s6 + $0x38] sm:$0xf]  ;;  %213 = vst [vmem:[%s184_s7 + $0x14] sm:$0xf] %v212_v5 }
  0x16   : > { %215 = vst [vmem:[%s184_s7 + $0x18] sm:$0xf] %v214_v6  ;;  %217 = vst [vmem:[%s184_s7 + $0x1c] sm:$0xf] %v216_v7  ;;  %v218_v8 = vld [vmem:[%s186_s6 + $0x40] sm:$0xf] }
  0x17   : > { %v220_v9 = vld [vmem:[%s186_s6 + $0x48] sm:$0xf]  ;;  %v222_v10 = vld [vmem:[%s186_s6 + $0x50] sm:$0xf]  ;;  %219 = vst [vmem:[%s184_s7 + $0x20] sm:$0xf] %v218_v8 }
  0x18   : > { %221 = vst [vmem:[%s184_s7 + $0x24] sm:$0xf] %v220_v9  ;;  %223 = vst [vmem:[%s184_s7 + $0x28] sm:$0xf] %v222_v10  ;;  %v224_v11 = vld [vmem:[%s186_s6 + $0x58] sm:$0xf] }
  0x19   : > { %v226_v12 = vld [vmem:[%s186_s6 + $0x60] sm:$0xf]  ;;  %v228_v13 = vld [vmem:[%s186_s6 + $0x68] sm:$0xf]  ;;  %225 = vst [vmem:[%s184_s7 + $0x2c] sm:$0xf] %v224_v11 }
  0x1a   : > { %227 = vst [vmem:[%s184_s7 + $0x30] sm:$0xf] %v226_v12  ;;  %229 = vst [vmem:[%s184_s7 + $0x34] sm:$0xf] %v228_v13 }
  0x1b PF: > { %p558_p5 = scmp.ge.s32.totalorder %s666_s20, 1  ;;  %p279_p6 = scmp.lt.s32.totalorder %s666_s20, 3 }
  0x1d   : > { %p280_p7 = pnand %p558_p5, %p279_p6 }
  0x1e   : > { %s286_s8 = sand.u32 (!%p280_p7), 1, %s658_s18   ;;  %v668_v14 = vmov (!%p280_p7), 0.0   ;;  %vm669_vm0 = vmmov (!%p280_p7), 0   ;;  %v332_v15 = vld [vmem:[%s769_s2] sm:$0xff] (!%p280_p7)  ;;  %v670_v16 = vmov (!%p280_p7), 0   ;;  %vm383_vm1 = vcmask (!%p280_p7), 1045504  }
  0x1f   : > { %283 = sbr.rel (%p280_p7) target bundleno = 519 (0x207), region = 77  ;;  %581 = vmatprep.subr.bf16.mxu0 (!%p280_p7), %v668_v14  ;;  %595 = vmatprep.mubr.msk.bf16.mxu0 (!%p280_p7), %vm669_vm0, %v668_v14  ;;  %v430_v17 = vld [vmem:[%s771_s4] sm:$0xff] (!%p280_p7)  ;;  %vm379_vm2 = vcmask (!%p280_p7), 883712   ;;  %vm440_vm3 = vcmask (!%p280_p7), 1043456   ;;  %vm436_vm4 = vcmask (!%p280_p7), 64512   ;;  %p312_p8 = scmp.lt.s32.totalorder (!%p280_p7), %s553_s21, 1 }
  0x20   : > { %s606_s9 = smul.u32 (!%p280_p7), 56, %s286_s8  ;;  %634 = vset.pattern.permute.xlu0 (!%p280_p7), %v670_v16  ;;  %599 = vmatprep.subr.bf16.mxu1 (!%p280_p7), %v668_v14  ;;  %v317_v26 = vld [vmem:[%s767_s0] sm:$0xf] (!%p280_p7) }
  0x21   : > { %335 = vperm.xlu0 (!%p280_p7), %634, %v332_v15   ;;  %601 = vmatprep.mubr.msk.bf16.mxu1 (!%p280_p7), %vm669_vm0, %v668_v14  ;;  %v429_v36 = vld [vmem:[%s770_s3] sm:$0xf] (!%p280_p7) }
  0x22   : > { %s288_s14 = scalar_lea.vmem (!%p280_p7), [#allocation2], %s606_s9 }
  0x23   : > { %v635_v18 = vld [vmem:[%s288_s14] sm:$0xff] (!%p280_p7)   ;;  %v636_v19 = vld [vmem:[%s288_s14 + $0x8] sm:$0xff] (!%p280_p7)   ;;  %v637_v20 = vld [vmem:[%s288_s14 + $0x10] sm:$0xff] (!%p280_p7)  }
  0x24   : > { %582 = vmatpush3.bf16.msra.mxu0 (!%p280_p7), %v635_v18  ;;  %v638_v21 = vld [vmem:[%s288_s14 + $0x18] sm:$0xff] (!%p280_p7)   ;;  %v639_v22 = vld [vmem:[%s288_s14 + $0x20] sm:$0xff] (!%p280_p7)   ;;  %v640_v23 = vld [vmem:[%s288_s14 + $0x28] sm:$0xff] (!%p280_p7)  }
  0x25   : > { %583 = vmatprep.subr.bf16.mxu0 (!%p280_p7), %v668_v14  ;;  %433 = vperm.xlu0 (!%p280_p7), %634, %v430_v17   ;;  %v641_v24 = vld [vmem:[%s288_s14 + $0x30] sm:$0x3f] (!%p280_p7)  }
  0x26   : > { %v385_v25 = vsel %vm383_vm1, %v641_v24, 0  ;;  %s777_s21 = smov (!%p312_p8, %s553_s21), 1 }
  0x27   : > { %s559_s23 = sshll.u32 %s777_s21, 2 }
  0x28   : > { %584 = vmatpush3.bf16.msra.mxu0 %v636_v19  ;;  %s315_s27 = scalar_lea.vmem %s772_s5, %s559_s23 }
  0x29   : > { %585 = vmatprep.subr.bf16.mxu0 %v668_v14 }
  0x2c   : > { %586 = vmatpush3.bf16.msra.mxu0 %v637_v20 }
  0x2d   : > { %587 = vmatprep.subr.bf16.mxu0 %v668_v14 }
  0x30   : > { %588 = vmatpush3.bf16.msra.mxu0 %v638_v21 }
  0x31   : > { %589 = vmatprep.subr.bf16.mxu0 %v668_v14 }
  0x34   : > { %590 = vmatpush3.bf16.msra.mxu0 %v639_v22 }
  0x35   : > { %591 = vmatprep.subr.bf16.mxu0 %v668_v14 }
  0x38   : > { %592 = vmatpush3.bf16.msra.mxu0 %v640_v23 }
  0x39   : > { %593 = vmatprep.subr.bf16.mxu0 %v668_v14 }
  0x3c   : > { %594 = vmatpush3.bf16.msra.mxu0 %v385_v25 }
  0x3f   : > { %596 = vmatmul.mubr.msk.bf16.vlgmr.msra.gmra.mrb[0].mxu0 %vm379_vm2, %v317_v26 }
  0xa0   : > { %v336_v27 = vpop.permute.xlu0 %335 }
  0xa4   : > { %v434_v37 = vpop.permute.xlu0 %433 }
 0x112   : > { %v421_v28 = vpop.f32.mrb[0].mxu0 }
 0x113   : > { %v422_v29 = vadd.f32 %v421_v28, %v336_v27  ;;  %v597_v30 = vpop.f32.mrb[1].mxu0 }
 0x114   : > { %v424_v31 = vpop.f32.mrb[2].mxu0 }
 0x115   : > { %v427_v32 = vmul.f32 %v422_v29, %v422_v29  ;;  %v598_v33 = vpop.f32.mrb[3].mxu0 }
 0x117   : > { %v428_v34 = vpack.c.bf16 %v427_v32, %v427_v32 }
 0x119   : > { %v442_v35 = vsel %vm440_vm3, %v428_v34, 0 }
 0x11a   : > { %600 = vmatpush3.bf16.msra.mxu1 %v442_v35 }
 0x11d   : > { %602 = vmatmul.mubr.msk.bf16.vlgmr.msra.gmra.mrb[0].mxu1 %vm436_vm4, %v429_v36 }
 0x1f0   : > { %v478_v38 = vpop.f32.mrb[0].mxu1 }
 0x1f1   : > { %v479_v39 = vadd.f32 %v478_v38, %v434_v37  ;;  %v603_v40 = vpop.f32.mrb[1].mxu1 }
 0x1f2   : > { %v481_v41 = vpop.f32.mrb[2].mxu1 }
 0x1f3   : > { %642 = vrsqrt.f32 %v479_v39  ;;  %v604_v42 = vpop.f32.mrb[3].mxu1  ;;  %vm486_vm5 = vcmp.eq.f32.partialorder %v479_v39, inf  ;;  %v489_v45 = vand.u32 2147483648, %v479_v39  ;;  %vm488_vm6 = vcmp.eq.f32.partialorder %v479_v39, 0.0 }
 0x1fd   : > { %v643_v43 = vpop.eup %642 }
 0x1fe   : > { %v485_v44 = vmul.f32 %v643_v43, %v479_v39 }
 0x200   : > { %v487_v46 = vsel %vm486_vm5, %v479_v39, %v485_v44 }
 0x201   : > { %v490_v47 = vsel %vm488_vm6, %v489_v45, %v487_v46 }
 0x202   : > { %v491_v48 = vmul.f32 %v490_v47, %v422_v29 }
 0x204   : > { %v492_v49 = vpack.c.bf16 %v491_v48, %v491_v48 }
 0x206   : > { %493 = vst [vmem:[%s315_s27] sm:$0xf] %v492_v49 }
 0x207 PF: > { %p12_p9 = scmp.ge.s32.totalorder %s718_s22, 4   ;;  %s773_s18 = smov %s662_s19 }
 0x208   : > { %s774_s19 = smov %s727_s25  ;;  %s775_s20 = smov %s718_s22 }
 0x209   :  { %14 = sbr.rel (!%p12_p9) target bundleno = 2 (0x2), region = 116 }

// kernel: forward.48
= control target key start
LH: loop header
LB: loop body
LE: loop exit
PB: predicated region body
PF: predicated region fallthrough
CT: control target
= control target key end

     0   :  { %s651_s18 = smov 0   ;;  %s653_s19 = smov 0   ;;  %s719_s0 = inlined_call_operand.vmem [shape: bf16[8,72], index: 0, kind: input, shape index: {}]   ;;  %s720_s1 = inlined_call_operand.vmem [shape: bf16[72,256], index: 1, kind: input, shape index: {}]   ;;  %s721_s2 = inlined_call_operand.vmem [shape: f32[8,1], index: 2, kind: input, shape index: {}]   ;;  %s722_s3 = inlined_call_operand.vmem [shape: bf16[8,8], index: 3, kind: input, shape index: {}]   ;;  %s723_s4 = inlined_call_operand.vmem [shape: f32[8,1], index: 4, kind: input, shape index: {}]   ;;  %s724_s5 = inlined_call_operand.vmem [shape: bf16[8,256], index: 5, kind: output, shape index: {}]  }
   0x1   :  { %s655_s20 = smov 0  }
   0x2 LB: > { %s513_s21 = sadd.s32 4294967295, %s616_s20   ;;  %s668_s22 = sadd.s32 1, %s616_s20   ;;  %s616_s20 = sphi %s655_s20, %s727_s20   ;;  %s612_s19 = sphi %s653_s19, %s726_s19   ;;  %s608_s18 = sphi %s651_s18, %s725_s18  }
   0x3   : > { %s40_s23 = ssub.s32 %s616_s20, %s668_s22  ;;  %s43_s24 = sadd.s32 1, %s612_s19 }
   0x4   : > { %p41_p0 = scmp.eq.s32.totalorder %s40_s23, 0  ;;  %p50_p1 = scmp.ne.s32.totalorder %s612_s19, %s608_s18 }
   0x5   : > { %p51_p2 = scmp.eq.s32.totalorder %s616_s20, 0  ;;  %p516_p4 = scmp.ge.s32.totalorder %s616_s20, 2 }
   0x6   : > { %s677_s25 = scalar_select %p41_p0, %s612_s19, %s43_s24  }
   0x7   : > { %p52_p3 = por %p51_p2, %p50_p1  ;;  %177 = sbr.rel (%p516_p4) target bundleno = 24 (0x18), region = 32 }
   0xe   : > { %180 = sbr.rel (!%p52_p3) target bundleno = 24 (0x18), region = 36  ;;  %s182_s26 = sand.u32 (%p52_p3), 1, %s612_s19  }
   0xf   : > { %s517_s27 = sshll.u32 (%p52_p3), %s616_s20, 2  ;;  %s557_s28 = smul.u32 (%p52_p3), 36, %s182_s26 }
  0x10   : > { %s186_s6 = scalar_lea.vmem (%p52_p3), %s720_s1, %s517_s27 }
  0x11   : > { %v202_v0 = vld [vmem:[%s186_s6] sm:$0xf] (%p52_p3)  ;;  %v204_v1 = vld [vmem:[%s186_s6 + $0x8] sm:$0xf] (%p52_p3)  ;;  %v206_v2 = vld [vmem:[%s186_s6 + $0x10] sm:$0xf] (%p52_p3) }
  0x12   : > { %v208_v3 = vld [vmem:[%s186_s6 + $0x18] sm:$0xf] (%p52_p3)  ;;  %v210_v4 = vld [vmem:[%s186_s6 + $0x20] sm:$0xf] (%p52_p3)  ;;  %s184_s7 = scalar_lea.vmem (%p52_p3), [#allocation2], %s557_s28 }
  0x13   : > { %203 = vst [vmem:[%s184_s7] sm:$0xf] (%p52_p3), %v202_v0  ;;  %205 = vst [vmem:[%s184_s7 + $0x4] sm:$0xf] (%p52_p3), %v204_v1  ;;  %v212_v5 = vld [vmem:[%s186_s6 + $0x28] sm:$0xf] (%p52_p3) }
  0x14   : > { %207 = vst [vmem:[%s184_s7 + $0x8] sm:$0xf] (%p52_p3), %v206_v2  ;;  %209 = vst [vmem:[%s184_s7 + $0xc] sm:$0xf] (%p52_p3), %v208_v3  ;;  %v214_v6 = vld [vmem:[%s186_s6 + $0x30] sm:$0xf] (%p52_p3) }
  0x15   : > { %211 = vst [vmem:[%s184_s7 + $0x10] sm:$0xf] %v210_v4  ;;  %v216_v7 = vld [vmem:[%s186_s6 + $0x38] sm:$0xf]  ;;  %213 = vst [vmem:[%s184_s7 + $0x14] sm:$0xf] %v212_v5 }
  0x16   : > { %215 = vst [vmem:[%s184_s7 + $0x18] sm:$0xf] %v214_v6  ;;  %217 = vst [vmem:[%s184_s7 + $0x1c] sm:$0xf] %v216_v7  ;;  %v218_v8 = vld [vmem:[%s186_s6 + $0x40] sm:$0xf] }
  0x17   : > { %219 = vst [vmem:[%s184_s7 + $0x20] sm:$0xf] %v218_v8 }
  0x18 PF: > { %p518_p5 = scmp.ge.s32.totalorder %s616_s20, 1  ;;  %p259_p6 = scmp.lt.s32.totalorder %s616_s20, 3 }
  0x1a   : > { %p260_p7 = pnand %p518_p5, %p259_p6 }
  0x1b   : > { %s266_s8 = sand.u32 (!%p260_p7), 1, %s608_s18   ;;  %v618_v9 = vmov (!%p260_p7), 0.0   ;;  %vm619_vm0 = vmmov (!%p260_p7), 0   ;;  %v307_v10 = vld [vmem:[%s721_s2] sm:$0xff] (!%p260_p7)  ;;  %v620_v11 = vmov (!%p260_p7), 0   ;;  %vm344_vm1 = vcmask (!%p260_p7), 1043456  }
  0x1c   : > { %263 = sbr.rel (%p260_p7) target bundleno = 508 (0x1fc), region = 77  ;;  %537 = vmatprep.subr.bf16.mxu0 (!%p260_p7), %v618_v9  ;;  %547 = vmatprep.mubr.msk.bf16.mxu0 (!%p260_p7), %vm619_vm0, %v618_v9  ;;  %v391_v12 = vld [vmem:[%s723_s4] sm:$0xff] (!%p260_p7)  ;;  %vm340_vm2 = vcmask (!%p260_p7), 588800   ;;  %vm397_vm3 = vcmask (!%p260_p7), 64512   ;;  %p292_p8 = scmp.lt.s32.totalorder (!%p260_p7), %s513_s21, 1 }
  0x1d   : > { %s558_s9 = smul.u32 (!%p260_p7), 36, %s266_s8  ;;  %586 = vset.pattern.permute.xlu0 (!%p260_p7), %v620_v11  ;;  %551 = vmatprep.subr.bf16.mxu1 (!%p260_p7), %v618_v9  ;;  %v297_v19 = vld [vmem:[%s719_s0] sm:$0xf] (!%p260_p7) }
  0x1e   : > { %310 = vperm.xlu0 (!%p260_p7), %586, %v307_v10   ;;  %553 = vmatprep.mubr.msk.bf16.mxu1 (!%p260_p7), %vm619_vm0, %v618_v9  ;;  %v390_v29 = vld [vmem:[%s722_s3] sm:$0xf] (!%p260_p7) }
  0x1f   : > { %s268_s14 = scalar_lea.vmem (!%p260_p7), [#allocation2], %s558_s9 }
  0x20   : > { %v587_v13 = vld [vmem:[%s268_s14] sm:$0xff] (!%p260_p7)   ;;  %v588_v14 = vld [vmem:[%s268_s14 + $0x8] sm:$0xff] (!%p260_p7)   ;;  %v589_v15 = vld [vmem:[%s268_s14 + $0x10] sm:$0xff] (!%p260_p7)  }
  0x21   : > { %538 = vmatpush3.bf16.msra.mxu0 (!%p260_p7), %v587_v13  ;;  %v590_v16 = vld [vmem:[%s268_s14 + $0x18] sm:$0xff] (!%p260_p7)   ;;  %v591_v17 = vld [vmem:[%s268_s14 + $0x20] ss:$0 sps:$4 sm:$0xff] (!%p260_p7)  }
  0x22   : > { %539 = vmatprep.subr.bf16.mxu0 (!%p260_p7), %v618_v9  ;;  %394 = vperm.xlu0 (!%p260_p7), %586, %v391_v12   ;;  %v346_v18 = vsel (!%p260_p7), %vm344_vm1, %v591_v17, 0 }
  0x23   : > { %s729_s21 = smov (!%p292_p8, %s513_s21), 1 }
  0x24   : > { %s519_s23 = sshll.u32 %s729_s21, 2 }
  0x25   : > { %540 = vmatpush3.bf16.msra.mxu0 %v588_v14  ;;  %s295_s27 = scalar_lea.vmem %s724_s5, %s519_s23 }
  0x26   : > { %541 = vmatprep.subr.bf16.mxu0 %v618_v9 }
  0x29   : > { %542 = vmatpush3.bf16.msra.mxu0 %v589_v15 }
  0x2a   : > { %543 = vmatprep.subr.bf16.mxu0 %v618_v9 }
  0x2d   : > { %544 = vmatpush3.bf16.msra.mxu0 %v590_v16 }
  0x2e   : > { %545 = vmatprep.subr.bf16.mxu0 %v618_v9 }
  0x31   : > { %546 = vmatpush3.bf16.msra.mxu0 %v346_v18 }
  0x34   : > { %548 = vmatmul.mubr.msk.bf16.vlgmr.msra.gmra.mrb[0].mxu0 %vm340_vm2, %v297_v19 }
  0x9d   : > { %v311_v20 = vpop.permute.xlu0 %310 }
  0xa1   : > { %v395_v30 = vpop.permute.xlu0 %394 }
 0x107   : > { %v382_v21 = vpop.f32.mrb[0].mxu0 }
 0x108   : > { %v383_v22 = vadd.f32 %v382_v21, %v311_v20  ;;  %v549_v23 = vpop.f32.mrb[1].mxu0 }
 0x109   : > { %v385_v24 = vpop.f32.mrb[2].mxu0 }
 0x10a   : > { %v388_v25 = vmul.f32 %v383_v22, %v383_v22  ;;  %v550_v26 = vpop.f32.mrb[3].mxu0 }
 0x10c   : > { %v389_v27 = vpack.c.bf16 %v388_v25, %v388_v25 }
 0x10e   : > { %v402_v28 = vsel %vm344_vm1, %v389_v27, 0 }
 0x10f   : > { %552 = vmatpush3.bf16.msra.mxu1 %v402_v28 }
 0x112   : > { %554 = vmatmul.mubr.msk.bf16.vlgmr.msra.gmra.mrb[0].mxu1 %vm397_vm3, %v390_v29 }
 0x1e5   : > { %v438_v31 = vpop.f32.mrb[0].mxu1 }
 0x1e6   : > { %v439_v32 = vadd.f32 %v438_v31, %v395_v30  ;;  %v555_v33 = vpop.f32.mrb[1].mxu1 }
 0x1e7   : > { %v441_v34 = vpop.f32.mrb[2].mxu1 }
 0x1e8   : > { %592 = vrsqrt.f32 %v439_v32  ;;  %v556_v35 = vpop.f32.mrb[3].mxu1  ;;  %vm446_vm4 = vcmp.eq.f32.partialorder %v439_v32, inf  ;;  %v449_v38 = vand.u32 2147483648, %v439_v32  ;;  %vm448_vm5 = vcmp.eq.f32.partialorder %v439_v32, 0.0 }
 0x1f2   : > { %v593_v36 = vpop.eup %592 }
 0x1f3   : > { %v445_v37 = vmul.f32 %v593_v36, %v439_v32 }
 0x1f5   : > { %v447_v39 = vsel %vm446_vm4, %v439_v32, %v445_v37 }
 0x1f6   : > { %v450_v40 = vsel %vm448_vm5, %v449_v38, %v447_v39 }
 0x1f7   : > { %v451_v41 = vmul.f32 %v450_v40, %v383_v22 }
 0x1f9   : > { %v452_v42 = vpack.c.bf16 %v451_v41, %v451_v41 }
 0x1fb   : > { %453 = vst [vmem:[%s295_s27] sm:$0xf] %v452_v42 }
 0x1fc PF: > { %p12_p9 = scmp.ge.s32.totalorder %s668_s22, 4   ;;  %s725_s18 = smov %s612_s19 }
 0x1fd   : > { %s726_s19 = smov %s677_s25  ;;  %s727_s20 = smov %s668_s22 }
 0x1fe   :  { %14 = sbr.rel (!%p12_p9) target bundleno = 2 (0x2), region = 116 }

// kernel: forward.49
= control target key start
LH: loop header
LB: loop body
LE: loop exit
PB: predicated region body
PF: predicated region fallthrough
CT: control target
= control target key end

     0   :  { %s614_s18 = smov 0   ;;  %s616_s19 = smov 0   ;;  %s680_s0 = inlined_call_operand.vmem [shape: bf16[8,48], index: 0, kind: input, shape index: {}]   ;;  %s681_s1 = inlined_call_operand.vmem [shape: bf16[48,256], index: 1, kind: input, shape index: {}]   ;;  %s682_s2 = inlined_call_operand.vmem [shape: f32[8,1], index: 2, kind: input, shape index: {}]   ;;  %s683_s3 = inlined_call_operand.vmem [shape: bf16[8,8], index: 3, kind: input, shape index: {}]   ;;  %s684_s4 = inlined_call_operand.vmem [shape: f32[8,1], index: 4, kind: input, shape index: {}]   ;;  %s685_s5 = inlined_call_operand.vmem [shape: bf16[8,256], index: 5, kind: output, shape index: {}]  }
   0x1   :  { %s618_s20 = smov 0  }
   0x2 LB: > { %s486_s21 = sadd.s32 4294967295, %s579_s20   ;;  %s631_s22 = sadd.s32 1, %s579_s20   ;;  %s579_s20 = sphi %s618_s20, %s688_s20   ;;  %s575_s19 = sphi %s616_s19, %s687_s19   ;;  %s571_s18 = sphi %s614_s18, %s686_s18  }
   0x3   : > { %s40_s23 = ssub.s32 %s579_s20, %s631_s22  ;;  %s43_s24 = sadd.s32 1, %s575_s19 }
   0x4   : > { %p41_p0 = scmp.eq.s32.totalorder %s40_s23, 0  ;;  %p50_p1 = scmp.ne.s32.totalorder %s575_s19, %s571_s18 }
   0x5   : > { %p51_p2 = scmp.eq.s32.totalorder %s579_s20, 0  ;;  %p489_p4 = scmp.ge.s32.totalorder %s579_s20, 2 }
   0x6   : > { %s640_s25 = scalar_select %p41_p0, %s575_s19, %s43_s24  }
   0x7   : > { %p52_p3 = por %p51_p2, %p50_p1  ;;  %177 = sbr.rel (%p489_p4) target bundleno = 22 (0x16), region = 32 }
   0xe   : > { %180 = sbr.rel (!%p52_p3) target bundleno = 22 (0x16), region = 36  ;;  %s182_s26 = sand.u32 (%p52_p3), 1, %s575_s19  }
   0xf   : > { %s490_s27 = sshll.u32 (%p52_p3), %s579_s20, 2  ;;  %s522_s28 = smul.u32 (%p52_p3), 24, %s182_s26 }
  0x10   : > { %s186_s6 = scalar_lea.vmem (%p52_p3), %s681_s1, %s490_s27 }
  0x11   : > { %v202_v0 = vld [vmem:[%s186_s6] sm:$0xf] (%p52_p3)  ;;  %v204_v1 = vld [vmem:[%s186_s6 + $0x8] sm:$0xf] (%p52_p3)  ;;  %v206_v2 = vld [vmem:[%s186_s6 + $0x10] sm:$0xf] (%p52_p3) }
  0x12   : > { %v208_v3 = vld [vmem:[%s186_s6 + $0x18] sm:$0xf] (%p52_p3)  ;;  %v210_v4 = vld [vmem:[%s186_s6 + $0x20] sm:$0xf] (%p52_p3)  ;;  %s184_s7 = scalar_lea.vmem (%p52_p3), [#allocation2], %s522_s28 }
  0x13   : > { %203 = vst [vmem:[%s184_s7] sm:$0xf] (%p52_p3), %v202_v0  ;;  %205 = vst [vmem:[%s184_s7 + $0x4] sm:$0xf] (%p52_p3), %v204_v1  ;;  %v212_v5 = vld [vmem:[%s186_s6 + $0x28] sm:$0xf] (%p52_p3) }
  0x14   : > { %207 = vst [vmem:[%s184_s7 + $0x8] sm:$0xf] (%p52_p3), %v206_v2  ;;  %209 = vst [vmem:[%s184_s7 + $0xc] sm:$0xf] (%p52_p3), %v208_v3 }
  0x15   : > { %211 = vst [vmem:[%s184_s7 + $0x10] sm:$0xf] %v210_v4  ;;  %213 = vst [vmem:[%s184_s7 + $0x14] sm:$0xf] %v212_v5 }
  0x16 PF: > { %p491_p5 = scmp.ge.s32.totalorder %s579_s20, 1  ;;  %p247_p6 = scmp.lt.s32.totalorder %s579_s20, 3 }
  0x18   : > { %p248_p7 = pnand %p491_p5, %p247_p6 }
  0x19   : > { %s254_s8 = sand.u32 (!%p248_p7), 1, %s571_s18   ;;  %v581_v6 = vmov (!%p248_p7), 0.0   ;;  %vm582_vm0 = vmmov (!%p248_p7), 0   ;;  %v292_v7 = vld [vmem:[%s682_s2] sm:$0xff] (!%p248_p7)  ;;  %v583_v8 = vmov (!%p248_p7), 0   ;;  %vm316_vm1 = vcmask (!%p248_p7), 392192  }
  0x1a   : > { %251 = sbr.rel (%p248_p7) target bundleno = 498 (0x1f2), region = 77  ;;  %506 = vmatprep.subr.bf16.mxu0 (!%p248_p7), %v581_v6  ;;  %512 = vmatprep.mubr.msk.bf16.mxu0 (!%p248_p7), %vm582_vm0, %v581_v6  ;;  %v363_v9 = vld [vmem:[%s684_s4] sm:$0xff] (!%p248_p7)  ;;  %vm373_vm2 = vcmask (!%p248_p7), 1043456   ;;  %vm369_vm3 = vcmask (!%p248_p7), 64512   ;;  %p280_p8 = scmp.lt.s32.totalorder (!%p248_p7), %s486_s21, 1 }
  0x1b   : > { %s523_s9 = smul.u32 (!%p248_p7), 24, %s254_s8  ;;  %551 = vset.pattern.permute.xlu0 (!%p248_p7), %v583_v8  ;;  %516 = vmatprep.subr.bf16.mxu1 (!%p248_p7), %v581_v6  ;;  %v285_v13 = vld [vmem:[%s680_s0] sm:$0xf] (!%p248_p7) }
  0x1c   : > { %295 = vperm.xlu0 (!%p248_p7), %551, %v292_v7   ;;  %518 = vmatprep.mubr.msk.bf16.mxu1 (!%p248_p7), %vm582_vm0, %v581_v6  ;;  %v362_v23 = vld [vmem:[%s683_s3] sm:$0xf] (!%p248_p7) }
  0x1d   : > { %s256_s14 = scalar_lea.vmem (!%p248_p7), [#allocation2], %s523_s9 }
  0x1e   : > { %v552_v10 = vld [vmem:[%s256_s14] sm:$0xff] (!%p248_p7)   ;;  %v553_v11 = vld [vmem:[%s256_s14 + $0x8] sm:$0xff] (!%p248_p7)   ;;  %v554_v12 = vld [vmem:[%s256_s14 + $0x10] sm:$0xff] (!%p248_p7)  }
  0x1f   : > { %507 = vmatpush3.bf16.msra.mxu0 (!%p248_p7), %v552_v10 }
  0x20   : > { %508 = vmatprep.subr.bf16.mxu0 (!%p248_p7), %v581_v6  ;;  %366 = vperm.xlu0 (!%p248_p7), %551, %v363_v9  }
  0x21   : > { %s690_s21 = smov (!%p280_p8, %s486_s21), 1 }
  0x22   : > { %s492_s23 = sshll.u32 %s690_s21, 2 }
  0x23   : > { %509 = vmatpush3.bf16.msra.mxu0 %v553_v11  ;;  %s283_s27 = scalar_lea.vmem %s685_s5, %s492_s23 }
  0x24   : > { %510 = vmatprep.subr.bf16.mxu0 %v581_v6 }
  0x27   : > { %511 = vmatpush3.bf16.msra.mxu0 %v554_v12 }
  0x2a   : > { %513 = vmatmul.mubr.msk.bf16.vlgmr.msra.gmra.mrb[0].mxu0 %vm316_vm1, %v285_v13 }
  0x9b   : > { %v296_v14 = vpop.permute.xlu0 %295 }
  0x9f   : > { %v367_v24 = vpop.permute.xlu0 %366 }
  0xfd   : > { %v354_v15 = vpop.f32.mrb[0].mxu0 }
  0xfe   : > { %v355_v16 = vadd.f32 %v354_v15, %v296_v14  ;;  %v514_v17 = vpop.f32.mrb[1].mxu0 }
  0xff   : > { %v357_v18 = vpop.f32.mrb[2].mxu0 }
 0x100   : > { %v360_v19 = vmul.f32 %v355_v16, %v355_v16  ;;  %v515_v20 = vpop.f32.mrb[3].mxu0 }
 0x102   : > { %v361_v21 = vpack.c.bf16 %v360_v19, %v360_v19 }
 0x104   : > { %v375_v22 = vsel %vm373_vm2, %v361_v21, 0 }
 0x105   : > { %517 = vmatpush3.bf16.msra.mxu1 %v375_v22 }
 0x108   : > { %519 = vmatmul.mubr.msk.bf16.vlgmr.msra.gmra.mrb[0].mxu1 %vm369_vm3, %v362_v23 }
 0x1db   : > { %v411_v25 = vpop.f32.mrb[0].mxu1 }
 0x1dc   : > { %v412_v26 = vadd.f32 %v411_v25, %v367_v24  ;;  %v520_v27 = vpop.f32.mrb[1].mxu1 }
 0x1dd   : > { %v414_v28 = vpop.f32.mrb[2].mxu1 }
 0x1de   : > { %555 = vrsqrt.f32 %v412_v26  ;;  %v521_v29 = vpop.f32.mrb[3].mxu1  ;;  %vm419_vm4 = vcmp.eq.f32.partialorder %v412_v26, inf  ;;  %v422_v32 = vand.u32 2147483648, %v412_v26  ;;  %vm421_vm5 = vcmp.eq.f32.partialorder %v412_v26, 0.0 }
 0x1e8   : > { %v556_v30 = vpop.eup %555 }
 0x1e9   : > { %v418_v31 = vmul.f32 %v556_v30, %v412_v26 }
 0x1eb   : > { %v420_v33 = vsel %vm419_vm4, %v412_v26, %v418_v31 }
 0x1ec   : > { %v423_v34 = vsel %vm421_vm5, %v422_v32, %v420_v33 }
 0x1ed   : > { %v424_v35 = vmul.f32 %v423_v34, %v355_v16 }
 0x1ef   : > { %v425_v36 = vpack.c.bf16 %v424_v35, %v424_v35 }
 0x1f1   : > { %426 = vst [vmem:[%s283_s27] sm:$0xf] %v425_v36 }
 0x1f2 PF: > { %p12_p9 = scmp.ge.s32.totalorder %s631_s22, 4   ;;  %s686_s18 = smov %s575_s19 }
 0x1f3   : > { %s687_s19 = smov %s640_s25  ;;  %s688_s20 = smov %s631_s22 }
 0x1f4   :  { %14 = sbr.rel (!%p12_p9) target bundleno = 2 (0x2), region = 116 }

// kernel: forward.51
= control target key start
LH: loop header
LB: loop body
LE: loop exit
PB: predicated region body
PF: predicated region fallthrough
CT: control target
= control target key end

     0   :  { %s593_s18 = smov 0   ;;  %s595_s19 = smov 0   ;;  %s659_s0 = inlined_call_operand.vmem [shape: bf16[8,32], index: 0, kind: input, shape index: {}]   ;;  %s660_s1 = inlined_call_operand.vmem [shape: bf16[32,256], index: 1, kind: input, shape index: {}]   ;;  %s661_s2 = inlined_call_operand.vmem [shape: f32[8,1], index: 2, kind: input, shape index: {}]   ;;  %s662_s3 = inlined_call_operand.vmem [shape: bf16[8,8], index: 3, kind: input, shape index: {}]   ;;  %s663_s4 = inlined_call_operand.vmem [shape: f32[8,1], index: 4, kind: input, shape index: {}]   ;;  %s664_s5 = inlined_call_operand.vmem [shape: bf16[8,256], index: 5, kind: output, shape index: {}]  }
   0x1   :  { %s597_s20 = smov 0  }
   0x2 LB: > { %s470_s21 = sadd.s32 4294967295, %s558_s20   ;;  %s610_s22 = sadd.s32 1, %s558_s20   ;;  %s558_s20 = sphi %s597_s20, %s667_s20   ;;  %s554_s19 = sphi %s595_s19, %s666_s19   ;;  %s550_s18 = sphi %s593_s18, %s665_s18  }
   0x3   : > { %s40_s23 = ssub.s32 %s558_s20, %s610_s22  ;;  %s43_s24 = sadd.s32 1, %s554_s19 }
   0x4   : > { %p41_p0 = scmp.eq.s32.totalorder %s40_s23, 0  ;;  %p50_p1 = scmp.ne.s32.totalorder %s554_s19, %s550_s18 }
   0x5   : > { %p51_p2 = scmp.eq.s32.totalorder %s558_s20, 0  ;;  %p473_p4 = scmp.ge.s32.totalorder %s558_s20, 2 }
   0x6   : > { %s619_s25 = scalar_select %p41_p0, %s554_s19, %s43_s24  }
   0x7   : > { %p52_p3 = por %p51_p2, %p50_p1  ;;  %177 = sbr.rel (%p473_p4) target bundleno = 21 (0x15), region = 32 }
   0xe   : > { %180 = sbr.rel (!%p52_p3) target bundleno = 21 (0x15), region = 36  ;;  %s182_s26 = sand.u32 (%p52_p3), 1, %s554_s19  }
   0xf   : > { %s475_s27 = sshll.u32 (%p52_p3), %s558_s20, 2  ;;  %s474_s28 = sshll.u32 (%p52_p3), %s182_s26, 4 }
  0x10   : > { %s186_s6 = scalar_lea.vmem (%p52_p3), %s660_s1, %s475_s27  ;;  %s184_s7 = scalar_lea.vmem (%p52_p3), [#allocation2], %s474_s28 }
  0x11   : > { %v202_v0 = vld [vmem:[%s186_s6] sm:$0xf] (%p52_p3)  ;;  %v204_v1 = vld [vmem:[%s186_s6 + $0x8] sm:$0xf] (%p52_p3)  ;;  %v206_v2 = vld [vmem:[%s186_s6 + $0x10] sm:$0xf] (%p52_p3) }
  0x12   : > { %203 = vst [vmem:[%s184_s7] sm:$0xf] (%p52_p3), %v202_v0  ;;  %205 = vst [vmem:[%s184_s7 + $0x4] sm:$0xf] (%p52_p3), %v204_v1  ;;  %v208_v3 = vld [vmem:[%s186_s6 + $0x18] sm:$0xf] (%p52_p3) }
  0x13   : > { %207 = vst [vmem:[%s184_s7 + $0x8] sm:$0xf] (%p52_p3), %v206_v2  ;;  %209 = vst [vmem:[%s184_s7 + $0xc] sm:$0xf] (%p52_p3), %v208_v3 }
  0x15 PF: > { %p476_p5 = scmp.ge.s32.totalorder %s558_s20, 1  ;;  %p239_p6 = scmp.lt.s32.totalorder %s558_s20, 3 }
  0x17   : > { %p240_p7 = pnand %p476_p5, %p239_p6 }
  0x18   : > { %s246_s8 = sand.u32 (!%p240_p7), 1, %s550_s18   ;;  %v560_v4 = vmov (!%p240_p7), 0.0   ;;  %vm561_vm0 = vmmov (!%p240_p7), 0   ;;  %v282_v5 = vld [vmem:[%s661_s2] sm:$0xff] (!%p240_p7)  ;;  %v562_v6 = vmov (!%p240_p7), 0   ;;  %vm300_vm1 = vcmask (!%p240_p7), 261120  }
  0x19   : > { %243 = sbr.rel (%p240_p7) target bundleno = 491 (0x1eb), region = 77  ;;  %490 = vmatprep.subr.bf16.mxu0 (!%p240_p7), %v560_v4  ;;  %s477_s9 = sshll.u32 (!%p240_p7), %s246_s8, 4  ;;  %494 = vmatprep.mubr.msk.bf16.mxu0 (!%p240_p7), %vm561_vm0, %v560_v4  ;;  %v347_v8 = vld [vmem:[%s663_s4] sm:$0xff] (!%p240_p7)  ;;  %vm357_vm2 = vcmask (!%p240_p7), 1043456   ;;  %vm353_vm3 = vcmask (!%p240_p7), 64512  }
  0x1a   : > { %531 = vset.pattern.permute.xlu0 (!%p240_p7), %v562_v6  ;;  %498 = vmatprep.subr.bf16.mxu1 (!%p240_p7), %v560_v4  ;;  %s248_s12 = scalar_lea.vmem (!%p240_p7), [#allocation2], %s477_s9  ;;  %v277_v10 = vld [vmem:[%s659_s0] sm:$0xf] (!%p240_p7)  ;;  %p272_p8 = scmp.lt.s32.totalorder (!%p240_p7), %s470_s21, 1 }
  0x1b   : > { %v532_v7 = vld [vmem:[%s248_s12] sm:$0xff] (!%p240_p7)   ;;  %285 = vperm.xlu0 (!%p240_p7), %531, %v282_v5   ;;  %500 = vmatprep.mubr.msk.bf16.mxu1 (!%p240_p7), %vm561_vm0, %v560_v4  ;;  %v533_v9 = vld [vmem:[%s248_s12 + $0x8] sm:$0xff] (!%p240_p7)  }
  0x1c   : > { %491 = vmatpush3.bf16.msra.mxu0 (!%p240_p7), %v532_v7  ;;  %v346_v20 = vld [vmem:[%s662_s3] sm:$0xf] (!%p240_p7) }
  0x1d   : > { %492 = vmatprep.subr.bf16.mxu0 (!%p240_p7), %v560_v4 }
  0x1f   : > { %350 = vperm.xlu0 (!%p240_p7), %531, %v347_v8  }
  0x20   : > { %493 = vmatpush3.bf16.msra.mxu0 %v533_v9  ;;  %s669_s21 = smov (!%p272_p8, %s470_s21), 1 }
  0x21   : > { %s478_s23 = sshll.u32 %s669_s21, 2 }
  0x22   : > { %s275_s27 = scalar_lea.vmem %s664_s5, %s478_s23 }
  0x23   : > { %495 = vmatmul.mubr.msk.bf16.vlgmr.msra.gmra.mrb[0].mxu0 %vm300_vm1, %v277_v10 }
  0x9a   : > { %v286_v11 = vpop.permute.xlu0 %285 }
  0x9e   : > { %v351_v21 = vpop.permute.xlu0 %350 }
  0xf6   : > { %v338_v12 = vpop.f32.mrb[0].mxu0 }
  0xf7   : > { %v339_v13 = vadd.f32 %v338_v12, %v286_v11  ;;  %v496_v14 = vpop.f32.mrb[1].mxu0 }
  0xf8   : > { %v341_v15 = vpop.f32.mrb[2].mxu0 }
  0xf9   : > { %v344_v16 = vmul.f32 %v339_v13, %v339_v13  ;;  %v497_v17 = vpop.f32.mrb[3].mxu0 }
  0xfb   : > { %v345_v18 = vpack.c.bf16 %v344_v16, %v344_v16 }
  0xfd   : > { %v359_v19 = vsel %vm357_vm2, %v345_v18, 0 }
  0xfe   : > { %499 = vmatpush3.bf16.msra.mxu1 %v359_v19 }
 0x101   : > { %501 = vmatmul.mubr.msk.bf16.vlgmr.msra.gmra.mrb[0].mxu1 %vm353_vm3, %v346_v20 }
 0x1d4   : > { %v395_v22 = vpop.f32.mrb[0].mxu1 }
 0x1d5   : > { %v396_v23 = vadd.f32 %v395_v22, %v351_v21  ;;  %v502_v24 = vpop.f32.mrb[1].mxu1 }
 0x1d6   : > { %v398_v25 = vpop.f32.mrb[2].mxu1 }
 0x1d7   : > { %534 = vrsqrt.f32 %v396_v23  ;;  %v503_v26 = vpop.f32.mrb[3].mxu1  ;;  %vm403_vm4 = vcmp.eq.f32.partialorder %v396_v23, inf  ;;  %v406_v29 = vand.u32 2147483648, %v396_v23  ;;  %vm405_vm5 = vcmp.eq.f32.partialorder %v396_v23, 0.0 }
 0x1e1   : > { %v535_v27 = vpop.eup %534 }
 0x1e2   : > { %v402_v28 = vmul.f32 %v535_v27, %v396_v23 }
 0x1e4   : > { %v404_v30 = vsel %vm403_vm4, %v396_v23, %v402_v28 }
 0x1e5   : > { %v407_v31 = vsel %vm405_vm5, %v406_v29, %v404_v30 }
 0x1e6   : > { %v408_v32 = vmul.f32 %v407_v31, %v339_v13 }
 0x1e8   : > { %v409_v33 = vpack.c.bf16 %v408_v32, %v408_v32 }
 0x1ea   : > { %410 = vst [vmem:[%s275_s27] sm:$0xf] %v409_v33 }
 0x1eb PF: > { %p12_p9 = scmp.ge.s32.totalorder %s610_s22, 4   ;;  %s665_s18 = smov %s554_s19 }
 0x1ec   : > { %s666_s19 = smov %s619_s25  ;;  %s667_s20 = smov %s610_s22 }
 0x1ed   :  { %14 = sbr.rel (!%p12_p9) target bundleno = 2 (0x2), region = 116 }

// kernel: forward.57
= control target key start
LH: loop header
LB: loop body
LE: loop exit
PB: predicated region body
PF: predicated region fallthrough
CT: control target
= control target key end

     0   :  { %s485_s12 = smov 0   ;;  %s487_s13 = smov 0   ;;  %s543_s0 = inlined_call_operand.vmem [shape: bf16[3,48], index: 0, kind: input, shape index: {}]   ;;  %s544_s1 = inlined_call_operand.vmem [shape: bf16[48,512], index: 1, kind: input, shape index: {}]   ;;  %s545_s2 = inlined_call_operand.vmem [shape: f32[3,1], index: 2, kind: input, shape index: {}]   ;;  %s546_s3 = inlined_call_operand.vmem [shape: f32[3,512], index: 3, kind: output, shape index: {}]  }
   0x1   :  { %s489_s14 = smov 0  }
   0x2 LB: > { %s384_s15 = sadd.s32 4294967295, %s462_s14   ;;  %s502_s16 = sadd.s32 1, %s462_s14   ;;  %s462_s14 = sphi %s489_s14, %s549_s14   ;;  %s458_s13 = sphi %s487_s13, %s548_s13   ;;  %s454_s12 = sphi %s485_s12, %s547_s12  }
   0x3   : > { %s38_s17 = ssub.s32 %s462_s14, %s502_s16  ;;  %s41_s18 = sadd.s32 1, %s458_s13 }
   0x4   : > { %p39_p0 = scmp.eq.s32.totalorder %s38_s17, 0  ;;  %p48_p1 = scmp.ne.s32.totalorder %s458_s13, %s454_s12 }
   0x5   : > { %p49_p2 = scmp.eq.s32.totalorder %s462_s14, 0  ;;  %p387_p4 = scmp.ge.s32.totalorder %s462_s14, 2 }
   0x6   : > { %s511_s19 = scalar_select %p39_p0, %s458_s13, %s41_s18  }
   0x7   : > { %p50_p3 = por %p49_p2, %p48_p1  ;;  %127 = sbr.rel (%p387_p4) target bundleno = 21 (0x15), region = 24 }
   0xe   : > { %130 = sbr.rel (!%p50_p3) target bundleno = 21 (0x15), region = 28  ;;  %s132_s20 = sand.u32 (%p50_p3), 1, %s458_s13  }
   0xf   : > { %s402_s21 = sshll.u32 (%p50_p3), %s462_s14, 3  ;;  %s403_s22 = smul.u32 (%p50_p3), 48, %s132_s20 }
  0x10   : > { %s137_s25 = scalar_lea.vmem (%p50_p3), %s544_s1, %s402_s21 }
  0x11   : > { %v175_v0 = vld [vmem:[%s137_s25] sm:$0xff] (%p50_p3)  ;;  %v177_v1 = vld [vmem:[%s137_s25 + $0x10] sm:$0xff] (%p50_p3)  ;;  %s134_s26 = scalar_lea.vmem (%p50_p3), [#allocation2], %s403_s22 }
  0x12   : > { %v179_v2 = vld [vmem:[%s137_s25 + $0x20] sm:$0xff] (%p50_p3)  ;;  %v181_v3 = vld [vmem:[%s137_s25 + $0x30] sm:$0xff] (%p50_p3)  ;;  %176 = vst [vmem:[%s134_s26] sm:$0xff] (%p50_p3), %v175_v0  ;;  %178 = vst [vmem:[%s134_s26 + $0x8] sm:$0xff] (%p50_p3), %v177_v1 }
  0x13   : > { %v183_v4 = vld [vmem:[%s137_s25 + $0x40] sm:$0xff] (%p50_p3)  ;;  %v185_v5 = vld [vmem:[%s137_s25 + $0x50] sm:$0xff] (%p50_p3)  ;;  %180 = vst [vmem:[%s134_s26 + $0x10] sm:$0xff] (%p50_p3), %v179_v2  ;;  %182 = vst [vmem:[%s134_s26 + $0x18] sm:$0xff] (%p50_p3), %v181_v3 }
  0x14   : > { %184 = vst [vmem:[%s134_s26 + $0x20] sm:$0xff] (%p50_p3), %v183_v4  ;;  %186 = vst [vmem:[%s134_s26 + $0x28] sm:$0xff] (%p50_p3), %v185_v5 }
  0x15 PF: > { %p390_p5 = scmp.ge.s32.totalorder %s462_s14, 1  ;;  %p191_p6 = scmp.lt.s32.totalorder %s462_s14, 3 }
  0x17   : > { %p192_p7 = pnand %p390_p5, %p191_p6 }
  0x18   : > { %s198_s27 = sand.u32 (!%p192_p7), 1, %s454_s12   ;;  %v464_v6 = vmov (!%p192_p7), 0   ;;  %v236_v7 = vld [vmem:[%s545_s2] sm:$0x7] (!%p192_p7)  ;;  %vm272_vm0 = vcmask (!%p192_p7), 392192   ;;  %s391_s7 = sshll.u32 (!%p192_p7), %s384_s15, 1 }
  0x19   : > { %195 = sbr.rel (%p192_p7) target bundleno = 260 (0x104), region = 66  ;;  %308 = vmatprep.mubr.bf16.mxu0 (!%p192_p7), %v464_v6  ;;  %430 = vset.pattern.permute.xlu0 (!%p192_p7), %v464_v6  ;;  %v229_v14 = vld [vmem:[%s543_s0] sm:$0x3] (!%p192_p7)  ;;  %p223_p8 = scmp.lt.s32.totalorder (!%p192_p7), %s391_s7, 3 }
  0x1a   : > { %s404_s28 = smul.u32 (!%p192_p7), 48, %s198_s27  ;;  %239 = vperm.xlu0 (!%p192_p7), %430, %v236_v7  }
  0x1c   : > { %s200_s4 = scalar_lea.vmem (!%p192_p7), [#allocation2], %s404_s28 }
  0x1d   : > { %v431_v8 = vld [vmem:[%s200_s4 + $0x4] ss:$8 sps:$4 sm:$0xff] (!%p192_p7)   ;;  %v433_v9 = vld [vmem:[%s200_s4] ss:$8 sps:$4 sm:$0xff] (!%p192_p7)   ;;  %v434_v10 = vld [vmem:[%s200_s4 + $0x14] ss:$8 sps:$4 sm:$0xff] (!%p192_p7)  }
  0x1e   : > { %276 = vmatprep.subr.bf16.mxu0 (!%p192_p7), %v431_v8  ;;  %v436_v11 = vld [vmem:[%s200_s4 + $0x10] ss:$8 sps:$4 sm:$0xff] (!%p192_p7)   ;;  %v437_v12 = vld [vmem:[%s200_s4 + $0x24] ss:$8 sps:$4 sm:$0xff] (!%p192_p7)   ;;  %v439_v13 = vld [vmem:[%s200_s4 + $0x20] ss:$8 sps:$4 sm:$0xff] (!%p192_p7)  }
  0x1f   : > { %277 = vmatpush1.bf16.msra.mxu0 (!%p192_p7), %v433_v9 }
  0x20   : > { %278 = vmatprep.subr.bf16.mxu0 %v434_v10  ;;  %s551_s7 = smov (!%p223_p8, %s391_s7), 3 }
  0x21   : > { %s392_s8 = sshll.u32 %s551_s7, 2 }
  0x22   : > { %s226_s11 = scalar_lea.vmem %s546_s3, %s392_s8 }
  0x23   : > { %279 = vmatpush1.bf16.msra.mxu0 %v436_v11 }
  0x24   : > { %280 = vmatprep.subr.bf16.mxu0 %v437_v12 }
  0x27   : > { %281 = vmatpush1.bf16.msra.mxu0 %v439_v13 }
  0x2a   : > { %399 = vmatmul.mubr.msk.bf16.vlgmr.msra.gmra.mrb[0].mxu0 %vm272_vm0, %v229_v14 }
  0x99   : > { %v240_v15 = vpop.permute.xlu0 %239 }
  0xfd   : > { %v310_v16 = vpop.f32.mrb[0].mxu0 }
  0xfe   : > { %v311_v17 = vadd.f32 %v310_v16, %v240_v15  ;;  %v312_v18 = vpop.f32.mrb[1].mxu0 }
  0xff   : > { %v313_v19 = vadd.f32 %v312_v18, %v240_v15  ;;  %v314_v20 = vpop.f32.mrb[2].mxu0 }
 0x100   : > { %v315_v21 = vpop.f32.mrb[3].mxu0 }
 0x101   : > { %v319_v22 = vcombine.low %v311_v17, %v313_v19 }
 0x103   : > { %321 = vst [vmem:[%s226_s11] sm:$0x77] %v319_v22 }
 0x104 PF: > { %p10_p9 = scmp.ge.s32.totalorder %s502_s16, 4   ;;  %s547_s12 = smov %s458_s13 }
 0x105   : > { %s548_s13 = smov %s511_s19  ;;  %s549_s14 = smov %s502_s16 }
 0x106   :  { %12 = sbr.rel (!%p10_p9) target bundleno = 2 (0x2), region = 105 }

// kernel: forward.56
= control target key start
LH: loop header
LB: loop body
LE: loop exit
PB: predicated region body
PF: predicated region fallthrough
CT: control target
= control target key end

     0   :  { %s532_s12 = smov 0   ;;  %s534_s13 = smov 0   ;;  %s590_s0 = inlined_call_operand.vmem [shape: bf16[3,72], index: 0, kind: input, shape index: {}]   ;;  %s591_s1 = inlined_call_operand.vmem [shape: bf16[72,512], index: 1, kind: input, shape index: {}]   ;;  %s592_s2 = inlined_call_operand.vmem [shape: f32[3,1], index: 2, kind: input, shape index: {}]   ;;  %s593_s3 = inlined_call_operand.vmem [shape: f32[3,512], index: 3, kind: output, shape index: {}]  }
   0x1   :  { %s536_s14 = smov 0  }
   0x2 LB: > { %s421_s15 = sadd.s32 4294967295, %s509_s14   ;;  %s549_s16 = sadd.s32 1, %s509_s14   ;;  %s509_s14 = sphi %s536_s14, %s596_s14   ;;  %s505_s13 = sphi %s534_s13, %s595_s13   ;;  %s501_s12 = sphi %s532_s12, %s594_s12  }
   0x3   : > { %s38_s17 = ssub.s32 %s509_s14, %s549_s16  ;;  %s41_s18 = sadd.s32 1, %s505_s13 }
   0x4   : > { %p39_p0 = scmp.eq.s32.totalorder %s38_s17, 0  ;;  %p48_p1 = scmp.ne.s32.totalorder %s505_s13, %s501_s12 }
   0x5   : > { %p49_p2 = scmp.eq.s32.totalorder %s509_s14, 0  ;;  %p424_p4 = scmp.ge.s32.totalorder %s509_s14, 2 }
   0x6   : > { %s558_s19 = scalar_select %p39_p0, %s505_s13, %s41_s18  }
   0x7   : > { %p50_p3 = por %p49_p2, %p48_p1  ;;  %127 = sbr.rel (%p424_p4) target bundleno = 23 (0x17), region = 24 }
   0xe   : > { %130 = sbr.rel (!%p50_p3) target bundleno = 23 (0x17), region = 28  ;;  %s132_s20 = sand.u32 (%p50_p3), 1, %s505_s13  }
   0xf   : > { %s444_s21 = sshll.u32 (%p50_p3), %s509_s14, 3  ;;  %s445_s22 = smul.u32 (%p50_p3), 72, %s132_s20 }
  0x10   : > { %s137_s25 = scalar_lea.vmem (%p50_p3), %s591_s1, %s444_s21 }
  0x11   : > { %v181_v0 = vld [vmem:[%s137_s25] sm:$0xff] (%p50_p3)  ;;  %v183_v1 = vld [vmem:[%s137_s25 + $0x10] sm:$0xff] (%p50_p3)  ;;  %s134_s26 = scalar_lea.vmem (%p50_p3), [#allocation2], %s445_s22 }
  0x12   : > { %v185_v2 = vld [vmem:[%s137_s25 + $0x20] sm:$0xff] (%p50_p3)  ;;  %v187_v3 = vld [vmem:[%s137_s25 + $0x30] sm:$0xff] (%p50_p3)  ;;  %182 = vst [vmem:[%s134_s26] sm:$0xff] (%p50_p3), %v181_v0  ;;  %184 = vst [vmem:[%s134_s26 + $0x8] sm:$0xff] (%p50_p3), %v183_v1 }
  0x13   : > { %v189_v4 = vld [vmem:[%s137_s25 + $0x40] sm:$0xff] (%p50_p3)  ;;  %v191_v5 = vld [vmem:[%s137_s25 + $0x50] sm:$0xff] (%p50_p3)  ;;  %186 = vst [vmem:[%s134_s26 + $0x10] sm:$0xff] (%p50_p3), %v185_v2  ;;  %188 = vst [vmem:[%s134_s26 + $0x18] sm:$0xff] (%p50_p3), %v187_v3 }
  0x14   : > { %190 = vst [vmem:[%s134_s26 + $0x20] sm:$0xff] (%p50_p3), %v189_v4  ;;  %192 = vst [vmem:[%s134_s26 + $0x28] sm:$0xff] (%p50_p3), %v191_v5  ;;  %v193_v6 = vld [vmem:[%s137_s25 + $0x60] sm:$0xff] (%p50_p3)  ;;  %v195_v7 = vld [vmem:[%s137_s25 + $0x70] sm:$0xff] (%p50_p3) }
  0x15   : > { %v197_v8 = vld [vmem:[%s137_s25 + $0x80] sm:$0xff]  ;;  %194 = vst [vmem:[%s134_s26 + $0x30] sm:$0xff] %v193_v6  ;;  %196 = vst [vmem:[%s134_s26 + $0x38] sm:$0xff] %v195_v7 }
  0x16   : > { %198 = vst [vmem:[%s134_s26 + $0x40] sm:$0xff] %v197_v8 }
  0x17 PF: > { %p427_p5 = scmp.ge.s32.totalorder %s509_s14, 1  ;;  %p203_p6 = scmp.lt.s32.totalorder %s509_s14, 3 }
  0x19   : > { %p204_p7 = pnand %p427_p5, %p203_p6 }
  0x1a   : > { %s210_s27 = sand.u32 (!%p204_p7), 1, %s501_s12   ;;  %v511_v9 = vmov (!%p204_p7), 0   ;;  %v251_v10 = vld [vmem:[%s592_s2] sm:$0x7] (!%p204_p7)  ;;  %vm306_vm0 = vcmask (!%p204_p7), 1043456   ;;  %vm302_vm1 = vcmask (!%p204_p7), 588800  }
  0x1b   : > { %207 = sbr.rel (%p204_p7) target bundleno = 270 (0x10e), region = 66  ;;  %345 = vmatprep.mubr.bf16.mxu0 (!%p204_p7), %v511_v9  ;;  %472 = vset.pattern.permute.xlu0 (!%p204_p7), %v511_v9  ;;  %v241_v23 = vld [vmem:[%s590_s0] sm:$0x3] (!%p204_p7)  ;;  %s428_s7 = sshll.u32 (!%p204_p7), %s421_s15, 1 }
  0x1c   : > { %s446_s28 = smul.u32 (!%p204_p7), 72, %s210_s27  ;;  %254 = vperm.xlu0 (!%p204_p7), %472, %v251_v10   ;;  %p235_p8 = scmp.lt.s32.totalorder (!%p204_p7), %s428_s7, 3 }
  0x1e   : > { %s212_s4 = scalar_lea.vmem (!%p204_p7), [#allocation2], %s446_s28 }
  0x1f   : > { %v473_v11 = vld [vmem:[%s212_s4 + $0x4] ss:$8 sps:$4 sm:$0xff] (!%p204_p7)   ;;  %v475_v12 = vld [vmem:[%s212_s4] ss:$8 sps:$4 sm:$0xff] (!%p204_p7)   ;;  %v476_v13 = vld [vmem:[%s212_s4 + $0x14] ss:$8 sps:$4 sm:$0xff] (!%p204_p7)  }
  0x20   : > { %313 = vmatprep.subr.bf16.mxu0 (!%p204_p7), %v473_v11  ;;  %v478_v14 = vld [vmem:[%s212_s4 + $0x10] ss:$8 sps:$4 sm:$0xff] (!%p204_p7)   ;;  %v479_v15 = vld [vmem:[%s212_s4 + $0x24] ss:$8 sps:$4 sm:$0xff] (!%p204_p7)   ;;  %v481_v16 = vld [vmem:[%s212_s4 + $0x20] ss:$8 sps:$4 sm:$0xff] (!%p204_p7)  }
  0x21   : > { %314 = vmatpush1.bf16.msra.mxu0 (!%p204_p7), %v475_v12  ;;  %v482_v17 = vld [vmem:[%s212_s4 + $0x34] ss:$8 sps:$4 sm:$0xff] (!%p204_p7)   ;;  %v250_v18 = vld [vmem:[%s212_s4 + $0x40] sm:$0xff] (!%p204_p7)  ;;  %v484_v19 = vld [vmem:[%s212_s4 + $0x30] ss:$8 sps:$4 sm:$0xff] (!%p204_p7)  }
  0x22   : > { %315 = vmatprep.subr.bf16.mxu0 %v476_v13  ;;  %v439_v20 = vcombine.high %v250_v18, %v250_v18  ;;  %v438_v21 = vcombine.low %v250_v18, %v250_v18  ;;  %s598_s7 = smov (!%p235_p8, %s428_s7), 3 }
  0x23   : > { %s429_s8 = sshll.u32 %s598_s7, 2 }
  0x24   : > { %v308_v22 = vsel %vm306_vm0, %v438_v21, 0  ;;  %s238_s11 = scalar_lea.vmem %s593_s3, %s429_s8 }
  0x25   : > { %316 = vmatpush1.bf16.msra.mxu0 %v478_v14 }
  0x26   : > { %317 = vmatprep.subr.bf16.mxu0 %v479_v15 }
  0x29   : > { %318 = vmatpush1.bf16.msra.mxu0 %v481_v16 }
  0x2a   : > { %319 = vmatprep.subr.bf16.mxu0 %v482_v17 }
  0x2d   : > { %320 = vmatpush1.bf16.msra.mxu0 %v484_v19 }
  0x2e   : > { %440 = vmatprep.subr.msk.bf16.mxu0 %vm306_vm0, %v439_v20 }
  0x31   : > { %322 = vmatpush1.bf16.msra.mxu0 %v308_v22 }
  0x34   : > { %441 = vmatmul.mubr.msk.bf16.vlgmr.msra.gmra.mrb[0].mxu0 %vm302_vm1, %v241_v23 }
  0x9b   : > { %v255_v24 = vpop.permute.xlu0 %254 }
 0x107   : > { %v347_v25 = vpop.f32.mrb[0].mxu0 }
 0x108   : > { %v348_v26 = vadd.f32 %v347_v25, %v255_v24  ;;  %v349_v27 = vpop.f32.mrb[1].mxu0 }
 0x109   : > { %v350_v28 = vadd.f32 %v349_v27, %v255_v24  ;;  %v351_v29 = vpop.f32.mrb[2].mxu0 }
 0x10a   : > { %v352_v30 = vpop.f32.mrb[3].mxu0 }
 0x10b   : > { %v356_v31 = vcombine.low %v348_v26, %v350_v28 }
 0x10d   : > { %358 = vst [vmem:[%s238_s11] sm:$0x77] %v356_v31 }
 0x10e PF: > { %p10_p9 = scmp.ge.s32.totalorder %s549_s16, 4   ;;  %s594_s12 = smov %s505_s13 }
 0x10f   : > { %s595_s13 = smov %s558_s19  ;;  %s596_s14 = smov %s549_s16 }
 0x110   :  { %12 = sbr.rel (!%p10_p9) target bundleno = 2 (0x2), region = 105 }

// kernel: forward.59
= control target key start
LH: loop header
LB: loop body
LE: loop exit
PB: predicated region body
PF: predicated region fallthrough
CT: control target
= control target key end

     0   :  { %s460_s12 = smov 0   ;;  %s462_s13 = smov 0   ;;  %s518_s0 = inlined_call_operand.vmem [shape: bf16[3,32], index: 0, kind: input, shape index: {}]   ;;  %s519_s1 = inlined_call_operand.vmem [shape: bf16[32,512], index: 1, kind: input, shape index: {}]   ;;  %s520_s2 = inlined_call_operand.vmem [shape: f32[3,1], index: 2, kind: input, shape index: {}]   ;;  %s521_s3 = inlined_call_operand.vmem [shape: f32[3,512], index: 3, kind: output, shape index: {}]  }
   0x1   :  { %s464_s14 = smov 0  }
   0x2 LB: > { %s364_s15 = sadd.s32 4294967295, %s437_s14   ;;  %s477_s16 = sadd.s32 1, %s437_s14   ;;  %s437_s14 = sphi %s464_s14, %s524_s14   ;;  %s433_s13 = sphi %s462_s13, %s523_s13   ;;  %s429_s12 = sphi %s460_s12, %s522_s12  }
   0x3   : > { %s38_s17 = ssub.s32 %s437_s14, %s477_s16  ;;  %s41_s18 = sadd.s32 1, %s433_s13 }
   0x4   : > { %p39_p0 = scmp.eq.s32.totalorder %s38_s17, 0  ;;  %p48_p1 = scmp.ne.s32.totalorder %s433_s13, %s429_s12 }
   0x5   : > { %p49_p2 = scmp.eq.s32.totalorder %s437_s14, 0  ;;  %p367_p4 = scmp.ge.s32.totalorder %s437_s14, 2 }
   0x6   : > { %s486_s19 = scalar_select %p39_p0, %s433_s13, %s41_s18  }
   0x7   : > { %p50_p3 = por %p49_p2, %p48_p1  ;;  %127 = sbr.rel (%p367_p4) target bundleno = 21 (0x15), region = 24 }
   0xe   : > { %130 = sbr.rel (!%p50_p3) target bundleno = 21 (0x15), region = 28  ;;  %s132_s20 = sand.u32 (%p50_p3), 1, %s433_s13  }
   0xf   : > { %s382_s21 = sshll.u32 (%p50_p3), %s437_s14, 3  ;;  %s368_s22 = sshll.u32 (%p50_p3), %s132_s20, 5 }
  0x10   : > { %s137_s25 = scalar_lea.vmem (%p50_p3), %s519_s1, %s382_s21  ;;  %s134_s26 = scalar_lea.vmem (%p50_p3), [#allocation2], %s368_s22 }
  0x11   : > { %v171_v0 = vld [vmem:[%s137_s25] sm:$0xff] (%p50_p3)  ;;  %v173_v1 = vld [vmem:[%s137_s25 + $0x10] sm:$0xff] (%p50_p3) }
  0x12   : > { %v175_v2 = vld [vmem:[%s137_s25 + $0x20] sm:$0xff] (%p50_p3)  ;;  %172 = vst [vmem:[%s134_s26] sm:$0xff] (%p50_p3), %v171_v0  ;;  %174 = vst [vmem:[%s134_s26 + $0x8] sm:$0xff] (%p50_p3), %v173_v1  ;;  %v177_v3 = vld [vmem:[%s137_s25 + $0x30] sm:$0xff] (%p50_p3) }
  0x13   : > { %176 = vst [vmem:[%s134_s26 + $0x10] sm:$0xff] (%p50_p3), %v175_v2  ;;  %178 = vst [vmem:[%s134_s26 + $0x18] sm:$0xff] (%p50_p3), %v177_v3 }
  0x15 PF: > { %p371_p5 = scmp.ge.s32.totalorder %s437_s14, 1  ;;  %p183_p6 = scmp.lt.s32.totalorder %s437_s14, 3 }
  0x17   : > { %p184_p7 = pnand %p371_p5, %p183_p6 }
  0x18   : > { %s190_s27 = sand.u32 (!%p184_p7), 1, %s429_s12   ;;  %v439_v4 = vmov (!%p184_p7), 0   ;;  %v226_v5 = vld [vmem:[%s520_s2] sm:$0x7] (!%p184_p7)  ;;  %vm252_vm0 = vcmask (!%p184_p7), 261120   ;;  %s373_s7 = sshll.u32 (!%p184_p7), %s364_s15, 1 }
  0x19   : > { %187 = sbr.rel (%p184_p7) target bundleno = 254 (0xfe), region = 66  ;;  %s372_s28 = sshll.u32 (!%p184_p7), %s190_s27, 5  ;;  %288 = vmatprep.mubr.bf16.mxu0 (!%p184_p7), %v439_v4  ;;  %408 = vset.pattern.permute.xlu0 (!%p184_p7), %v439_v4  ;;  %v221_v10 = vld [vmem:[%s518_s0] sm:$0x3] (!%p184_p7) }
  0x1a   : > { %229 = vperm.xlu0 (!%p184_p7), %408, %v226_v5   ;;  %s192_s4 = scalar_lea.vmem (!%p184_p7), [#allocation2], %s372_s28  ;;  %p215_p8 = scmp.lt.s32.totalorder (!%p184_p7), %s373_s7, 3 }
  0x1b   : > { %v409_v6 = vld [vmem:[%s192_s4 + $0x4] ss:$8 sps:$4 sm:$0xff] (!%p184_p7)   ;;  %v411_v7 = vld [vmem:[%s192_s4] ss:$8 sps:$4 sm:$0xff] (!%p184_p7)   ;;  %v412_v8 = vld [vmem:[%s192_s4 + $0x14] ss:$8 sps:$4 sm:$0xff] (!%p184_p7)  }
  0x1c   : > { %256 = vmatprep.subr.bf16.mxu0 (!%p184_p7), %v409_v6  ;;  %v414_v9 = vld [vmem:[%s192_s4 + $0x10] ss:$8 sps:$4 sm:$0xff] (!%p184_p7)  }
  0x1d   : > { %257 = vmatpush1.bf16.msra.mxu0 (!%p184_p7), %v411_v7 }
  0x1e   : > { %258 = vmatprep.subr.bf16.mxu0 (!%p184_p7), %v412_v8 }
  0x20   : > { %s526_s7 = smov (!%p215_p8, %s373_s7), 3 }
  0x21   : > { %259 = vmatpush1.bf16.msra.mxu0 %v414_v9  ;;  %s374_s8 = sshll.u32 %s526_s7, 2 }
  0x22   : > { %s218_s11 = scalar_lea.vmem %s521_s3, %s374_s8 }
  0x24   : > { %379 = vmatmul.mubr.msk.bf16.vlgmr.msra.gmra.mrb[0].mxu0 %vm252_vm0, %v221_v10 }
  0x99   : > { %v230_v11 = vpop.permute.xlu0 %229 }
  0xf7   : > { %v290_v12 = vpop.f32.mrb[0].mxu0 }
  0xf8   : > { %v291_v13 = vadd.f32 %v290_v12, %v230_v11  ;;  %v292_v14 = vpop.f32.mrb[1].mxu0 }
  0xf9   : > { %v293_v15 = vadd.f32 %v292_v14, %v230_v11  ;;  %v294_v16 = vpop.f32.mrb[2].mxu0 }
  0xfa   : > { %v295_v17 = vpop.f32.mrb[3].mxu0 }
  0xfb   : > { %v299_v18 = vcombine.low %v291_v13, %v293_v15 }
  0xfd   : > { %301 = vst [vmem:[%s218_s11] sm:$0x77] %v299_v18 }
  0xfe PF: > { %p10_p9 = scmp.ge.s32.totalorder %s477_s16, 4   ;;  %s522_s12 = smov %s433_s13 }
  0xff   : > { %s523_s13 = smov %s486_s19  ;;  %s524_s14 = smov %s477_s16 }
 0x100   :  { %12 = sbr.rel (!%p10_p9) target bundleno = 2 (0x2), region = 105 }

</bundles_post_ra>
